<compile_context>
chip_gen: v7x
topology: tpu7x:2x2x1
jax: 0.10.0
libtpu: 0.0.40
codegen_flags: <defaults>
</compile_context>

<pallas_src>
import functools

import jax
import jax.numpy as jnp
from jax.experimental import pallas as pl
from jax.experimental.pallas import tpu as pltpu

KH = 3
KW = 3


def _conv_batch_kernel(x_ref, w_ref, b_ref, o_ref, *, h, w, cout):
    # x_ref: (N, Cin, H*W)            VMEM  -- whole batch, lane-dense channels
    # w_ref: (Cout*Cin*KH*KW,)        SMEM  -- OIHW weights, row-major flat
    # b_ref: (Cout,)                  SMEM  -- bias
    # o_ref: (N, Cout, H_out*W)       VMEM  -- stride-W output slab (junk cols
    #                                          j in {W-2, W-1} dropped outside)
    n = x_ref.shape[0]
    cin = x_ref.shape[1]
    h_out = h - KH + 1
    w_out = w - KW + 1
    # Shifted-window length in flat stride-W space: covers output positions
    # q = i*W + j for i in [0, H_out), j in [0, W_out); max start (KH-1)*W+(KW-1)
    # plus span is exactly H*W, so every tap slice stays inside its channel.
    span = (h_out - 1) * w + w_out

    # Static Python loop over the (tiny) batch: one image per iteration.
    for b in range(n):
        # Loop interchange: taps outer, out-channels inner -> only the 6
        # accumulators (+1 window) stay live; no vreg-file spills.
        accs = [jnp.full((span,), b_ref[co], dtype=jnp.float32)
                for co in range(cout)]
        for ci in range(cin):
            for kh in range(KH):
                for kw in range(KW):
                    start = kh * w + kw
                    win = x_ref[b, ci, start:start + span]     # strided vld
                    for co in range(cout):
                        flat = ((co * cin + ci) * KH + kh) * KW + kw
                        accs[co] = accs[co] + w_ref[flat] * win
        # One dense, lane-0-aligned store per output channel.
        for co in range(cout):
            o_ref[b, co, 0:span] = accs[co].astype(o_ref.dtype)


def conv2d_pallas(x_nchw, w_oihw, bias):
    """Conv2d stride=1, padding=0.  x: (N, Cin, H, W) f32 -> (N, Cout, H-2, W-2)."""
    assert x_nchw.dtype == jnp.float32, "kernel assumes float32 inputs"
    n, cin, h, w = x_nchw.shape
    cout = w_oihw.shape[0]
    h_out = h - KH + 1
    w_out = w - KW + 1

    x_flat = x_nchw.reshape(n, cin, h * w)   # row-major -> free layout change
    w_flat = w_oihw.reshape(-1)              # (Cout*Cin*KH*KW,) OIHW order

    kernel = functools.partial(_conv_batch_kernel, h=h, w=w, cout=cout)

    out_slab = pl.pallas_call(
        kernel,
        out_shape=jax.ShapeDtypeStruct((n, cout, h_out * w), x_nchw.dtype),
        grid_spec=pltpu.PrefetchScalarGridSpec(
            num_scalar_prefetch=0,
            grid=(1,),                       # single step: whole batch per call
            in_specs=[
                # full batch per step; block equals array dims -> tiling OK
                pl.BlockSpec((n, cin, h * w), lambda i: (0, 0, 0)),
                # tiny weight / bias tables in SMEM (copied once: 1 grid step)
                pl.BlockSpec(memory_space=pltpu.MemorySpace.SMEM),
                pl.BlockSpec(memory_space=pltpu.MemorySpace.SMEM),
            ],
            out_specs=pl.BlockSpec((n, cout, h_out * w), lambda i: (0, 0, 0)),
        ),
        compiler_params=pltpu.CompilerParams(
            dimension_semantics=("arbitrary",)),
    )(x_flat, w_flat, bias)

    # stride-W slab -> NCHW: free reshape, then drop the 2 junk columns per row.
    return out_slab.reshape(n, cout, h_out, w)[..., :w_out]


def init_params(key, cin=3, cout=6, kh=KH, kw=KW):
    # Deterministic init mimicking PyTorch Conv2d defaults
    # (uniform(-bound, bound) with bound = 1/sqrt(fan_in)).
    fan_in = cin * kh * kw
    bound = 1.0 / jnp.sqrt(float(fan_in))
    w_key, b_key = jax.random.split(key)
    weight = jax.random.uniform(w_key, (cout, cin, kh, kw),
                                minval=-bound, maxval=bound, dtype=jnp.float32)
    bias = jax.random.uniform(b_key, (cout,),
                              minval=-bound, maxval=bound, dtype=jnp.float32)
    return weight, bias


if __name__ == "__main__":
    key = jax.random.PRNGKey(0)
    k_x, k_p = jax.random.split(key)

    # Shapes consistent with the module: N=2, Cin=3, H=W=16.
    x = jax.random.normal(k_x, (2, 3, 16, 16), dtype=jnp.float32)
    weight, bias = init_params(k_p)

    out = conv2d_pallas(x, weight, bias)
    out = jax.block_until_ready(out)

    # Sanity check against XLA's conv (same NCHW/OIHW semantics as PyTorch).
    ref = jax.lax.conv_general_dilated(
        x, weight, window_strides=(1, 1), padding="VALID",
        dimension_numbers=("NCHW", "OIHW", "NCHW"),
    ) + bias.reshape(1, -1, 1, 1)
    assert out.shape == (2, 6, 14, 14)
    assert jnp.allclose(out, ref, atol=1e-5, rtol=1e-5)

    print("KERNEL_OK")
</pallas_src>

<mosaic_0001>
module attributes {stable_mosaic.version = 11 : i64} {
  func.func @_conv_batch_kernel(%arg0: i32, %arg1: memref<2x3x256xf32, #tpu.memory_space<vmem>>, %arg2: memref<162xf32, #tpu.memory_space<smem>>, %arg3: memref<6xf32, #tpu.memory_space<smem>>, %arg4: memref<2x6x224xf32, #tpu.memory_space<vmem>>) attributes {dimension_semantics = [#tpu.dimension_semantics<arbitrary>], iteration_bounds = array<i64: 1>, scalar_prefetch = 0 : i64, scratch_operands = 0 : i64, tpu.core_type = #tpu.core_type<tc>, window_params = [{pipeline_mode = #tpu.pipeline_mode<synchronous>, transform_indices = @transform_0, window_bounds = array<i64: 2, 3, 256>}, {transform_indices = @transform_1, window_bounds = array<i64: 162>}, {transform_indices = @transform_2, window_bounds = array<i64: 6>}, {pipeline_mode = #tpu.pipeline_mode<synchronous>, transform_indices = @transform_3, window_bounds = array<i64: 2, 6, 224>}]} {
    %c0 = arith.constant 0 : index
    %0 = memref.load %arg3[%c0] : memref<6xf32, #tpu.memory_space<smem>>
    %1 = vector.broadcast %0 : f32 to vector<222xf32>
    %c1 = arith.constant 1 : index
    %2 = memref.load %arg3[%c1] : memref<6xf32, #tpu.memory_space<smem>>
    %3 = vector.broadcast %2 : f32 to vector<222xf32>
    %c2 = arith.constant 2 : index
    %4 = memref.load %arg3[%c2] : memref<6xf32, #tpu.memory_space<smem>>
    %5 = vector.broadcast %4 : f32 to vector<222xf32>
    %c3 = arith.constant 3 : index
    %6 = memref.load %arg3[%c3] : memref<6xf32, #tpu.memory_space<smem>>
    %7 = vector.broadcast %6 : f32 to vector<222xf32>
    %c4 = arith.constant 4 : index
    %8 = memref.load %arg3[%c4] : memref<6xf32, #tpu.memory_space<smem>>
    %9 = vector.broadcast %8 : f32 to vector<222xf32>
    %c5 = arith.constant 5 : index
    %10 = memref.load %arg3[%c5] : memref<6xf32, #tpu.memory_space<smem>>
    %11 = vector.broadcast %10 : f32 to vector<222xf32>
    %c0_0 = arith.constant 0 : index
    %c0_1 = arith.constant 0 : index
    %c0_2 = arith.constant 0 : index
    %12 = vector.load %arg1[%c0_0, %c0_1, %c0_2] : memref<2x3x256xf32, #tpu.memory_space<vmem>>, vector<1x1x222xf32>
    %13 = vector.shape_cast %12 : vector<1x1x222xf32> to vector<222xf32>
    %c0_3 = arith.constant 0 : index
    %14 = memref.load %arg2[%c0_3] : memref<162xf32, #tpu.memory_space<smem>>
    %15 = vector.broadcast %14 : f32 to vector<222xf32>
    %16 = arith.mulf %15, %13 : vector<222xf32>
    %17 = arith.addf %1, %16 : vector<222xf32>
    %c27 = arith.constant 27 : index
    %18 = memref.load %arg2[%c27] : memref<162xf32, #tpu.memory_space<smem>>
    %19 = vector.broadcast %18 : f32 to vector<222xf32>
    %20 = arith.mulf %19, %13 : vector<222xf32>
    %21 = arith.addf %3, %20 : vector<222xf32>
    %c54 = arith.constant 54 : index
    %22 = memref.load %arg2[%c54] : memref<162xf32, #tpu.memory_space<smem>>
    %23 = vector.broadcast %22 : f32 to vector<222xf32>
    %24 = arith.mulf %23, %13 : vector<222xf32>
    %25 = arith.addf %5, %24 : vector<222xf32>
    %c81 = arith.constant 81 : index
    %26 = memref.load %arg2[%c81] : memref<162xf32, #tpu.memory_space<smem>>
    %27 = vector.broadcast %26 : f32 to vector<222xf32>
    %28 = arith.mulf %27, %13 : vector<222xf32>
    %29 = arith.addf %7, %28 : vector<222xf32>
    %c108 = arith.constant 108 : index
    %30 = memref.load %arg2[%c108] : memref<162xf32, #tpu.memory_space<smem>>
    %31 = vector.broadcast %30 : f32 to vector<222xf32>
    %32 = arith.mulf %31, %13 : vector<222xf32>
    %33 = arith.addf %9, %32 : vector<222xf32>
    %c135 = arith.constant 135 : index
    %34 = memref.load %arg2[%c135] : memref<162xf32, #tpu.memory_space<smem>>
    %35 = vector.broadcast %34 : f32 to vector<222xf32>
    %36 = arith.mulf %35, %13 : vector<222xf32>
    %37 = arith.addf %11, %36 : vector<222xf32>
    %c0_4 = arith.constant 0 : index
    %c0_5 = arith.constant 0 : index
    %c1_6 = arith.constant 1 : index
    %38 = vector.load %arg1[%c0_4, %c0_5, %c1_6] : memref<2x3x256xf32, #tpu.memory_space<vmem>>, vector<1x1x222xf32>
    %39 = vector.shape_cast %38 : vector<1x1x222xf32> to vector<222xf32>
    %c1_7 = arith.constant 1 : index
    %40 = memref.load %arg2[%c1_7] : memref<162xf32, #tpu.memory_space<smem>>
    %41 = vector.broadcast %40 : f32 to vector<222xf32>
    %42 = arith.mulf %41, %39 : vector<222xf32>
    %43 = arith.addf %17, %42 : vector<222xf32>
    %c28 = arith.constant 28 : index
    %44 = memref.load %arg2[%c28] : memref<162xf32, #tpu.memory_space<smem>>
    %45 = vector.broadcast %44 : f32 to vector<222xf32>
    %46 = arith.mulf %45, %39 : vector<222xf32>
    %47 = arith.addf %21, %46 : vector<222xf32>
    %c55 = arith.constant 55 : index
    %48 = memref.load %arg2[%c55] : memref<162xf32, #tpu.memory_space<smem>>
    %49 = vector.broadcast %48 : f32 to vector<222xf32>
    %50 = arith.mulf %49, %39 : vector<222xf32>
    %51 = arith.addf %25, %50 : vector<222xf32>
    %c82 = arith.constant 82 : index
    %52 = memref.load %arg2[%c82] : memref<162xf32, #tpu.memory_space<smem>>
    %53 = vector.broadcast %52 : f32 to vector<222xf32>
    %54 = arith.mulf %53, %39 : vector<222xf32>
    %55 = arith.addf %29, %54 : vector<222xf32>
    %c109 = arith.constant 109 : index
    %56 = memref.load %arg2[%c109] : memref<162xf32, #tpu.memory_space<smem>>
    %57 = vector.broadcast %56 : f32 to vector<222xf32>
    %58 = arith.mulf %57, %39 : vector<222xf32>
    %59 = arith.addf %33, %58 : vector<222xf32>
    %c136 = arith.constant 136 : index
    %60 = memref.load %arg2[%c136] : memref<162xf32, #tpu.memory_space<smem>>
    %61 = vector.broadcast %60 : f32 to vector<222xf32>
    %62 = arith.mulf %61, %39 : vector<222xf32>
    %63 = arith.addf %37, %62 : vector<222xf32>
    %c0_8 = arith.constant 0 : index
    %c0_9 = arith.constant 0 : index
    %c2_10 = arith.constant 2 : index
    %64 = vector.load %arg1[%c0_8, %c0_9, %c2_10] : memref<2x3x256xf32, #tpu.memory_space<vmem>>, vector<1x1x222xf32>
    %65 = vector.shape_cast %64 : vector<1x1x222xf32> to vector<222xf32>
    %c2_11 = arith.constant 2 : index
    %66 = memref.load %arg2[%c2_11] : memref<162xf32, #tpu.memory_space<smem>>
    %67 = vector.broadcast %66 : f32 to vector<222xf32>
    %68 = arith.mulf %67, %65 : vector<222xf32>
    %69 = arith.addf %43, %68 : vector<222xf32>
    %c29 = arith.constant 29 : index
    %70 = memref.load %arg2[%c29] : memref<162xf32, #tpu.memory_space<smem>>
    %71 = vector.broadcast %70 : f32 to vector<222xf32>
    %72 = arith.mulf %71, %65 : vector<222xf32>
    %73 = arith.addf %47, %72 : vector<222xf32>
    %c56 = arith.constant 56 : index
    %74 = memref.load %arg2[%c56] : memref<162xf32, #tpu.memory_space<smem>>
    %75 = vector.broadcast %74 : f32 to vector<222xf32>
    %76 = arith.mulf %75, %65 : vector<222xf32>
    %77 = arith.addf %51, %76 : vector<222xf32>
    %c83 = arith.constant 83 : index
    %78 = memref.load %arg2[%c83] : memref<162xf32, #tpu.memory_space<smem>>
    %79 = vector.broadcast %78 : f32 to vector<222xf32>
    %80 = arith.mulf %79, %65 : vector<222xf32>
    %81 = arith.addf %55, %80 : vector<222xf32>
    %c110 = arith.constant 110 : index
    %82 = memref.load %arg2[%c110] : memref<162xf32, #tpu.memory_space<smem>>
    %83 = vector.broadcast %82 : f32 to vector<222xf32>
    %84 = arith.mulf %83, %65 : vector<222xf32>
    %85 = arith.addf %59, %84 : vector<222xf32>
    %c137 = arith.constant 137 : index
    %86 = memref.load %arg2[%c137] : memref<162xf32, #tpu.memory_space<smem>>
    %87 = vector.broadcast %86 : f32 to vector<222xf32>
    %88 = arith.mulf %87, %65 : vector<222xf32>
    %89 = arith.addf %63, %88 : vector<222xf32>
    %c0_12 = arith.constant 0 : index
    %c0_13 = arith.constant 0 : index
    %c16 = arith.constant 16 : index
    %90 = vector.load %arg1[%c0_12, %c0_13, %c16] : memref<2x3x256xf32, #tpu.memory_space<vmem>>, vector<1x1x222xf32>
    %91 = vector.shape_cast %90 : vector<1x1x222xf32> to vector<222xf32>
    %c3_14 = arith.constant 3 : index
    %92 = memref.load %arg2[%c3_14] : memref<162xf32, #tpu.memory_space<smem>>
    %93 = vector.broadcast %92 : f32 to vector<222xf32>
    %94 = arith.mulf %93, %91 : vector<222xf32>
    %95 = arith.addf %69, %94 : vector<222xf32>
    %c30 = arith.constant 30 : index
    %96 = memref.load %arg2[%c30] : memref<162xf32, #tpu.memory_space<smem>>
    %97 = vector.broadcast %96 : f32 to vector<222xf32>
    %98 = arith.mulf %97, %91 : vector<222xf32>
    %99 = arith.addf %73, %98 : vector<222xf32>
    %c57 = arith.constant 57 : index
    %100 = memref.load %arg2[%c57] : memref<162xf32, #tpu.memory_space<smem>>
    %101 = vector.broadcast %100 : f32 to vector<222xf32>
    %102 = arith.mulf %101, %91 : vector<222xf32>
    %103 = arith.addf %77, %102 : vector<222xf32>
    %c84 = arith.constant 84 : index
    %104 = memref.load %arg2[%c84] : memref<162xf32, #tpu.memory_space<smem>>
    %105 = vector.broadcast %104 : f32 to vector<222xf32>
    %106 = arith.mulf %105, %91 : vector<222xf32>
    %107 = arith.addf %81, %106 : vector<222xf32>
    %c111 = arith.constant 111 : index
    %108 = memref.load %arg2[%c111] : memref<162xf32, #tpu.memory_space<smem>>
    %109 = vector.broadcast %108 : f32 to vector<222xf32>
    %110 = arith.mulf %109, %91 : vector<222xf32>
    %111 = arith.addf %85, %110 : vector<222xf32>
    %c138 = arith.constant 138 : index
    %112 = memref.load %arg2[%c138] : memref<162xf32, #tpu.memory_space<smem>>
    %113 = vector.broadcast %112 : f32 to vector<222xf32>
    %114 = arith.mulf %113, %91 : vector<222xf32>
    %115 = arith.addf %89, %114 : vector<222xf32>
    %c0_15 = arith.constant 0 : index
    %c0_16 = arith.constant 0 : index
    %c17 = arith.constant 17 : index
    %116 = vector.load %arg1[%c0_15, %c0_16, %c17] : memref<2x3x256xf32, #tpu.memory_space<vmem>>, vector<1x1x222xf32>
    %117 = vector.shape_cast %116 : vector<1x1x222xf32> to vector<222xf32>
    %c4_17 = arith.constant 4 : index
    %118 = memref.load %arg2[%c4_17] : memref<162xf32, #tpu.memory_space<smem>>
    %119 = vector.broadcast %118 : f32 to vector<222xf32>
    %120 = arith.mulf %119, %117 : vector<222xf32>
    %121 = arith.addf %95, %120 : vector<222xf32>
    %c31 = arith.constant 31 : index
    %122 = memref.load %arg2[%c31] : memref<162xf32, #tpu.memory_space<smem>>
    %123 = vector.broadcast %122 : f32 to vector<222xf32>
    %124 = arith.mulf %123, %117 : vector<222xf32>
    %125 = arith.addf %99, %124 : vector<222xf32>
    %c58 = arith.constant 58 : index
    %126 = memref.load %arg2[%c58] : memref<162xf32, #tpu.memory_space<smem>>
    %127 = vector.broadcast %126 : f32 to vector<222xf32>
    %128 = arith.mulf %127, %117 : vector<222xf32>
    %129 = arith.addf %103, %128 : vector<222xf32>
    %c85 = arith.constant 85 : index
    %130 = memref.load %arg2[%c85] : memref<162xf32, #tpu.memory_space<smem>>
    %131 = vector.broadcast %130 : f32 to vector<222xf32>
    %132 = arith.mulf %131, %117 : vector<222xf32>
    %133 = arith.addf %107, %132 : vector<222xf32>
    %c112 = arith.constant 112 : index
    %134 = memref.load %arg2[%c112] : memref<162xf32, #tpu.memory_space<smem>>
    %135 = vector.broadcast %134 : f32 to vector<222xf32>
    %136 = arith.mulf %135, %117 : vector<222xf32>
    %137 = arith.addf %111, %136 : vector<222xf32>
    %c139 = arith.constant 139 : index
    %138 = memref.load %arg2[%c139] : memref<162xf32, #tpu.memory_space<smem>>
    %139 = vector.broadcast %138 : f32 to vector<222xf32>
    %140 = arith.mulf %139, %117 : vector<222xf32>
    %141 = arith.addf %115, %140 : vector<222xf32>
    %c0_18 = arith.constant 0 : index
    %c0_19 = arith.constant 0 : index
    %c18 = arith.constant 18 : index
    %142 = vector.load %arg1[%c0_18, %c0_19, %c18] : memref<2x3x256xf32, #tpu.memory_space<vmem>>, vector<1x1x222xf32>
    %143 = vector.shape_cast %142 : vector<1x1x222xf32> to vector<222xf32>
    %c5_20 = arith.constant 5 : index
    %144 = memref.load %arg2[%c5_20] : memref<162xf32, #tpu.memory_space<smem>>
    %145 = vector.broadcast %144 : f32 to vector<222xf32>
    %146 = arith.mulf %145, %143 : vector<222xf32>
    %147 = arith.addf %121, %146 : vector<222xf32>
    %c32 = arith.constant 32 : index
    %148 = memref.load %arg2[%c32] : memref<162xf32, #tpu.memory_space<smem>>
    %149 = vector.broadcast %148 : f32 to vector<222xf32>
    %150 = arith.mulf %149, %143 : vector<222xf32>
    %151 = arith.addf %125, %150 : vector<222xf32>
    %c59 = arith.constant 59 : index
    %152 = memref.load %arg2[%c59] : memref<162xf32, #tpu.memory_space<smem>>
    %153 = vector.broadcast %152 : f32 to vector<222xf32>
    %154 = arith.mulf %153, %143 : vector<222xf32>
    %155 = arith.addf %129, %154 : vector<222xf32>
    %c86 = arith.constant 86 : index
    %156 = memref.load %arg2[%c86] : memref<162xf32, #tpu.memory_space<smem>>
    %157 = vector.broadcast %156 : f32 to vector<222xf32>
    %158 = arith.mulf %157, %143 : vector<222xf32>
    %159 = arith.addf %133, %158 : vector<222xf32>
    %c113 = arith.constant 113 : index
    %160 = memref.load %arg2[%c113] : memref<162xf32, #tpu.memory_space<smem>>
    %161 = vector.broadcast %160 : f32 to vector<222xf32>
    %162 = arith.mulf %161, %143 : vector<222xf32>
    %163 = arith.addf %137, %162 : vector<222xf32>
    %c140 = arith.constant 140 : index
    %164 = memref.load %arg2[%c140] : memref<162xf32, #tpu.memory_space<smem>>
    %165 = vector.broadcast %164 : f32 to vector<222xf32>
    %166 = arith.mulf %165, %143 : vector<222xf32>
    %167 = arith.addf %141, %166 : vector<222xf32>
    %c0_21 = arith.constant 0 : index
    %c0_22 = arith.constant 0 : index
    %c32_23 = arith.constant 32 : index
    %168 = vector.load %arg1[%c0_21, %c0_22, %c32_23] : memref<2x3x256xf32, #tpu.memory_space<vmem>>, vector<1x1x222xf32>
    %169 = vector.shape_cast %168 : vector<1x1x222xf32> to vector<222xf32>
    %c6 = arith.constant 6 : index
    %170 = memref.load %arg2[%c6] : memref<162xf32, #tpu.memory_space<smem>>
    %171 = vector.broadcast %170 : f32 to vector<222xf32>
    %172 = arith.mulf %171, %169 : vector<222xf32>
    %173 = arith.addf %147, %172 : vector<222xf32>
    %c33 = arith.constant 33 : index
    %174 = memref.load %arg2[%c33] : memref<162xf32, #tpu.memory_space<smem>>
    %175 = vector.broadcast %174 : f32 to vector<222xf32>
    %176 = arith.mulf %175, %169 : vector<222xf32>
    %177 = arith.addf %151, %176 : vector<222xf32>
    %c60 = arith.constant 60 : index
    %178 = memref.load %arg2[%c60] : memref<162xf32, #tpu.memory_space<smem>>
    %179 = vector.broadcast %178 : f32 to vector<222xf32>
    %180 = arith.mulf %179, %169 : vector<222xf32>
    %181 = arith.addf %155, %180 : vector<222xf32>
    %c87 = arith.constant 87 : index
    %182 = memref.load %arg2[%c87] : memref<162xf32, #tpu.memory_space<smem>>
    %183 = vector.broadcast %182 : f32 to vector<222xf32>
    %184 = arith.mulf %183, %169 : vector<222xf32>
    %185 = arith.addf %159, %184 : vector<222xf32>
    %c114 = arith.constant 114 : index
    %186 = memref.load %arg2[%c114] : memref<162xf32, #tpu.memory_space<smem>>
    %187 = vector.broadcast %186 : f32 to vector<222xf32>
    %188 = arith.mulf %187, %169 : vector<222xf32>
    %189 = arith.addf %163, %188 : vector<222xf32>
    %c141 = arith.constant 141 : index
    %190 = memref.load %arg2[%c141] : memref<162xf32, #tpu.memory_space<smem>>
    %191 = vector.broadcast %190 : f32 to vector<222xf32>
    %192 = arith.mulf %191, %169 : vector<222xf32>
    %193 = arith.addf %167, %192 : vector<222xf32>
    %c0_24 = arith.constant 0 : index
    %c0_25 = arith.constant 0 : index
    %c33_26 = arith.constant 33 : index
    %194 = vector.load %arg1[%c0_24, %c0_25, %c33_26] : memref<2x3x256xf32, #tpu.memory_space<vmem>>, vector<1x1x222xf32>
    %195 = vector.shape_cast %194 : vector<1x1x222xf32> to vector<222xf32>
    %c7 = arith.constant 7 : index
    %196 = memref.load %arg2[%c7] : memref<162xf32, #tpu.memory_space<smem>>
    %197 = vector.broadcast %196 : f32 to vector<222xf32>
    %198 = arith.mulf %197, %195 : vector<222xf32>
    %199 = arith.addf %173, %198 : vector<222xf32>
    %c34 = arith.constant 34 : index
    %200 = memref.load %arg2[%c34] : memref<162xf32, #tpu.memory_space<smem>>
    %201 = vector.broadcast %200 : f32 to vector<222xf32>
    %202 = arith.mulf %201, %195 : vector<222xf32>
    %203 = arith.addf %177, %202 : vector<222xf32>
    %c61 = arith.constant 61 : index
    %204 = memref.load %arg2[%c61] : memref<162xf32, #tpu.memory_space<smem>>
    %205 = vector.broadcast %204 : f32 to vector<222xf32>
    %206 = arith.mulf %205, %195 : vector<222xf32>
    %207 = arith.addf %181, %206 : vector<222xf32>
    %c88 = arith.constant 88 : index
    %208 = memref.load %arg2[%c88] : memref<162xf32, #tpu.memory_space<smem>>
    %209 = vector.broadcast %208 : f32 to vector<222xf32>
    %210 = arith.mulf %209, %195 : vector<222xf32>
    %211 = arith.addf %185, %210 : vector<222xf32>
    %c115 = arith.constant 115 : index
    %212 = memref.load %arg2[%c115] : memref<162xf32, #tpu.memory_space<smem>>
    %213 = vector.broadcast %212 : f32 to vector<222xf32>
    %214 = arith.mulf %213, %195 : vector<222xf32>
    %215 = arith.addf %189, %214 : vector<222xf32>
    %c142 = arith.constant 142 : index
    %216 = memref.load %arg2[%c142] : memref<162xf32, #tpu.memory_space<smem>>
    %217 = vector.broadcast %216 : f32 to vector<222xf32>
    %218 = arith.mulf %217, %195 : vector<222xf32>
    %219 = arith.addf %193, %218 : vector<222xf32>
    %c0_27 = arith.constant 0 : index
    %c0_28 = arith.constant 0 : index
    %c34_29 = arith.constant 34 : index
    %220 = vector.load %arg1[%c0_27, %c0_28, %c34_29] : memref<2x3x256xf32, #tpu.memory_space<vmem>>, vector<1x1x222xf32>
    %221 = vector.shape_cast %220 : vector<1x1x222xf32> to vector<222xf32>
    %c8 = arith.constant 8 : index
    %222 = memref.load %arg2[%c8] : memref<162xf32, #tpu.memory_space<smem>>
    %223 = vector.broadcast %222 : f32 to vector<222xf32>
    %224 = arith.mulf %223, %221 : vector<222xf32>
    %225 = arith.addf %199, %224 : vector<222xf32>
    %c35 = arith.constant 35 : index
    %226 = memref.load %arg2[%c35] : memref<162xf32, #tpu.memory_space<smem>>
    %227 = vector.broadcast %226 : f32 to vector<222xf32>
    %228 = arith.mulf %227, %221 : vector<222xf32>
    %229 = arith.addf %203, %228 : vector<222xf32>
    %c62 = arith.constant 62 : index
    %230 = memref.load %arg2[%c62] : memref<162xf32, #tpu.memory_space<smem>>
    %231 = vector.broadcast %230 : f32 to vector<222xf32>
    %232 = arith.mulf %231, %221 : vector<222xf32>
    %233 = arith.addf %207, %232 : vector<222xf32>
    %c89 = arith.constant 89 : index
    %234 = memref.load %arg2[%c89] : memref<162xf32, #tpu.memory_space<smem>>
    %235 = vector.broadcast %234 : f32 to vector<222xf32>
    %236 = arith.mulf %235, %221 : vector<222xf32>
    %237 = arith.addf %211, %236 : vector<222xf32>
    %c116 = arith.constant 116 : index
    %238 = memref.load %arg2[%c116] : memref<162xf32, #tpu.memory_space<smem>>
    %239 = vector.broadcast %238 : f32 to vector<222xf32>
    %240 = arith.mulf %239, %221 : vector<222xf32>
    %241 = arith.addf %215, %240 : vector<222xf32>
    %c143 = arith.constant 143 : index
    %242 = memref.load %arg2[%c143] : memref<162xf32, #tpu.memory_space<smem>>
    %243 = vector.broadcast %242 : f32 to vector<222xf32>
    %244 = arith.mulf %243, %221 : vector<222xf32>
    %245 = arith.addf %219, %244 : vector<222xf32>
    %c0_30 = arith.constant 0 : index
    %c1_31 = arith.constant 1 : index
    %c0_32 = arith.constant 0 : index
    %246 = vector.load %arg1[%c0_30, %c1_31, %c0_32] : memref<2x3x256xf32, #tpu.memory_space<vmem>>, vector<1x1x222xf32>
    %247 = vector.shape_cast %246 : vector<1x1x222xf32> to vector<222xf32>
    %c9 = arith.constant 9 : index
    %248 = memref.load %arg2[%c9] : memref<162xf32, #tpu.memory_space<smem>>
    %249 = vector.broadcast %248 : f32 to vector<222xf32>
    %250 = arith.mulf %249, %247 : vector<222xf32>
    %251 = arith.addf %225, %250 : vector<222xf32>
    %c36 = arith.constant 36 : index
    %252 = memref.load %arg2[%c36] : memref<162xf32, #tpu.memory_space<smem>>
    %253 = vector.broadcast %252 : f32 to vector<222xf32>
    %254 = arith.mulf %253, %247 : vector<222xf32>
    %255 = arith.addf %229, %254 : vector<222xf32>
    %c63 = arith.constant 63 : index
    %256 = memref.load %arg2[%c63] : memref<162xf32, #tpu.memory_space<smem>>
    %257 = vector.broadcast %256 : f32 to vector<222xf32>
    %258 = arith.mulf %257, %247 : vector<222xf32>
    %259 = arith.addf %233, %258 : vector<222xf32>
    %c90 = arith.constant 90 : index
    %260 = memref.load %arg2[%c90] : memref<162xf32, #tpu.memory_space<smem>>
    %261 = vector.broadcast %260 : f32 to vector<222xf32>
    %262 = arith.mulf %261, %247 : vector<222xf32>
    %263 = arith.addf %237, %262 : vector<222xf32>
    %c117 = arith.constant 117 : index
    %264 = memref.load %arg2[%c117] : memref<162xf32, #tpu.memory_space<smem>>
    %265 = vector.broadcast %264 : f32 to vector<222xf32>
    %266 = arith.mulf %265, %247 : vector<222xf32>
    %267 = arith.addf %241, %266 : vector<222xf32>
    %c144 = arith.constant 144 : index
    %268 = memref.load %arg2[%c144] : memref<162xf32, #tpu.memory_space<smem>>
    %269 = vector.broadcast %268 : f32 to vector<222xf32>
    %270 = arith.mulf %269, %247 : vector<222xf32>
    %271 = arith.addf %245, %270 : vector<222xf32>
    %c0_33 = arith.constant 0 : index
    %c1_34 = arith.constant 1 : index
    %c1_35 = arith.constant 1 : index
    %272 = vector.load %arg1[%c0_33, %c1_34, %c1_35] : memref<2x3x256xf32, #tpu.memory_space<vmem>>, vector<1x1x222xf32>
    %273 = vector.shape_cast %272 : vector<1x1x222xf32> to vector<222xf32>
    %c10 = arith.constant 10 : index
    %274 = memref.load %arg2[%c10] : memref<162xf32, #tpu.memory_space<smem>>
    %275 = vector.broadcast %274 : f32 to vector<222xf32>
    %276 = arith.mulf %275, %273 : vector<222xf32>
    %277 = arith.addf %251, %276 : vector<222xf32>
    %c37 = arith.constant 37 : index
    %278 = memref.load %arg2[%c37] : memref<162xf32, #tpu.memory_space<smem>>
    %279 = vector.broadcast %278 : f32 to vector<222xf32>
    %280 = arith.mulf %279, %273 : vector<222xf32>
    %281 = arith.addf %255, %280 : vector<222xf32>
    %c64 = arith.constant 64 : index
    %282 = memref.load %arg2[%c64] : memref<162xf32, #tpu.memory_space<smem>>
    %283 = vector.broadcast %282 : f32 to vector<222xf32>
    %284 = arith.mulf %283, %273 : vector<222xf32>
    %285 = arith.addf %259, %284 : vector<222xf32>
    %c91 = arith.constant 91 : index
    %286 = memref.load %arg2[%c91] : memref<162xf32, #tpu.memory_space<smem>>
    %287 = vector.broadcast %286 : f32 to vector<222xf32>
    %288 = arith.mulf %287, %273 : vector<222xf32>
    %289 = arith.addf %263, %288 : vector<222xf32>
    %c118 = arith.constant 118 : index
    %290 = memref.load %arg2[%c118] : memref<162xf32, #tpu.memory_space<smem>>
    %291 = vector.broadcast %290 : f32 to vector<222xf32>
    %292 = arith.mulf %291, %273 : vector<222xf32>
    %293 = arith.addf %267, %292 : vector<222xf32>
    %c145 = arith.constant 145 : index
    %294 = memref.load %arg2[%c145] : memref<162xf32, #tpu.memory_space<smem>>
    %295 = vector.broadcast %294 : f32 to vector<222xf32>
    %296 = arith.mulf %295, %273 : vector<222xf32>
    %297 = arith.addf %271, %296 : vector<222xf32>
    %c0_36 = arith.constant 0 : index
    %c1_37 = arith.constant 1 : index
    %c2_38 = arith.constant 2 : index
    %298 = vector.load %arg1[%c0_36, %c1_37, %c2_38] : memref<2x3x256xf32, #tpu.memory_space<vmem>>, vector<1x1x222xf32>
    %299 = vector.shape_cast %298 : vector<1x1x222xf32> to vector<222xf32>
    %c11 = arith.constant 11 : index
    %300 = memref.load %arg2[%c11] : memref<162xf32, #tpu.memory_space<smem>>
    %301 = vector.broadcast %300 : f32 to vector<222xf32>
    %302 = arith.mulf %301, %299 : vector<222xf32>
    %303 = arith.addf %277, %302 : vector<222xf32>
    %c38 = arith.constant 38 : index
    %304 = memref.load %arg2[%c38] : memref<162xf32, #tpu.memory_space<smem>>
    %305 = vector.broadcast %304 : f32 to vector<222xf32>
    %306 = arith.mulf %305, %299 : vector<222xf32>
    %307 = arith.addf %281, %306 : vector<222xf32>
    %c65 = arith.constant 65 : index
    %308 = memref.load %arg2[%c65] : memref<162xf32, #tpu.memory_space<smem>>
    %309 = vector.broadcast %308 : f32 to vector<222xf32>
    %310 = arith.mulf %309, %299 : vector<222xf32>
    %311 = arith.addf %285, %310 : vector<222xf32>
    %c92 = arith.constant 92 : index
    %312 = memref.load %arg2[%c92] : memref<162xf32, #tpu.memory_space<smem>>
    %313 = vector.broadcast %312 : f32 to vector<222xf32>
    %314 = arith.mulf %313, %299 : vector<222xf32>
    %315 = arith.addf %289, %314 : vector<222xf32>
    %c119 = arith.constant 119 : index
    %316 = memref.load %arg2[%c119] : memref<162xf32, #tpu.memory_space<smem>>
    %317 = vector.broadcast %316 : f32 to vector<222xf32>
    %318 = arith.mulf %317, %299 : vector<222xf32>
    %319 = arith.addf %293, %318 : vector<222xf32>
    %c146 = arith.constant 146 : index
    %320 = memref.load %arg2[%c146] : memref<162xf32, #tpu.memory_space<smem>>
    %321 = vector.broadcast %320 : f32 to vector<222xf32>
    %322 = arith.mulf %321, %299 : vector<222xf32>
    %323 = arith.addf %297, %322 : vector<222xf32>
    %c0_39 = arith.constant 0 : index
    %c1_40 = arith.constant 1 : index
    %c16_41 = arith.constant 16 : index
    %324 = vector.load %arg1[%c0_39, %c1_40, %c16_41] : memref<2x3x256xf32, #tpu.memory_space<vmem>>, vector<1x1x222xf32>
    %325 = vector.shape_cast %324 : vector<1x1x222xf32> to vector<222xf32>
    %c12 = arith.constant 12 : index
    %326 = memref.load %arg2[%c12] : memref<162xf32, #tpu.memory_space<smem>>
    %327 = vector.broadcast %326 : f32 to vector<222xf32>
    %328 = arith.mulf %327, %325 : vector<222xf32>
    %329 = arith.addf %303, %328 : vector<222xf32>
    %c39 = arith.constant 39 : index
    %330 = memref.load %arg2[%c39] : memref<162xf32, #tpu.memory_space<smem>>
    %331 = vector.broadcast %330 : f32 to vector<222xf32>
    %332 = arith.mulf %331, %325 : vector<222xf32>
    %333 = arith.addf %307, %332 : vector<222xf32>
    %c66 = arith.constant 66 : index
    %334 = memref.load %arg2[%c66] : memref<162xf32, #tpu.memory_space<smem>>
    %335 = vector.broadcast %334 : f32 to vector<222xf32>
    %336 = arith.mulf %335, %325 : vector<222xf32>
    %337 = arith.addf %311, %336 : vector<222xf32>
    %c93 = arith.constant 93 : index
    %338 = memref.load %arg2[%c93] : memref<162xf32, #tpu.memory_space<smem>>
    %339 = vector.broadcast %338 : f32 to vector<222xf32>
    %340 = arith.mulf %339, %325 : vector<222xf32>
    %341 = arith.addf %315, %340 : vector<222xf32>
    %c120 = arith.constant 120 : index
    %342 = memref.load %arg2[%c120] : memref<162xf32, #tpu.memory_space<smem>>
    %343 = vector.broadcast %342 : f32 to vector<222xf32>
    %344 = arith.mulf %343, %325 : vector<222xf32>
    %345 = arith.addf %319, %344 : vector<222xf32>
    %c147 = arith.constant 147 : index
    %346 = memref.load %arg2[%c147] : memref<162xf32, #tpu.memory_space<smem>>
    %347 = vector.broadcast %346 : f32 to vector<222xf32>
    %348 = arith.mulf %347, %325 : vector<222xf32>
    %349 = arith.addf %323, %348 : vector<222xf32>
    %c0_42 = arith.constant 0 : index
    %c1_43 = arith.constant 1 : index
    %c17_44 = arith.constant 17 : index
    %350 = vector.load %arg1[%c0_42, %c1_43, %c17_44] : memref<2x3x256xf32, #tpu.memory_space<vmem>>, vector<1x1x222xf32>
    %351 = vector.shape_cast %350 : vector<1x1x222xf32> to vector<222xf32>
    %c13 = arith.constant 13 : index
    %352 = memref.load %arg2[%c13] : memref<162xf32, #tpu.memory_space<smem>>
    %353 = vector.broadcast %352 : f32 to vector<222xf32>
    %354 = arith.mulf %353, %351 : vector<222xf32>
    %355 = arith.addf %329, %354 : vector<222xf32>
    %c40 = arith.constant 40 : index
    %356 = memref.load %arg2[%c40] : memref<162xf32, #tpu.memory_space<smem>>
    %357 = vector.broadcast %356 : f32 to vector<222xf32>
    %358 = arith.mulf %357, %351 : vector<222xf32>
    %359 = arith.addf %333, %358 : vector<222xf32>
    %c67 = arith.constant 67 : index
    %360 = memref.load %arg2[%c67] : memref<162xf32, #tpu.memory_space<smem>>
    %361 = vector.broadcast %360 : f32 to vector<222xf32>
    %362 = arith.mulf %361, %351 : vector<222xf32>
    %363 = arith.addf %337, %362 : vector<222xf32>
    %c94 = arith.constant 94 : index
    %364 = memref.load %arg2[%c94] : memref<162xf32, #tpu.memory_space<smem>>
    %365 = vector.broadcast %364 : f32 to vector<222xf32>
    %366 = arith.mulf %365, %351 : vector<222xf32>
    %367 = arith.addf %341, %366 : vector<222xf32>
    %c121 = arith.constant 121 : index
    %368 = memref.load %arg2[%c121] : memref<162xf32, #tpu.memory_space<smem>>
    %369 = vector.broadcast %368 : f32 to vector<222xf32>
    %370 = arith.mulf %369, %351 : vector<222xf32>
    %371 = arith.addf %345, %370 : vector<222xf32>
    %c148 = arith.constant 148 : index
    %372 = memref.load %arg2[%c148] : memref<162xf32, #tpu.memory_space<smem>>
    %373 = vector.broadcast %372 : f32 to vector<222xf32>
    %374 = arith.mulf %373, %351 : vector<222xf32>
    %375 = arith.addf %349, %374 : vector<222xf32>
    %c0_45 = arith.constant 0 : index
    %c1_46 = arith.constant 1 : index
    %c18_47 = arith.constant 18 : index
    %376 = vector.load %arg1[%c0_45, %c1_46, %c18_47] : memref<2x3x256xf32, #tpu.memory_space<vmem>>, vector<1x1x222xf32>
    %377 = vector.shape_cast %376 : vector<1x1x222xf32> to vector<222xf32>
    %c14 = arith.constant 14 : index
    %378 = memref.load %arg2[%c14] : memref<162xf32, #tpu.memory_space<smem>>
    %379 = vector.broadcast %378 : f32 to vector<222xf32>
    %380 = arith.mulf %379, %377 : vector<222xf32>
    %381 = arith.addf %355, %380 : vector<222xf32>
    %c41 = arith.constant 41 : index
    %382 = memref.load %arg2[%c41] : memref<162xf32, #tpu.memory_space<smem>>
    %383 = vector.broadcast %382 : f32 to vector<222xf32>
    %384 = arith.mulf %383, %377 : vector<222xf32>
    %385 = arith.addf %359, %384 : vector<222xf32>
    %c68 = arith.constant 68 : index
    %386 = memref.load %arg2[%c68] : memref<162xf32, #tpu.memory_space<smem>>
    %387 = vector.broadcast %386 : f32 to vector<222xf32>
    %388 = arith.mulf %387, %377 : vector<222xf32>
    %389 = arith.addf %363, %388 : vector<222xf32>
    %c95 = arith.constant 95 : index
    %390 = memref.load %arg2[%c95] : memref<162xf32, #tpu.memory_space<smem>>
    %391 = vector.broadcast %390 : f32 to vector<222xf32>
    %392 = arith.mulf %391, %377 : vector<222xf32>
    %393 = arith.addf %367, %392 : vector<222xf32>
    %c122 = arith.constant 122 : index
    %394 = memref.load %arg2[%c122] : memref<162xf32, #tpu.memory_space<smem>>
    %395 = vector.broadcast %394 : f32 to vector<222xf32>
    %396 = arith.mulf %395, %377 : vector<222xf32>
    %397 = arith.addf %371, %396 : vector<222xf32>
    %c149 = arith.constant 149 : index
    %398 = memref.load %arg2[%c149] : memref<162xf32, #tpu.memory_space<smem>>
    %399 = vector.broadcast %398 : f32 to vector<222xf32>
    %400 = arith.mulf %399, %377 : vector<222xf32>
    %401 = arith.addf %375, %400 : vector<222xf32>
    %c0_48 = arith.constant 0 : index
    %c1_49 = arith.constant 1 : index
    %c32_50 = arith.constant 32 : index
    %402 = vector.load %arg1[%c0_48, %c1_49, %c32_50] : memref<2x3x256xf32, #tpu.memory_space<vmem>>, vector<1x1x222xf32>
    %403 = vector.shape_cast %402 : vector<1x1x222xf32> to vector<222xf32>
    %c15 = arith.constant 15 : index
    %404 = memref.load %arg2[%c15] : memref<162xf32, #tpu.memory_space<smem>>
    %405 = vector.broadcast %404 : f32 to vector<222xf32>
    %406 = arith.mulf %405, %403 : vector<222xf32>
    %407 = arith.addf %381, %406 : vector<222xf32>
    %c42 = arith.constant 42 : index
    %408 = memref.load %arg2[%c42] : memref<162xf32, #tpu.memory_space<smem>>
    %409 = vector.broadcast %408 : f32 to vector<222xf32>
    %410 = arith.mulf %409, %403 : vector<222xf32>
    %411 = arith.addf %385, %410 : vector<222xf32>
    %c69 = arith.constant 69 : index
    %412 = memref.load %arg2[%c69] : memref<162xf32, #tpu.memory_space<smem>>
    %413 = vector.broadcast %412 : f32 to vector<222xf32>
    %414 = arith.mulf %413, %403 : vector<222xf32>
    %415 = arith.addf %389, %414 : vector<222xf32>
    %c96 = arith.constant 96 : index
    %416 = memref.load %arg2[%c96] : memref<162xf32, #tpu.memory_space<smem>>
    %417 = vector.broadcast %416 : f32 to vector<222xf32>
    %418 = arith.mulf %417, %403 : vector<222xf32>
    %419 = arith.addf %393, %418 : vector<222xf32>
    %c123 = arith.constant 123 : index
    %420 = memref.load %arg2[%c123] : memref<162xf32, #tpu.memory_space<smem>>
    %421 = vector.broadcast %420 : f32 to vector<222xf32>
    %422 = arith.mulf %421, %403 : vector<222xf32>
    %423 = arith.addf %397, %422 : vector<222xf32>
    %c150 = arith.constant 150 : index
    %424 = memref.load %arg2[%c150] : memref<162xf32, #tpu.memory_space<smem>>
    %425 = vector.broadcast %424 : f32 to vector<222xf32>
    %426 = arith.mulf %425, %403 : vector<222xf32>
    %427 = arith.addf %401, %426 : vector<222xf32>
    %c0_51 = arith.constant 0 : index
    %c1_52 = arith.constant 1 : index
    %c33_53 = arith.constant 33 : index
    %428 = vector.load %arg1[%c0_51, %c1_52, %c33_53] : memref<2x3x256xf32, #tpu.memory_space<vmem>>, vector<1x1x222xf32>
    %429 = vector.shape_cast %428 : vector<1x1x222xf32> to vector<222xf32>
    %c16_54 = arith.constant 16 : index
    %430 = memref.load %arg2[%c16_54] : memref<162xf32, #tpu.memory_space<smem>>
    %431 = vector.broadcast %430 : f32 to vector<222xf32>
    %432 = arith.mulf %431, %429 : vector<222xf32>
    %433 = arith.addf %407, %432 : vector<222xf32>
    %c43 = arith.constant 43 : index
    %434 = memref.load %arg2[%c43] : memref<162xf32, #tpu.memory_space<smem>>
    %435 = vector.broadcast %434 : f32 to vector<222xf32>
    %436 = arith.mulf %435, %429 : vector<222xf32>
    %437 = arith.addf %411, %436 : vector<222xf32>
    %c70 = arith.constant 70 : index
    %438 = memref.load %arg2[%c70] : memref<162xf32, #tpu.memory_space<smem>>
    %439 = vector.broadcast %438 : f32 to vector<222xf32>
    %440 = arith.mulf %439, %429 : vector<222xf32>
    %441 = arith.addf %415, %440 : vector<222xf32>
    %c97 = arith.constant 97 : index
    %442 = memref.load %arg2[%c97] : memref<162xf32, #tpu.memory_space<smem>>
    %443 = vector.broadcast %442 : f32 to vector<222xf32>
    %444 = arith.mulf %443, %429 : vector<222xf32>
    %445 = arith.addf %419, %444 : vector<222xf32>
    %c124 = arith.constant 124 : index
    %446 = memref.load %arg2[%c124] : memref<162xf32, #tpu.memory_space<smem>>
    %447 = vector.broadcast %446 : f32 to vector<222xf32>
    %448 = arith.mulf %447, %429 : vector<222xf32>
    %449 = arith.addf %423, %448 : vector<222xf32>
    %c151 = arith.constant 151 : index
    %450 = memref.load %arg2[%c151] : memref<162xf32, #tpu.memory_space<smem>>
    %451 = vector.broadcast %450 : f32 to vector<222xf32>
    %452 = arith.mulf %451, %429 : vector<222xf32>
    %453 = arith.addf %427, %452 : vector<222xf32>
    %c0_55 = arith.constant 0 : index
    %c1_56 = arith.constant 1 : index
    %c34_57 = arith.constant 34 : index
    %454 = vector.load %arg1[%c0_55, %c1_56, %c34_57] : memref<2x3x256xf32, #tpu.memory_space<vmem>>, vector<1x1x222xf32>
    %455 = vector.shape_cast %454 : vector<1x1x222xf32> to vector<222xf32>
    %c17_58 = arith.constant 17 : index
    %456 = memref.load %arg2[%c17_58] : memref<162xf32, #tpu.memory_space<smem>>
    %457 = vector.broadcast %456 : f32 to vector<222xf32>
    %458 = arith.mulf %457, %455 : vector<222xf32>
    %459 = arith.addf %433, %458 : vector<222xf32>
    %c44 = arith.constant 44 : index
    %460 = memref.load %arg2[%c44] : memref<162xf32, #tpu.memory_space<smem>>
    %461 = vector.broadcast %460 : f32 to vector<222xf32>
    %462 = arith.mulf %461, %455 : vector<222xf32>
    %463 = arith.addf %437, %462 : vector<222xf32>
    %c71 = arith.constant 71 : index
    %464 = memref.load %arg2[%c71] : memref<162xf32, #tpu.memory_space<smem>>
    %465 = vector.broadcast %464 : f32 to vector<222xf32>
    %466 = arith.mulf %465, %455 : vector<222xf32>
    %467 = arith.addf %441, %466 : vector<222xf32>
    %c98 = arith.constant 98 : index
    %468 = memref.load %arg2[%c98] : memref<162xf32, #tpu.memory_space<smem>>
    %469 = vector.broadcast %468 : f32 to vector<222xf32>
    %470 = arith.mulf %469, %455 : vector<222xf32>
    %471 = arith.addf %445, %470 : vector<222xf32>
    %c125 = arith.constant 125 : index
    %472 = memref.load %arg2[%c125] : memref<162xf32, #tpu.memory_space<smem>>
    %473 = vector.broadcast %472 : f32 to vector<222xf32>
    %474 = arith.mulf %473, %455 : vector<222xf32>
    %475 = arith.addf %449, %474 : vector<222xf32>
    %c152 = arith.constant 152 : index
    %476 = memref.load %arg2[%c152] : memref<162xf32, #tpu.memory_space<smem>>
    %477 = vector.broadcast %476 : f32 to vector<222xf32>
    %478 = arith.mulf %477, %455 : vector<222xf32>
    %479 = arith.addf %453, %478 : vector<222xf32>
    %c0_59 = arith.constant 0 : index
    %c2_60 = arith.constant 2 : index
    %c0_61 = arith.constant 0 : index
    %480 = vector.load %arg1[%c0_59, %c2_60, %c0_61] : memref<2x3x256xf32, #tpu.memory_space<vmem>>, vector<1x1x222xf32>
    %481 = vector.shape_cast %480 : vector<1x1x222xf32> to vector<222xf32>
    %c18_62 = arith.constant 18 : index
    %482 = memref.load %arg2[%c18_62] : memref<162xf32, #tpu.memory_space<smem>>
    %483 = vector.broadcast %482 : f32 to vector<222xf32>
    %484 = arith.mulf %483, %481 : vector<222xf32>
    %485 = arith.addf %459, %484 : vector<222xf32>
    %c45 = arith.constant 45 : index
    %486 = memref.load %arg2[%c45] : memref<162xf32, #tpu.memory_space<smem>>
    %487 = vector.broadcast %486 : f32 to vector<222xf32>
    %488 = arith.mulf %487, %481 : vector<222xf32>
    %489 = arith.addf %463, %488 : vector<222xf32>
    %c72 = arith.constant 72 : index
    %490 = memref.load %arg2[%c72] : memref<162xf32, #tpu.memory_space<smem>>
    %491 = vector.broadcast %490 : f32 to vector<222xf32>
    %492 = arith.mulf %491, %481 : vector<222xf32>
    %493 = arith.addf %467, %492 : vector<222xf32>
    %c99 = arith.constant 99 : index
    %494 = memref.load %arg2[%c99] : memref<162xf32, #tpu.memory_space<smem>>
    %495 = vector.broadcast %494 : f32 to vector<222xf32>
    %496 = arith.mulf %495, %481 : vector<222xf32>
    %497 = arith.addf %471, %496 : vector<222xf32>
    %c126 = arith.constant 126 : index
    %498 = memref.load %arg2[%c126] : memref<162xf32, #tpu.memory_space<smem>>
    %499 = vector.broadcast %498 : f32 to vector<222xf32>
    %500 = arith.mulf %499, %481 : vector<222xf32>
    %501 = arith.addf %475, %500 : vector<222xf32>
    %c153 = arith.constant 153 : index
    %502 = memref.load %arg2[%c153] : memref<162xf32, #tpu.memory_space<smem>>
    %503 = vector.broadcast %502 : f32 to vector<222xf32>
    %504 = arith.mulf %503, %481 : vector<222xf32>
    %505 = arith.addf %479, %504 : vector<222xf32>
    %c0_63 = arith.constant 0 : index
    %c2_64 = arith.constant 2 : index
    %c1_65 = arith.constant 1 : index
    %506 = vector.load %arg1[%c0_63, %c2_64, %c1_65] : memref<2x3x256xf32, #tpu.memory_space<vmem>>, vector<1x1x222xf32>
    %507 = vector.shape_cast %506 : vector<1x1x222xf32> to vector<222xf32>
    %c19 = arith.constant 19 : index
    %508 = memref.load %arg2[%c19] : memref<162xf32, #tpu.memory_space<smem>>
    %509 = vector.broadcast %508 : f32 to vector<222xf32>
    %510 = arith.mulf %509, %507 : vector<222xf32>
    %511 = arith.addf %485, %510 : vector<222xf32>
    %c46 = arith.constant 46 : index
    %512 = memref.load %arg2[%c46] : memref<162xf32, #tpu.memory_space<smem>>
    %513 = vector.broadcast %512 : f32 to vector<222xf32>
    %514 = arith.mulf %513, %507 : vector<222xf32>
    %515 = arith.addf %489, %514 : vector<222xf32>
    %c73 = arith.constant 73 : index
    %516 = memref.load %arg2[%c73] : memref<162xf32, #tpu.memory_space<smem>>
    %517 = vector.broadcast %516 : f32 to vector<222xf32>
    %518 = arith.mulf %517, %507 : vector<222xf32>
    %519 = arith.addf %493, %518 : vector<222xf32>
    %c100 = arith.constant 100 : index
    %520 = memref.load %arg2[%c100] : memref<162xf32, #tpu.memory_space<smem>>
    %521 = vector.broadcast %520 : f32 to vector<222xf32>
    %522 = arith.mulf %521, %507 : vector<222xf32>
    %523 = arith.addf %497, %522 : vector<222xf32>
    %c127 = arith.constant 127 : index
    %524 = memref.load %arg2[%c127] : memref<162xf32, #tpu.memory_space<smem>>
    %525 = vector.broadcast %524 : f32 to vector<222xf32>
    %526 = arith.mulf %525, %507 : vector<222xf32>
    %527 = arith.addf %501, %526 : vector<222xf32>
    %c154 = arith.constant 154 : index
    %528 = memref.load %arg2[%c154] : memref<162xf32, #tpu.memory_space<smem>>
    %529 = vector.broadcast %528 : f32 to vector<222xf32>
    %530 = arith.mulf %529, %507 : vector<222xf32>
    %531 = arith.addf %505, %530 : vector<222xf32>
    %c0_66 = arith.constant 0 : index
    %c2_67 = arith.constant 2 : index
    %c2_68 = arith.constant 2 : index
    %532 = vector.load %arg1[%c0_66, %c2_67, %c2_68] : memref<2x3x256xf32, #tpu.memory_space<vmem>>, vector<1x1x222xf32>
    %533 = vector.shape_cast %532 : vector<1x1x222xf32> to vector<222xf32>
    %c20 = arith.constant 20 : index
    %534 = memref.load %arg2[%c20] : memref<162xf32, #tpu.memory_space<smem>>
    %535 = vector.broadcast %534 : f32 to vector<222xf32>
    %536 = arith.mulf %535, %533 : vector<222xf32>
    %537 = arith.addf %511, %536 : vector<222xf32>
    %c47 = arith.constant 47 : index
    %538 = memref.load %arg2[%c47] : memref<162xf32, #tpu.memory_space<smem>>
    %539 = vector.broadcast %538 : f32 to vector<222xf32>
    %540 = arith.mulf %539, %533 : vector<222xf32>
    %541 = arith.addf %515, %540 : vector<222xf32>
    %c74 = arith.constant 74 : index
    %542 = memref.load %arg2[%c74] : memref<162xf32, #tpu.memory_space<smem>>
    %543 = vector.broadcast %542 : f32 to vector<222xf32>
    %544 = arith.mulf %543, %533 : vector<222xf32>
    %545 = arith.addf %519, %544 : vector<222xf32>
    %c101 = arith.constant 101 : index
    %546 = memref.load %arg2[%c101] : memref<162xf32, #tpu.memory_space<smem>>
    %547 = vector.broadcast %546 : f32 to vector<222xf32>
    %548 = arith.mulf %547, %533 : vector<222xf32>
    %549 = arith.addf %523, %548 : vector<222xf32>
    %c128 = arith.constant 128 : index
    %550 = memref.load %arg2[%c128] : memref<162xf32, #tpu.memory_space<smem>>
    %551 = vector.broadcast %550 : f32 to vector<222xf32>
    %552 = arith.mulf %551, %533 : vector<222xf32>
    %553 = arith.addf %527, %552 : vector<222xf32>
    %c155 = arith.constant 155 : index
    %554 = memref.load %arg2[%c155] : memref<162xf32, #tpu.memory_space<smem>>
    %555 = vector.broadcast %554 : f32 to vector<222xf32>
    %556 = arith.mulf %555, %533 : vector<222xf32>
    %557 = arith.addf %531, %556 : vector<222xf32>
    %c0_69 = arith.constant 0 : index
    %c2_70 = arith.constant 2 : index
    %c16_71 = arith.constant 16 : index
    %558 = vector.load %arg1[%c0_69, %c2_70, %c16_71] : memref<2x3x256xf32, #tpu.memory_space<vmem>>, vector<1x1x222xf32>
    %559 = vector.shape_cast %558 : vector<1x1x222xf32> to vector<222xf32>
    %c21 = arith.constant 21 : index
    %560 = memref.load %arg2[%c21] : memref<162xf32, #tpu.memory_space<smem>>
    %561 = vector.broadcast %560 : f32 to vector<222xf32>
    %562 = arith.mulf %561, %559 : vector<222xf32>
    %563 = arith.addf %537, %562 : vector<222xf32>
    %c48 = arith.constant 48 : index
    %564 = memref.load %arg2[%c48] : memref<162xf32, #tpu.memory_space<smem>>
    %565 = vector.broadcast %564 : f32 to vector<222xf32>
    %566 = arith.mulf %565, %559 : vector<222xf32>
    %567 = arith.addf %541, %566 : vector<222xf32>
    %c75 = arith.constant 75 : index
    %568 = memref.load %arg2[%c75] : memref<162xf32, #tpu.memory_space<smem>>
    %569 = vector.broadcast %568 : f32 to vector<222xf32>
    %570 = arith.mulf %569, %559 : vector<222xf32>
    %571 = arith.addf %545, %570 : vector<222xf32>
    %c102 = arith.constant 102 : index
    %572 = memref.load %arg2[%c102] : memref<162xf32, #tpu.memory_space<smem>>
    %573 = vector.broadcast %572 : f32 to vector<222xf32>
    %574 = arith.mulf %573, %559 : vector<222xf32>
    %575 = arith.addf %549, %574 : vector<222xf32>
    %c129 = arith.constant 129 : index
    %576 = memref.load %arg2[%c129] : memref<162xf32, #tpu.memory_space<smem>>
    %577 = vector.broadcast %576 : f32 to vector<222xf32>
    %578 = arith.mulf %577, %559 : vector<222xf32>
    %579 = arith.addf %553, %578 : vector<222xf32>
    %c156 = arith.constant 156 : index
    %580 = memref.load %arg2[%c156] : memref<162xf32, #tpu.memory_space<smem>>
    %581 = vector.broadcast %580 : f32 to vector<222xf32>
    %582 = arith.mulf %581, %559 : vector<222xf32>
    %583 = arith.addf %557, %582 : vector<222xf32>
    %c0_72 = arith.constant 0 : index
    %c2_73 = arith.constant 2 : index
    %c17_74 = arith.constant 17 : index
    %584 = vector.load %arg1[%c0_72, %c2_73, %c17_74] : memref<2x3x256xf32, #tpu.memory_space<vmem>>, vector<1x1x222xf32>
    %585 = vector.shape_cast %584 : vector<1x1x222xf32> to vector<222xf32>
    %c22 = arith.constant 22 : index
    %586 = memref.load %arg2[%c22] : memref<162xf32, #tpu.memory_space<smem>>
    %587 = vector.broadcast %586 : f32 to vector<222xf32>
    %588 = arith.mulf %587, %585 : vector<222xf32>
    %589 = arith.addf %563, %588 : vector<222xf32>
    %c49 = arith.constant 49 : index
    %590 = memref.load %arg2[%c49] : memref<162xf32, #tpu.memory_space<smem>>
    %591 = vector.broadcast %590 : f32 to vector<222xf32>
    %592 = arith.mulf %591, %585 : vector<222xf32>
    %593 = arith.addf %567, %592 : vector<222xf32>
    %c76 = arith.constant 76 : index
    %594 = memref.load %arg2[%c76] : memref<162xf32, #tpu.memory_space<smem>>
    %595 = vector.broadcast %594 : f32 to vector<222xf32>
    %596 = arith.mulf %595, %585 : vector<222xf32>
    %597 = arith.addf %571, %596 : vector<222xf32>
    %c103 = arith.constant 103 : index
    %598 = memref.load %arg2[%c103] : memref<162xf32, #tpu.memory_space<smem>>
    %599 = vector.broadcast %598 : f32 to vector<222xf32>
    %600 = arith.mulf %599, %585 : vector<222xf32>
    %601 = arith.addf %575, %600 : vector<222xf32>
    %c130 = arith.constant 130 : index
    %602 = memref.load %arg2[%c130] : memref<162xf32, #tpu.memory_space<smem>>
    %603 = vector.broadcast %602 : f32 to vector<222xf32>
    %604 = arith.mulf %603, %585 : vector<222xf32>
    %605 = arith.addf %579, %604 : vector<222xf32>
    %c157 = arith.constant 157 : index
    %606 = memref.load %arg2[%c157] : memref<162xf32, #tpu.memory_space<smem>>
    %607 = vector.broadcast %606 : f32 to vector<222xf32>
    %608 = arith.mulf %607, %585 : vector<222xf32>
    %609 = arith.addf %583, %608 : vector<222xf32>
    %c0_75 = arith.constant 0 : index
    %c2_76 = arith.constant 2 : index
    %c18_77 = arith.constant 18 : index
    %610 = vector.load %arg1[%c0_75, %c2_76, %c18_77] : memref<2x3x256xf32, #tpu.memory_space<vmem>>, vector<1x1x222xf32>
    %611 = vector.shape_cast %610 : vector<1x1x222xf32> to vector<222xf32>
    %c23 = arith.constant 23 : index
    %612 = memref.load %arg2[%c23] : memref<162xf32, #tpu.memory_space<smem>>
    %613 = vector.broadcast %612 : f32 to vector<222xf32>
    %614 = arith.mulf %613, %611 : vector<222xf32>
    %615 = arith.addf %589, %614 : vector<222xf32>
    %c50 = arith.constant 50 : index
    %616 = memref.load %arg2[%c50] : memref<162xf32, #tpu.memory_space<smem>>
    %617 = vector.broadcast %616 : f32 to vector<222xf32>
    %618 = arith.mulf %617, %611 : vector<222xf32>
    %619 = arith.addf %593, %618 : vector<222xf32>
    %c77 = arith.constant 77 : index
    %620 = memref.load %arg2[%c77] : memref<162xf32, #tpu.memory_space<smem>>
    %621 = vector.broadcast %620 : f32 to vector<222xf32>
    %622 = arith.mulf %621, %611 : vector<222xf32>
    %623 = arith.addf %597, %622 : vector<222xf32>
    %c104 = arith.constant 104 : index
    %624 = memref.load %arg2[%c104] : memref<162xf32, #tpu.memory_space<smem>>
    %625 = vector.broadcast %624 : f32 to vector<222xf32>
    %626 = arith.mulf %625, %611 : vector<222xf32>
    %627 = arith.addf %601, %626 : vector<222xf32>
    %c131 = arith.constant 131 : index
    %628 = memref.load %arg2[%c131] : memref<162xf32, #tpu.memory_space<smem>>
    %629 = vector.broadcast %628 : f32 to vector<222xf32>
    %630 = arith.mulf %629, %611 : vector<222xf32>
    %631 = arith.addf %605, %630 : vector<222xf32>
    %c158 = arith.constant 158 : index
    %632 = memref.load %arg2[%c158] : memref<162xf32, #tpu.memory_space<smem>>
    %633 = vector.broadcast %632 : f32 to vector<222xf32>
    %634 = arith.mulf %633, %611 : vector<222xf32>
    %635 = arith.addf %609, %634 : vector<222xf32>
    %c0_78 = arith.constant 0 : index
    %c2_79 = arith.constant 2 : index
    %c32_80 = arith.constant 32 : index
    %636 = vector.load %arg1[%c0_78, %c2_79, %c32_80] : memref<2x3x256xf32, #tpu.memory_space<vmem>>, vector<1x1x222xf32>
    %637 = vector.shape_cast %636 : vector<1x1x222xf32> to vector<222xf32>
    %c24 = arith.constant 24 : index
    %638 = memref.load %arg2[%c24] : memref<162xf32, #tpu.memory_space<smem>>
    %639 = vector.broadcast %638 : f32 to vector<222xf32>
    %640 = arith.mulf %639, %637 : vector<222xf32>
    %641 = arith.addf %615, %640 : vector<222xf32>
    %c51 = arith.constant 51 : index
    %642 = memref.load %arg2[%c51] : memref<162xf32, #tpu.memory_space<smem>>
    %643 = vector.broadcast %642 : f32 to vector<222xf32>
    %644 = arith.mulf %643, %637 : vector<222xf32>
    %645 = arith.addf %619, %644 : vector<222xf32>
    %c78 = arith.constant 78 : index
    %646 = memref.load %arg2[%c78] : memref<162xf32, #tpu.memory_space<smem>>
    %647 = vector.broadcast %646 : f32 to vector<222xf32>
    %648 = arith.mulf %647, %637 : vector<222xf32>
    %649 = arith.addf %623, %648 : vector<222xf32>
    %c105 = arith.constant 105 : index
    %650 = memref.load %arg2[%c105] : memref<162xf32, #tpu.memory_space<smem>>
    %651 = vector.broadcast %650 : f32 to vector<222xf32>
    %652 = arith.mulf %651, %637 : vector<222xf32>
    %653 = arith.addf %627, %652 : vector<222xf32>
    %c132 = arith.constant 132 : index
    %654 = memref.load %arg2[%c132] : memref<162xf32, #tpu.memory_space<smem>>
    %655 = vector.broadcast %654 : f32 to vector<222xf32>
    %656 = arith.mulf %655, %637 : vector<222xf32>
    %657 = arith.addf %631, %656 : vector<222xf32>
    %c159 = arith.constant 159 : index
    %658 = memref.load %arg2[%c159] : memref<162xf32, #tpu.memory_space<smem>>
    %659 = vector.broadcast %658 : f32 to vector<222xf32>
    %660 = arith.mulf %659, %637 : vector<222xf32>
    %661 = arith.addf %635, %660 : vector<222xf32>
    %c0_81 = arith.constant 0 : index
    %c2_82 = arith.constant 2 : index
    %c33_83 = arith.constant 33 : index
    %662 = vector.load %arg1[%c0_81, %c2_82, %c33_83] : memref<2x3x256xf32, #tpu.memory_space<vmem>>, vector<1x1x222xf32>
    %663 = vector.shape_cast %662 : vector<1x1x222xf32> to vector<222xf32>
    %c25 = arith.constant 25 : index
    %664 = memref.load %arg2[%c25] : memref<162xf32, #tpu.memory_space<smem>>
    %665 = vector.broadcast %664 : f32 to vector<222xf32>
    %666 = arith.mulf %665, %663 : vector<222xf32>
    %667 = arith.addf %641, %666 : vector<222xf32>
    %c52 = arith.constant 52 : index
    %668 = memref.load %arg2[%c52] : memref<162xf32, #tpu.memory_space<smem>>
    %669 = vector.broadcast %668 : f32 to vector<222xf32>
    %670 = arith.mulf %669, %663 : vector<222xf32>
    %671 = arith.addf %645, %670 : vector<222xf32>
    %c79 = arith.constant 79 : index
    %672 = memref.load %arg2[%c79] : memref<162xf32, #tpu.memory_space<smem>>
    %673 = vector.broadcast %672 : f32 to vector<222xf32>
    %674 = arith.mulf %673, %663 : vector<222xf32>
    %675 = arith.addf %649, %674 : vector<222xf32>
    %c106 = arith.constant 106 : index
    %676 = memref.load %arg2[%c106] : memref<162xf32, #tpu.memory_space<smem>>
    %677 = vector.broadcast %676 : f32 to vector<222xf32>
    %678 = arith.mulf %677, %663 : vector<222xf32>
    %679 = arith.addf %653, %678 : vector<222xf32>
    %c133 = arith.constant 133 : index
    %680 = memref.load %arg2[%c133] : memref<162xf32, #tpu.memory_space<smem>>
    %681 = vector.broadcast %680 : f32 to vector<222xf32>
    %682 = arith.mulf %681, %663 : vector<222xf32>
    %683 = arith.addf %657, %682 : vector<222xf32>
    %c160 = arith.constant 160 : index
    %684 = memref.load %arg2[%c160] : memref<162xf32, #tpu.memory_space<smem>>
    %685 = vector.broadcast %684 : f32 to vector<222xf32>
    %686 = arith.mulf %685, %663 : vector<222xf32>
    %687 = arith.addf %661, %686 : vector<222xf32>
    %c0_84 = arith.constant 0 : index
    %c2_85 = arith.constant 2 : index
    %c34_86 = arith.constant 34 : index
    %688 = vector.load %arg1[%c0_84, %c2_85, %c34_86] : memref<2x3x256xf32, #tpu.memory_space<vmem>>, vector<1x1x222xf32>
    %689 = vector.shape_cast %688 : vector<1x1x222xf32> to vector<222xf32>
    %c26 = arith.constant 26 : index
    %690 = memref.load %arg2[%c26] : memref<162xf32, #tpu.memory_space<smem>>
    %691 = vector.broadcast %690 : f32 to vector<222xf32>
    %692 = arith.mulf %691, %689 : vector<222xf32>
    %693 = arith.addf %667, %692 : vector<222xf32>
    %c53 = arith.constant 53 : index
    %694 = memref.load %arg2[%c53] : memref<162xf32, #tpu.memory_space<smem>>
    %695 = vector.broadcast %694 : f32 to vector<222xf32>
    %696 = arith.mulf %695, %689 : vector<222xf32>
    %697 = arith.addf %671, %696 : vector<222xf32>
    %c80 = arith.constant 80 : index
    %698 = memref.load %arg2[%c80] : memref<162xf32, #tpu.memory_space<smem>>
    %699 = vector.broadcast %698 : f32 to vector<222xf32>
    %700 = arith.mulf %699, %689 : vector<222xf32>
    %701 = arith.addf %675, %700 : vector<222xf32>
    %c107 = arith.constant 107 : index
    %702 = memref.load %arg2[%c107] : memref<162xf32, #tpu.memory_space<smem>>
    %703 = vector.broadcast %702 : f32 to vector<222xf32>
    %704 = arith.mulf %703, %689 : vector<222xf32>
    %705 = arith.addf %679, %704 : vector<222xf32>
    %c134 = arith.constant 134 : index
    %706 = memref.load %arg2[%c134] : memref<162xf32, #tpu.memory_space<smem>>
    %707 = vector.broadcast %706 : f32 to vector<222xf32>
    %708 = arith.mulf %707, %689 : vector<222xf32>
    %709 = arith.addf %683, %708 : vector<222xf32>
    %c161 = arith.constant 161 : index
    %710 = memref.load %arg2[%c161] : memref<162xf32, #tpu.memory_space<smem>>
    %711 = vector.broadcast %710 : f32 to vector<222xf32>
    %712 = arith.mulf %711, %689 : vector<222xf32>
    %713 = arith.addf %687, %712 : vector<222xf32>
    %c0_87 = arith.constant 0 : index
    %c0_88 = arith.constant 0 : index
    %c0_89 = arith.constant 0 : index
    %714 = vector.load %arg4[%c0_87, %c0_88, %c0_89] : memref<2x6x224xf32, #tpu.memory_space<vmem>>, vector<1x1x222xf32>
    %715 = vector.shape_cast %714 : vector<1x1x222xf32> to vector<222xf32>
    %716 = vector.shape_cast %693 : vector<222xf32> to vector<1x1x222xf32>
    tpu.vector_store %arg4[%c0_87, %c0_88, %c0_89], %716 {strides = array<i32>} : memref<2x6x224xf32, #tpu.memory_space<vmem>>, vector<1x1x222xf32>,
    %c0_90 = arith.constant 0 : index
    %c1_91 = arith.constant 1 : index
    %c0_92 = arith.constant 0 : index
    %717 = vector.load %arg4[%c0_90, %c1_91, %c0_92] : memref<2x6x224xf32, #tpu.memory_space<vmem>>, vector<1x1x222xf32>
    %718 = vector.shape_cast %717 : vector<1x1x222xf32> to vector<222xf32>
    %719 = vector.shape_cast %697 : vector<222xf32> to vector<1x1x222xf32>
    tpu.vector_store %arg4[%c0_90, %c1_91, %c0_92], %719 {strides = array<i32>} : memref<2x6x224xf32, #tpu.memory_space<vmem>>, vector<1x1x222xf32>,
    %c0_93 = arith.constant 0 : index
    %c2_94 = arith.constant 2 : index
    %c0_95 = arith.constant 0 : index
    %720 = vector.load %arg4[%c0_93, %c2_94, %c0_95] : memref<2x6x224xf32, #tpu.memory_space<vmem>>, vector<1x1x222xf32>
    %721 = vector.shape_cast %720 : vector<1x1x222xf32> to vector<222xf32>
    %722 = vector.shape_cast %701 : vector<222xf32> to vector<1x1x222xf32>
    tpu.vector_store %arg4[%c0_93, %c2_94, %c0_95], %722 {strides = array<i32>} : memref<2x6x224xf32, #tpu.memory_space<vmem>>, vector<1x1x222xf32>,
    %c0_96 = arith.constant 0 : index
    %c3_97 = arith.constant 3 : index
    %c0_98 = arith.constant 0 : index
    %723 = vector.load %arg4[%c0_96, %c3_97, %c0_98] : memref<2x6x224xf32, #tpu.memory_space<vmem>>, vector<1x1x222xf32>
    %724 = vector.shape_cast %723 : vector<1x1x222xf32> to vector<222xf32>
    %725 = vector.shape_cast %705 : vector<222xf32> to vector<1x1x222xf32>
    tpu.vector_store %arg4[%c0_96, %c3_97, %c0_98], %725 {strides = array<i32>} : memref<2x6x224xf32, #tpu.memory_space<vmem>>, vector<1x1x222xf32>,
    %c0_99 = arith.constant 0 : index
    %c4_100 = arith.constant 4 : index
    %c0_101 = arith.constant 0 : index
    %726 = vector.load %arg4[%c0_99, %c4_100, %c0_101] : memref<2x6x224xf32, #tpu.memory_space<vmem>>, vector<1x1x222xf32>
    %727 = vector.shape_cast %726 : vector<1x1x222xf32> to vector<222xf32>
    %728 = vector.shape_cast %709 : vector<222xf32> to vector<1x1x222xf32>
    tpu.vector_store %arg4[%c0_99, %c4_100, %c0_101], %728 {strides = array<i32>} : memref<2x6x224xf32, #tpu.memory_space<vmem>>, vector<1x1x222xf32>,
    %c0_102 = arith.constant 0 : index
    %c5_103 = arith.constant 5 : index
    %c0_104 = arith.constant 0 : index
    %729 = vector.load %arg4[%c0_102, %c5_103, %c0_104] : memref<2x6x224xf32, #tpu.memory_space<vmem>>, vector<1x1x222xf32>
    %730 = vector.shape_cast %729 : vector<1x1x222xf32> to vector<222xf32>
    %731 = vector.shape_cast %713 : vector<222xf32> to vector<1x1x222xf32>
    tpu.vector_store %arg4[%c0_102, %c5_103, %c0_104], %731 {strides = array<i32>} : memref<2x6x224xf32, #tpu.memory_space<vmem>>, vector<1x1x222xf32>,
    %c0_105 = arith.constant 0 : index
    %732 = memref.load %arg3[%c0_105] : memref<6xf32, #tpu.memory_space<smem>>
    %733 = vector.broadcast %732 : f32 to vector<222xf32>
    %c1_106 = arith.constant 1 : index
    %734 = memref.load %arg3[%c1_106] : memref<6xf32, #tpu.memory_space<smem>>
    %735 = vector.broadcast %734 : f32 to vector<222xf32>
    %c2_107 = arith.constant 2 : index
    %736 = memref.load %arg3[%c2_107] : memref<6xf32, #tpu.memory_space<smem>>
    %737 = vector.broadcast %736 : f32 to vector<222xf32>
    %c3_108 = arith.constant 3 : index
    %738 = memref.load %arg3[%c3_108] : memref<6xf32, #tpu.memory_space<smem>>
    %739 = vector.broadcast %738 : f32 to vector<222xf32>
    %c4_109 = arith.constant 4 : index
    %740 = memref.load %arg3[%c4_109] : memref<6xf32, #tpu.memory_space<smem>>
    %741 = vector.broadcast %740 : f32 to vector<222xf32>
    %c5_110 = arith.constant 5 : index
    %742 = memref.load %arg3[%c5_110] : memref<6xf32, #tpu.memory_space<smem>>
    %743 = vector.broadcast %742 : f32 to vector<222xf32>
    %c1_111 = arith.constant 1 : index
    %c0_112 = arith.constant 0 : index
    %c0_113 = arith.constant 0 : index
    %744 = vector.load %arg1[%c1_111, %c0_112, %c0_113] : memref<2x3x256xf32, #tpu.memory_space<vmem>>, vector<1x1x222xf32>
    %745 = vector.shape_cast %744 : vector<1x1x222xf32> to vector<222xf32>
    %c0_114 = arith.constant 0 : index
    %746 = memref.load %arg2[%c0_114] : memref<162xf32, #tpu.memory_space<smem>>
    %747 = vector.broadcast %746 : f32 to vector<222xf32>
    %748 = arith.mulf %747, %745 : vector<222xf32>
    %749 = arith.addf %733, %748 : vector<222xf32>
    %c27_115 = arith.constant 27 : index
    %750 = memref.load %arg2[%c27_115] : memref<162xf32, #tpu.memory_space<smem>>
    %751 = vector.broadcast %750 : f32 to vector<222xf32>
    %752 = arith.mulf %751, %745 : vector<222xf32>
    %753 = arith.addf %735, %752 : vector<222xf32>
    %c54_116 = arith.constant 54 : index
    %754 = memref.load %arg2[%c54_116] : memref<162xf32, #tpu.memory_space<smem>>
    %755 = vector.broadcast %754 : f32 to vector<222xf32>
    %756 = arith.mulf %755, %745 : vector<222xf32>
    %757 = arith.addf %737, %756 : vector<222xf32>
    %c81_117 = arith.constant 81 : index
    %758 = memref.load %arg2[%c81_117] : memref<162xf32, #tpu.memory_space<smem>>
    %759 = vector.broadcast %758 : f32 to vector<222xf32>
    %760 = arith.mulf %759, %745 : vector<222xf32>
    %761 = arith.addf %739, %760 : vector<222xf32>
    %c108_118 = arith.constant 108 : index
    %762 = memref.load %arg2[%c108_118] : memref<162xf32, #tpu.memory_space<smem>>
    %763 = vector.broadcast %762 : f32 to vector<222xf32>
    %764 = arith.mulf %763, %745 : vector<222xf32>
    %765 = arith.addf %741, %764 : vector<222xf32>
    %c135_119 = arith.constant 135 : index
    %766 = memref.load %arg2[%c135_119] : memref<162xf32, #tpu.memory_space<smem>>
    %767 = vector.broadcast %766 : f32 to vector<222xf32>
    %768 = arith.mulf %767, %745 : vector<222xf32>
    %769 = arith.addf %743, %768 : vector<222xf32>
    %c1_120 = arith.constant 1 : index
    %c0_121 = arith.constant 0 : index
    %c1_122 = arith.constant 1 : index
    %770 = vector.load %arg1[%c1_120, %c0_121, %c1_122] : memref<2x3x256xf32, #tpu.memory_space<vmem>>, vector<1x1x222xf32>
    %771 = vector.shape_cast %770 : vector<1x1x222xf32> to vector<222xf32>
    %c1_123 = arith.constant 1 : index
    %772 = memref.load %arg2[%c1_123] : memref<162xf32, #tpu.memory_space<smem>>
    %773 = vector.broadcast %772 : f32 to vector<222xf32>
    %774 = arith.mulf %773, %771 : vector<222xf32>
    %775 = arith.addf %749, %774 : vector<222xf32>
    %c28_124 = arith.constant 28 : index
    %776 = memref.load %arg2[%c28_124] : memref<162xf32, #tpu.memory_space<smem>>
    %777 = vector.broadcast %776 : f32 to vector<222xf32>
    %778 = arith.mulf %777, %771 : vector<222xf32>
    %779 = arith.addf %753, %778 : vector<222xf32>
    %c55_125 = arith.constant 55 : index
    %780 = memref.load %arg2[%c55_125] : memref<162xf32, #tpu.memory_space<smem>>
    %781 = vector.broadcast %780 : f32 to vector<222xf32>
    %782 = arith.mulf %781, %771 : vector<222xf32>
    %783 = arith.addf %757, %782 : vector<222xf32>
    %c82_126 = arith.constant 82 : index
    %784 = memref.load %arg2[%c82_126] : memref<162xf32, #tpu.memory_space<smem>>
    %785 = vector.broadcast %784 : f32 to vector<222xf32>
    %786 = arith.mulf %785, %771 : vector<222xf32>
    %787 = arith.addf %761, %786 : vector<222xf32>
    %c109_127 = arith.constant 109 : index
    %788 = memref.load %arg2[%c109_127] : memref<162xf32, #tpu.memory_space<smem>>
    %789 = vector.broadcast %788 : f32 to vector<222xf32>
    %790 = arith.mulf %789, %771 : vector<222xf32>
    %791 = arith.addf %765, %790 : vector<222xf32>
    %c136_128 = arith.constant 136 : index
    %792 = memref.load %arg2[%c136_128] : memref<162xf32, #tpu.memory_space<smem>>
    %793 = vector.broadcast %792 : f32 to vector<222xf32>
    %794 = arith.mulf %793, %771 : vector<222xf32>
    %795 = arith.addf %769, %794 : vector<222xf32>
    %c1_129 = arith.constant 1 : index
    %c0_130 = arith.constant 0 : index
    %c2_131 = arith.constant 2 : index
    %796 = vector.load %arg1[%c1_129, %c0_130, %c2_131] : memref<2x3x256xf32, #tpu.memory_space<vmem>>, vector<1x1x222xf32>
    %797 = vector.shape_cast %796 : vector<1x1x222xf32> to vector<222xf32>
    %c2_132 = arith.constant 2 : index
    %798 = memref.load %arg2[%c2_132] : memref<162xf32, #tpu.memory_space<smem>>
    %799 = vector.broadcast %798 : f32 to vector<222xf32>
    %800 = arith.mulf %799, %797 : vector<222xf32>
    %801 = arith.addf %775, %800 : vector<222xf32>
    %c29_133 = arith.constant 29 : index
    %802 = memref.load %arg2[%c29_133] : memref<162xf32, #tpu.memory_space<smem>>
    %803 = vector.broadcast %802 : f32 to vector<222xf32>
    %804 = arith.mulf %803, %797 : vector<222xf32>
    %805 = arith.addf %779, %804 : vector<222xf32>
    %c56_134 = arith.constant 56 : index
    %806 = memref.load %arg2[%c56_134] : memref<162xf32, #tpu.memory_space<smem>>
    %807 = vector.broadcast %806 : f32 to vector<222xf32>
    %808 = arith.mulf %807, %797 : vector<222xf32>
    %809 = arith.addf %783, %808 : vector<222xf32>
    %c83_135 = arith.constant 83 : index
    %810 = memref.load %arg2[%c83_135] : memref<162xf32, #tpu.memory_space<smem>>
    %811 = vector.broadcast %810 : f32 to vector<222xf32>
    %812 = arith.mulf %811, %797 : vector<222xf32>
    %813 = arith.addf %787, %812 : vector<222xf32>
    %c110_136 = arith.constant 110 : index
    %814 = memref.load %arg2[%c110_136] : memref<162xf32, #tpu.memory_space<smem>>
    %815 = vector.broadcast %814 : f32 to vector<222xf32>
    %816 = arith.mulf %815, %797 : vector<222xf32>
    %817 = arith.addf %791, %816 : vector<222xf32>
    %c137_137 = arith.constant 137 : index
    %818 = memref.load %arg2[%c137_137] : memref<162xf32, #tpu.memory_space<smem>>
    %819 = vector.broadcast %818 : f32 to vector<222xf32>
    %820 = arith.mulf %819, %797 : vector<222xf32>
    %821 = arith.addf %795, %820 : vector<222xf32>
    %c1_138 = arith.constant 1 : index
    %c0_139 = arith.constant 0 : index
    %c16_140 = arith.constant 16 : index
    %822 = vector.load %arg1[%c1_138, %c0_139, %c16_140] : memref<2x3x256xf32, #tpu.memory_space<vmem>>, vector<1x1x222xf32>
    %823 = vector.shape_cast %822 : vector<1x1x222xf32> to vector<222xf32>
    %c3_141 = arith.constant 3 : index
    %824 = memref.load %arg2[%c3_141] : memref<162xf32, #tpu.memory_space<smem>>
    %825 = vector.broadcast %824 : f32 to vector<222xf32>
    %826 = arith.mulf %825, %823 : vector<222xf32>
    %827 = arith.addf %801, %826 : vector<222xf32>
    %c30_142 = arith.constant 30 : index
    %828 = memref.load %arg2[%c30_142] : memref<162xf32, #tpu.memory_space<smem>>
    %829 = vector.broadcast %828 : f32 to vector<222xf32>
    %830 = arith.mulf %829, %823 : vector<222xf32>
    %831 = arith.addf %805, %830 : vector<222xf32>
    %c57_143 = arith.constant 57 : index
    %832 = memref.load %arg2[%c57_143] : memref<162xf32, #tpu.memory_space<smem>>
    %833 = vector.broadcast %832 : f32 to vector<222xf32>
    %834 = arith.mulf %833, %823 : vector<222xf32>
    %835 = arith.addf %809, %834 : vector<222xf32>
    %c84_144 = arith.constant 84 : index
    %836 = memref.load %arg2[%c84_144] : memref<162xf32, #tpu.memory_space<smem>>
    %837 = vector.broadcast %836 : f32 to vector<222xf32>
    %838 = arith.mulf %837, %823 : vector<222xf32>
    %839 = arith.addf %813, %838 : vector<222xf32>
    %c111_145 = arith.constant 111 : index
    %840 = memref.load %arg2[%c111_145] : memref<162xf32, #tpu.memory_space<smem>>
    %841 = vector.broadcast %840 : f32 to vector<222xf32>
    %842 = arith.mulf %841, %823 : vector<222xf32>
    %843 = arith.addf %817, %842 : vector<222xf32>
    %c138_146 = arith.constant 138 : index
    %844 = memref.load %arg2[%c138_146] : memref<162xf32, #tpu.memory_space<smem>>
    %845 = vector.broadcast %844 : f32 to vector<222xf32>
    %846 = arith.mulf %845, %823 : vector<222xf32>
    %847 = arith.addf %821, %846 : vector<222xf32>
    %c1_147 = arith.constant 1 : index
    %c0_148 = arith.constant 0 : index
    %c17_149 = arith.constant 17 : index
    %848 = vector.load %arg1[%c1_147, %c0_148, %c17_149] : memref<2x3x256xf32, #tpu.memory_space<vmem>>, vector<1x1x222xf32>
    %849 = vector.shape_cast %848 : vector<1x1x222xf32> to vector<222xf32>
    %c4_150 = arith.constant 4 : index
    %850 = memref.load %arg2[%c4_150] : memref<162xf32, #tpu.memory_space<smem>>
    %851 = vector.broadcast %850 : f32 to vector<222xf32>
    %852 = arith.mulf %851, %849 : vector<222xf32>
    %853 = arith.addf %827, %852 : vector<222xf32>
    %c31_151 = arith.constant 31 : index
    %854 = memref.load %arg2[%c31_151] : memref<162xf32, #tpu.memory_space<smem>>
    %855 = vector.broadcast %854 : f32 to vector<222xf32>
    %856 = arith.mulf %855, %849 : vector<222xf32>
    %857 = arith.addf %831, %856 : vector<222xf32>
    %c58_152 = arith.constant 58 : index
    %858 = memref.load %arg2[%c58_152] : memref<162xf32, #tpu.memory_space<smem>>
    %859 = vector.broadcast %858 : f32 to vector<222xf32>
    %860 = arith.mulf %859, %849 : vector<222xf32>
    %861 = arith.addf %835, %860 : vector<222xf32>
    %c85_153 = arith.constant 85 : index
    %862 = memref.load %arg2[%c85_153] : memref<162xf32, #tpu.memory_space<smem>>
    %863 = vector.broadcast %862 : f32 to vector<222xf32>
    %864 = arith.mulf %863, %849 : vector<222xf32>
    %865 = arith.addf %839, %864 : vector<222xf32>
    %c112_154 = arith.constant 112 : index
    %866 = memref.load %arg2[%c112_154] : memref<162xf32, #tpu.memory_space<smem>>
    %867 = vector.broadcast %866 : f32 to vector<222xf32>
    %868 = arith.mulf %867, %849 : vector<222xf32>
    %869 = arith.addf %843, %868 : vector<222xf32>
    %c139_155 = arith.constant 139 : index
    %870 = memref.load %arg2[%c139_155] : memref<162xf32, #tpu.memory_space<smem>>
    %871 = vector.broadcast %870 : f32 to vector<222xf32>
    %872 = arith.mulf %871, %849 : vector<222xf32>
    %873 = arith.addf %847, %872 : vector<222xf32>
    %c1_156 = arith.constant 1 : index
    %c0_157 = arith.constant 0 : index
    %c18_158 = arith.constant 18 : index
    %874 = vector.load %arg1[%c1_156, %c0_157, %c18_158] : memref<2x3x256xf32, #tpu.memory_space<vmem>>, vector<1x1x222xf32>
    %875 = vector.shape_cast %874 : vector<1x1x222xf32> to vector<222xf32>
    %c5_159 = arith.constant 5 : index
    %876 = memref.load %arg2[%c5_159] : memref<162xf32, #tpu.memory_space<smem>>
    %877 = vector.broadcast %876 : f32 to vector<222xf32>
    %878 = arith.mulf %877, %875 : vector<222xf32>
    %879 = arith.addf %853, %878 : vector<222xf32>
    %c32_160 = arith.constant 32 : index
    %880 = memref.load %arg2[%c32_160] : memref<162xf32, #tpu.memory_space<smem>>
    %881 = vector.broadcast %880 : f32 to vector<222xf32>
    %882 = arith.mulf %881, %875 : vector<222xf32>
    %883 = arith.addf %857, %882 : vector<222xf32>
    %c59_161 = arith.constant 59 : index
    %884 = memref.load %arg2[%c59_161] : memref<162xf32, #tpu.memory_space<smem>>
    %885 = vector.broadcast %884 : f32 to vector<222xf32>
    %886 = arith.mulf %885, %875 : vector<222xf32>
    %887 = arith.addf %861, %886 : vector<222xf32>
    %c86_162 = arith.constant 86 : index
    %888 = memref.load %arg2[%c86_162] : memref<162xf32, #tpu.memory_space<smem>>
    %889 = vector.broadcast %888 : f32 to vector<222xf32>
    %890 = arith.mulf %889, %875 : vector<222xf32>
    %891 = arith.addf %865, %890 : vector<222xf32>
    %c113_163 = arith.constant 113 : index
    %892 = memref.load %arg2[%c113_163] : memref<162xf32, #tpu.memory_space<smem>>
    %893 = vector.broadcast %892 : f32 to vector<222xf32>
    %894 = arith.mulf %893, %875 : vector<222xf32>
    %895 = arith.addf %869, %894 : vector<222xf32>
    %c140_164 = arith.constant 140 : index
    %896 = memref.load %arg2[%c140_164] : memref<162xf32, #tpu.memory_space<smem>>
    %897 = vector.broadcast %896 : f32 to vector<222xf32>
    %898 = arith.mulf %897, %875 : vector<222xf32>
    %899 = arith.addf %873, %898 : vector<222xf32>
    %c1_165 = arith.constant 1 : index
    %c0_166 = arith.constant 0 : index
    %c32_167 = arith.constant 32 : index
    %900 = vector.load %arg1[%c1_165, %c0_166, %c32_167] : memref<2x3x256xf32, #tpu.memory_space<vmem>>, vector<1x1x222xf32>
    %901 = vector.shape_cast %900 : vector<1x1x222xf32> to vector<222xf32>
    %c6_168 = arith.constant 6 : index
    %902 = memref.load %arg2[%c6_168] : memref<162xf32, #tpu.memory_space<smem>>
    %903 = vector.broadcast %902 : f32 to vector<222xf32>
    %904 = arith.mulf %903, %901 : vector<222xf32>
    %905 = arith.addf %879, %904 : vector<222xf32>
    %c33_169 = arith.constant 33 : index
    %906 = memref.load %arg2[%c33_169] : memref<162xf32, #tpu.memory_space<smem>>
    %907 = vector.broadcast %906 : f32 to vector<222xf32>
    %908 = arith.mulf %907, %901 : vector<222xf32>
    %909 = arith.addf %883, %908 : vector<222xf32>
    %c60_170 = arith.constant 60 : index
    %910 = memref.load %arg2[%c60_170] : memref<162xf32, #tpu.memory_space<smem>>
    %911 = vector.broadcast %910 : f32 to vector<222xf32>
    %912 = arith.mulf %911, %901 : vector<222xf32>
    %913 = arith.addf %887, %912 : vector<222xf32>
    %c87_171 = arith.constant 87 : index
    %914 = memref.load %arg2[%c87_171] : memref<162xf32, #tpu.memory_space<smem>>
    %915 = vector.broadcast %914 : f32 to vector<222xf32>
    %916 = arith.mulf %915, %901 : vector<222xf32>
    %917 = arith.addf %891, %916 : vector<222xf32>
    %c114_172 = arith.constant 114 : index
    %918 = memref.load %arg2[%c114_172] : memref<162xf32, #tpu.memory_space<smem>>
    %919 = vector.broadcast %918 : f32 to vector<222xf32>
    %920 = arith.mulf %919, %901 : vector<222xf32>
    %921 = arith.addf %895, %920 : vector<222xf32>
    %c141_173 = arith.constant 141 : index
    %922 = memref.load %arg2[%c141_173] : memref<162xf32, #tpu.memory_space<smem>>
    %923 = vector.broadcast %922 : f32 to vector<222xf32>
    %924 = arith.mulf %923, %901 : vector<222xf32>
    %925 = arith.addf %899, %924 : vector<222xf32>
    %c1_174 = arith.constant 1 : index
    %c0_175 = arith.constant 0 : index
    %c33_176 = arith.constant 33 : index
    %926 = vector.load %arg1[%c1_174, %c0_175, %c33_176] : memref<2x3x256xf32, #tpu.memory_space<vmem>>, vector<1x1x222xf32>
    %927 = vector.shape_cast %926 : vector<1x1x222xf32> to vector<222xf32>
    %c7_177 = arith.constant 7 : index
    %928 = memref.load %arg2[%c7_177] : memref<162xf32, #tpu.memory_space<smem>>
    %929 = vector.broadcast %928 : f32 to vector<222xf32>
    %930 = arith.mulf %929, %927 : vector<222xf32>
    %931 = arith.addf %905, %930 : vector<222xf32>
    %c34_178 = arith.constant 34 : index
    %932 = memref.load %arg2[%c34_178] : memref<162xf32, #tpu.memory_space<smem>>
    %933 = vector.broadcast %932 : f32 to vector<222xf32>
    %934 = arith.mulf %933, %927 : vector<222xf32>
    %935 = arith.addf %909, %934 : vector<222xf32>
    %c61_179 = arith.constant 61 : index
    %936 = memref.load %arg2[%c61_179] : memref<162xf32, #tpu.memory_space<smem>>
    %937 = vector.broadcast %936 : f32 to vector<222xf32>
    %938 = arith.mulf %937, %927 : vector<222xf32>
    %939 = arith.addf %913, %938 : vector<222xf32>
    %c88_180 = arith.constant 88 : index
    %940 = memref.load %arg2[%c88_180] : memref<162xf32, #tpu.memory_space<smem>>
    %941 = vector.broadcast %940 : f32 to vector<222xf32>
    %942 = arith.mulf %941, %927 : vector<222xf32>
    %943 = arith.addf %917, %942 : vector<222xf32>
    %c115_181 = arith.constant 115 : index
    %944 = memref.load %arg2[%c115_181] : memref<162xf32, #tpu.memory_space<smem>>
    %945 = vector.broadcast %944 : f32 to vector<222xf32>
    %946 = arith.mulf %945, %927 : vector<222xf32>
    %947 = arith.addf %921, %946 : vector<222xf32>
    %c142_182 = arith.constant 142 : index
    %948 = memref.load %arg2[%c142_182] : memref<162xf32, #tpu.memory_space<smem>>
    %949 = vector.broadcast %948 : f32 to vector<222xf32>
    %950 = arith.mulf %949, %927 : vector<222xf32>
    %951 = arith.addf %925, %950 : vector<222xf32>
    %c1_183 = arith.constant 1 : index
    %c0_184 = arith.constant 0 : index
    %c34_185 = arith.constant 34 : index
    %952 = vector.load %arg1[%c1_183, %c0_184, %c34_185] : memref<2x3x256xf32, #tpu.memory_space<vmem>>, vector<1x1x222xf32>
    %953 = vector.shape_cast %952 : vector<1x1x222xf32> to vector<222xf32>
    %c8_186 = arith.constant 8 : index
    %954 = memref.load %arg2[%c8_186] : memref<162xf32, #tpu.memory_space<smem>>
    %955 = vector.broadcast %954 : f32 to vector<222xf32>
    %956 = arith.mulf %955, %953 : vector<222xf32>
    %957 = arith.addf %931, %956 : vector<222xf32>
    %c35_187 = arith.constant 35 : index
    %958 = memref.load %arg2[%c35_187] : memref<162xf32, #tpu.memory_space<smem>>
    %959 = vector.broadcast %958 : f32 to vector<222xf32>
    %960 = arith.mulf %959, %953 : vector<222xf32>
    %961 = arith.addf %935, %960 : vector<222xf32>
    %c62_188 = arith.constant 62 : index
    %962 = memref.load %arg2[%c62_188] : memref<162xf32, #tpu.memory_space<smem>>
    %963 = vector.broadcast %962 : f32 to vector<222xf32>
    %964 = arith.mulf %963, %953 : vector<222xf32>
    %965 = arith.addf %939, %964 : vector<222xf32>
    %c89_189 = arith.constant 89 : index
    %966 = memref.load %arg2[%c89_189] : memref<162xf32, #tpu.memory_space<smem>>
    %967 = vector.broadcast %966 : f32 to vector<222xf32>
    %968 = arith.mulf %967, %953 : vector<222xf32>
    %969 = arith.addf %943, %968 : vector<222xf32>
    %c116_190 = arith.constant 116 : index
    %970 = memref.load %arg2[%c116_190] : memref<162xf32, #tpu.memory_space<smem>>
    %971 = vector.broadcast %970 : f32 to vector<222xf32>
    %972 = arith.mulf %971, %953 : vector<222xf32>
    %973 = arith.addf %947, %972 : vector<222xf32>
    %c143_191 = arith.constant 143 : index
    %974 = memref.load %arg2[%c143_191] : memref<162xf32, #tpu.memory_space<smem>>
    %975 = vector.broadcast %974 : f32 to vector<222xf32>
    %976 = arith.mulf %975, %953 : vector<222xf32>
    %977 = arith.addf %951, %976 : vector<222xf32>
    %c1_192 = arith.constant 1 : index
    %c1_193 = arith.constant 1 : index
    %c0_194 = arith.constant 0 : index
    %978 = vector.load %arg1[%c1_192, %c1_193, %c0_194] : memref<2x3x256xf32, #tpu.memory_space<vmem>>, vector<1x1x222xf32>
    %979 = vector.shape_cast %978 : vector<1x1x222xf32> to vector<222xf32>
    %c9_195 = arith.constant 9 : index
    %980 = memref.load %arg2[%c9_195] : memref<162xf32, #tpu.memory_space<smem>>
    %981 = vector.broadcast %980 : f32 to vector<222xf32>
    %982 = arith.mulf %981, %979 : vector<222xf32>
    %983 = arith.addf %957, %982 : vector<222xf32>
    %c36_196 = arith.constant 36 : index
    %984 = memref.load %arg2[%c36_196] : memref<162xf32, #tpu.memory_space<smem>>
    %985 = vector.broadcast %984 : f32 to vector<222xf32>
    %986 = arith.mulf %985, %979 : vector<222xf32>
    %987 = arith.addf %961, %986 : vector<222xf32>
    %c63_197 = arith.constant 63 : index
    %988 = memref.load %arg2[%c63_197] : memref<162xf32, #tpu.memory_space<smem>>
    %989 = vector.broadcast %988 : f32 to vector<222xf32>
    %990 = arith.mulf %989, %979 : vector<222xf32>
    %991 = arith.addf %965, %990 : vector<222xf32>
    %c90_198 = arith.constant 90 : index
    %992 = memref.load %arg2[%c90_198] : memref<162xf32, #tpu.memory_space<smem>>
    %993 = vector.broadcast %992 : f32 to vector<222xf32>
    %994 = arith.mulf %993, %979 : vector<222xf32>
    %995 = arith.addf %969, %994 : vector<222xf32>
    %c117_199 = arith.constant 117 : index
    %996 = memref.load %arg2[%c117_199] : memref<162xf32, #tpu.memory_space<smem>>
    %997 = vector.broadcast %996 : f32 to vector<222xf32>
    %998 = arith.mulf %997, %979 : vector<222xf32>
    %999 = arith.addf %973, %998 : vector<222xf32>
    %c144_200 = arith.constant 144 : index
    %1000 = memref.load %arg2[%c144_200] : memref<162xf32, #tpu.memory_space<smem>>
    %1001 = vector.broadcast %1000 : f32 to vector<222xf32>
    %1002 = arith.mulf %1001, %979 : vector<222xf32>
    %1003 = arith.addf %977, %1002 : vector<222xf32>
    %c1_201 = arith.constant 1 : index
    %c1_202 = arith.constant 1 : index
    %c1_203 = arith.constant 1 : index
    %1004 = vector.load %arg1[%c1_201, %c1_202, %c1_203] : memref<2x3x256xf32, #tpu.memory_space<vmem>>, vector<1x1x222xf32>
    %1005 = vector.shape_cast %1004 : vector<1x1x222xf32> to vector<222xf32>
    %c10_204 = arith.constant 10 : index
    %1006 = memref.load %arg2[%c10_204] : memref<162xf32, #tpu.memory_space<smem>>
    %1007 = vector.broadcast %1006 : f32 to vector<222xf32>
    %1008 = arith.mulf %1007, %1005 : vector<222xf32>
    %1009 = arith.addf %983, %1008 : vector<222xf32>
    %c37_205 = arith.constant 37 : index
    %1010 = memref.load %arg2[%c37_205] : memref<162xf32, #tpu.memory_space<smem>>
    %1011 = vector.broadcast %1010 : f32 to vector<222xf32>
    %1012 = arith.mulf %1011, %1005 : vector<222xf32>
    %1013 = arith.addf %987, %1012 : vector<222xf32>
    %c64_206 = arith.constant 64 : index
    %1014 = memref.load %arg2[%c64_206] : memref<162xf32, #tpu.memory_space<smem>>
    %1015 = vector.broadcast %1014 : f32 to vector<222xf32>
    %1016 = arith.mulf %1015, %1005 : vector<222xf32>
    %1017 = arith.addf %991, %1016 : vector<222xf32>
    %c91_207 = arith.constant 91 : index
    %1018 = memref.load %arg2[%c91_207] : memref<162xf32, #tpu.memory_space<smem>>
    %1019 = vector.broadcast %1018 : f32 to vector<222xf32>
    %1020 = arith.mulf %1019, %1005 : vector<222xf32>
    %1021 = arith.addf %995, %1020 : vector<222xf32>
    %c118_208 = arith.constant 118 : index
    %1022 = memref.load %arg2[%c118_208] : memref<162xf32, #tpu.memory_space<smem>>
    %1023 = vector.broadcast %1022 : f32 to vector<222xf32>
    %1024 = arith.mulf %1023, %1005 : vector<222xf32>
    %1025 = arith.addf %999, %1024 : vector<222xf32>
    %c145_209 = arith.constant 145 : index
    %1026 = memref.load %arg2[%c145_209] : memref<162xf32, #tpu.memory_space<smem>>
    %1027 = vector.broadcast %1026 : f32 to vector<222xf32>
    %1028 = arith.mulf %1027, %1005 : vector<222xf32>
    %1029 = arith.addf %1003, %1028 : vector<222xf32>
    %c1_210 = arith.constant 1 : index
    %c1_211 = arith.constant 1 : index
    %c2_212 = arith.constant 2 : index
    %1030 = vector.load %arg1[%c1_210, %c1_211, %c2_212] : memref<2x3x256xf32, #tpu.memory_space<vmem>>, vector<1x1x222xf32>
    %1031 = vector.shape_cast %1030 : vector<1x1x222xf32> to vector<222xf32>
    %c11_213 = arith.constant 11 : index
    %1032 = memref.load %arg2[%c11_213] : memref<162xf32, #tpu.memory_space<smem>>
    %1033 = vector.broadcast %1032 : f32 to vector<222xf32>
    %1034 = arith.mulf %1033, %1031 : vector<222xf32>
    %1035 = arith.addf %1009, %1034 : vector<222xf32>
    %c38_214 = arith.constant 38 : index
    %1036 = memref.load %arg2[%c38_214] : memref<162xf32, #tpu.memory_space<smem>>
    %1037 = vector.broadcast %1036 : f32 to vector<222xf32>
    %1038 = arith.mulf %1037, %1031 : vector<222xf32>
    %1039 = arith.addf %1013, %1038 : vector<222xf32>
    %c65_215 = arith.constant 65 : index
    %1040 = memref.load %arg2[%c65_215] : memref<162xf32, #tpu.memory_space<smem>>
    %1041 = vector.broadcast %1040 : f32 to vector<222xf32>
    %1042 = arith.mulf %1041, %1031 : vector<222xf32>
    %1043 = arith.addf %1017, %1042 : vector<222xf32>
    %c92_216 = arith.constant 92 : index
    %1044 = memref.load %arg2[%c92_216] : memref<162xf32, #tpu.memory_space<smem>>
    %1045 = vector.broadcast %1044 : f32 to vector<222xf32>
    %1046 = arith.mulf %1045, %1031 : vector<222xf32>
    %1047 = arith.addf %1021, %1046 : vector<222xf32>
    %c119_217 = arith.constant 119 : index
    %1048 = memref.load %arg2[%c119_217] : memref<162xf32, #tpu.memory_space<smem>>
    %1049 = vector.broadcast %1048 : f32 to vector<222xf32>
    %1050 = arith.mulf %1049, %1031 : vector<222xf32>
    %1051 = arith.addf %1025, %1050 : vector<222xf32>
    %c146_218 = arith.constant 146 : index
    %1052 = memref.load %arg2[%c146_218] : memref<162xf32, #tpu.memory_space<smem>>
    %1053 = vector.broadcast %1052 : f32 to vector<222xf32>
    %1054 = arith.mulf %1053, %1031 : vector<222xf32>
    %1055 = arith.addf %1029, %1054 : vector<222xf32>
    %c1_219 = arith.constant 1 : index
    %c1_220 = arith.constant 1 : index
    %c16_221 = arith.constant 16 : index
    %1056 = vector.load %arg1[%c1_219, %c1_220, %c16_221] : memref<2x3x256xf32, #tpu.memory_space<vmem>>, vector<1x1x222xf32>
    %1057 = vector.shape_cast %1056 : vector<1x1x222xf32> to vector<222xf32>
    %c12_222 = arith.constant 12 : index
    %1058 = memref.load %arg2[%c12_222] : memref<162xf32, #tpu.memory_space<smem>>
    %1059 = vector.broadcast %1058 : f32 to vector<222xf32>
    %1060 = arith.mulf %1059, %1057 : vector<222xf32>
    %1061 = arith.addf %1035, %1060 : vector<222xf32>
    %c39_223 = arith.constant 39 : index
    %1062 = memref.load %arg2[%c39_223] : memref<162xf32, #tpu.memory_space<smem>>
    %1063 = vector.broadcast %1062 : f32 to vector<222xf32>
    %1064 = arith.mulf %1063, %1057 : vector<222xf32>
    %1065 = arith.addf %1039, %1064 : vector<222xf32>
    %c66_224 = arith.constant 66 : index
    %1066 = memref.load %arg2[%c66_224] : memref<162xf32, #tpu.memory_space<smem>>
    %1067 = vector.broadcast %1066 : f32 to vector<222xf32>
    %1068 = arith.mulf %1067, %1057 : vector<222xf32>
    %1069 = arith.addf %1043, %1068 : vector<222xf32>
    %c93_225 = arith.constant 93 : index
    %1070 = memref.load %arg2[%c93_225] : memref<162xf32, #tpu.memory_space<smem>>
    %1071 = vector.broadcast %1070 : f32 to vector<222xf32>
    %1072 = arith.mulf %1071, %1057 : vector<222xf32>
    %1073 = arith.addf %1047, %1072 : vector<222xf32>
    %c120_226 = arith.constant 120 : index
    %1074 = memref.load %arg2[%c120_226] : memref<162xf32, #tpu.memory_space<smem>>
    %1075 = vector.broadcast %1074 : f32 to vector<222xf32>
    %1076 = arith.mulf %1075, %1057 : vector<222xf32>
    %1077 = arith.addf %1051, %1076 : vector<222xf32>
    %c147_227 = arith.constant 147 : index
    %1078 = memref.load %arg2[%c147_227] : memref<162xf32, #tpu.memory_space<smem>>
    %1079 = vector.broadcast %1078 : f32 to vector<222xf32>
    %1080 = arith.mulf %1079, %1057 : vector<222xf32>
    %1081 = arith.addf %1055, %1080 : vector<222xf32>
    %c1_228 = arith.constant 1 : index
    %c1_229 = arith.constant 1 : index
    %c17_230 = arith.constant 17 : index
    %1082 = vector.load %arg1[%c1_228, %c1_229, %c17_230] : memref<2x3x256xf32, #tpu.memory_space<vmem>>, vector<1x1x222xf32>
    %1083 = vector.shape_cast %1082 : vector<1x1x222xf32> to vector<222xf32>
    %c13_231 = arith.constant 13 : index
    %1084 = memref.load %arg2[%c13_231] : memref<162xf32, #tpu.memory_space<smem>>
    %1085 = vector.broadcast %1084 : f32 to vector<222xf32>
    %1086 = arith.mulf %1085, %1083 : vector<222xf32>
    %1087 = arith.addf %1061, %1086 : vector<222xf32>
    %c40_232 = arith.constant 40 : index
    %1088 = memref.load %arg2[%c40_232] : memref<162xf32, #tpu.memory_space<smem>>
    %1089 = vector.broadcast %1088 : f32 to vector<222xf32>
    %1090 = arith.mulf %1089, %1083 : vector<222xf32>
    %1091 = arith.addf %1065, %1090 : vector<222xf32>
    %c67_233 = arith.constant 67 : index
    %1092 = memref.load %arg2[%c67_233] : memref<162xf32, #tpu.memory_space<smem>>
    %1093 = vector.broadcast %1092 : f32 to vector<222xf32>
    %1094 = arith.mulf %1093, %1083 : vector<222xf32>
    %1095 = arith.addf %1069, %1094 : vector<222xf32>
    %c94_234 = arith.constant 94 : index
    %1096 = memref.load %arg2[%c94_234] : memref<162xf32, #tpu.memory_space<smem>>
    %1097 = vector.broadcast %1096 : f32 to vector<222xf32>
    %1098 = arith.mulf %1097, %1083 : vector<222xf32>
    %1099 = arith.addf %1073, %1098 : vector<222xf32>
    %c121_235 = arith.constant 121 : index
    %1100 = memref.load %arg2[%c121_235] : memref<162xf32, #tpu.memory_space<smem>>
    %1101 = vector.broadcast %1100 : f32 to vector<222xf32>
    %1102 = arith.mulf %1101, %1083 : vector<222xf32>
    %1103 = arith.addf %1077, %1102 : vector<222xf32>
    %c148_236 = arith.constant 148 : index
    %1104 = memref.load %arg2[%c148_236] : memref<162xf32, #tpu.memory_space<smem>>
    %1105 = vector.broadcast %1104 : f32 to vector<222xf32>
    %1106 = arith.mulf %1105, %1083 : vector<222xf32>
    %1107 = arith.addf %1081, %1106 : vector<222xf32>
    %c1_237 = arith.constant 1 : index
    %c1_238 = arith.constant 1 : index
    %c18_239 = arith.constant 18 : index
    %1108 = vector.load %arg1[%c1_237, %c1_238, %c18_239] : memref<2x3x256xf32, #tpu.memory_space<vmem>>, vector<1x1x222xf32>
    %1109 = vector.shape_cast %1108 : vector<1x1x222xf32> to vector<222xf32>
    %c14_240 = arith.constant 14 : index
    %1110 = memref.load %arg2[%c14_240] : memref<162xf32, #tpu.memory_space<smem>>
    %1111 = vector.broadcast %1110 : f32 to vector<222xf32>
    %1112 = arith.mulf %1111, %1109 : vector<222xf32>
    %1113 = arith.addf %1087, %1112 : vector<222xf32>
    %c41_241 = arith.constant 41 : index
    %1114 = memref.load %arg2[%c41_241] : memref<162xf32, #tpu.memory_space<smem>>
    %1115 = vector.broadcast %1114 : f32 to vector<222xf32>
    %1116 = arith.mulf %1115, %1109 : vector<222xf32>
    %1117 = arith.addf %1091, %1116 : vector<222xf32>
    %c68_242 = arith.constant 68 : index
    %1118 = memref.load %arg2[%c68_242] : memref<162xf32, #tpu.memory_space<smem>>
    %1119 = vector.broadcast %1118 : f32 to vector<222xf32>
    %1120 = arith.mulf %1119, %1109 : vector<222xf32>
    %1121 = arith.addf %1095, %1120 : vector<222xf32>
    %c95_243 = arith.constant 95 : index
    %1122 = memref.load %arg2[%c95_243] : memref<162xf32, #tpu.memory_space<smem>>
    %1123 = vector.broadcast %1122 : f32 to vector<222xf32>
    %1124 = arith.mulf %1123, %1109 : vector<222xf32>
    %1125 = arith.addf %1099, %1124 : vector<222xf32>
    %c122_244 = arith.constant 122 : index
    %1126 = memref.load %arg2[%c122_244] : memref<162xf32, #tpu.memory_space<smem>>
    %1127 = vector.broadcast %1126 : f32 to vector<222xf32>
    %1128 = arith.mulf %1127, %1109 : vector<222xf32>
    %1129 = arith.addf %1103, %1128 : vector<222xf32>
    %c149_245 = arith.constant 149 : index
    %1130 = memref.load %arg2[%c149_245] : memref<162xf32, #tpu.memory_space<smem>>
    %1131 = vector.broadcast %1130 : f32 to vector<222xf32>
    %1132 = arith.mulf %1131, %1109 : vector<222xf32>
    %1133 = arith.addf %1107, %1132 : vector<222xf32>
    %c1_246 = arith.constant 1 : index
    %c1_247 = arith.constant 1 : index
    %c32_248 = arith.constant 32 : index
    %1134 = vector.load %arg1[%c1_246, %c1_247, %c32_248] : memref<2x3x256xf32, #tpu.memory_space<vmem>>, vector<1x1x222xf32>
    %1135 = vector.shape_cast %1134 : vector<1x1x222xf32> to vector<222xf32>
    %c15_249 = arith.constant 15 : index
    %1136 = memref.load %arg2[%c15_249] : memref<162xf32, #tpu.memory_space<smem>>
    %1137 = vector.broadcast %1136 : f32 to vector<222xf32>
    %1138 = arith.mulf %1137, %1135 : vector<222xf32>
    %1139 = arith.addf %1113, %1138 : vector<222xf32>
    %c42_250 = arith.constant 42 : index
    %1140 = memref.load %arg2[%c42_250] : memref<162xf32, #tpu.memory_space<smem>>
    %1141 = vector.broadcast %1140 : f32 to vector<222xf32>
    %1142 = arith.mulf %1141, %1135 : vector<222xf32>
    %1143 = arith.addf %1117, %1142 : vector<222xf32>
    %c69_251 = arith.constant 69 : index
    %1144 = memref.load %arg2[%c69_251] : memref<162xf32, #tpu.memory_space<smem>>
    %1145 = vector.broadcast %1144 : f32 to vector<222xf32>
    %1146 = arith.mulf %1145, %1135 : vector<222xf32>
    %1147 = arith.addf %1121, %1146 : vector<222xf32>
    %c96_252 = arith.constant 96 : index
    %1148 = memref.load %arg2[%c96_252] : memref<162xf32, #tpu.memory_space<smem>>
    %1149 = vector.broadcast %1148 : f32 to vector<222xf32>
    %1150 = arith.mulf %1149, %1135 : vector<222xf32>
    %1151 = arith.addf %1125, %1150 : vector<222xf32>
    %c123_253 = arith.constant 123 : index
    %1152 = memref.load %arg2[%c123_253] : memref<162xf32, #tpu.memory_space<smem>>
    %1153 = vector.broadcast %1152 : f32 to vector<222xf32>
    %1154 = arith.mulf %1153, %1135 : vector<222xf32>
    %1155 = arith.addf %1129, %1154 : vector<222xf32>
    %c150_254 = arith.constant 150 : index
    %1156 = memref.load %arg2[%c150_254] : memref<162xf32, #tpu.memory_space<smem>>
    %1157 = vector.broadcast %1156 : f32 to vector<222xf32>
    %1158 = arith.mulf %1157, %1135 : vector<222xf32>
    %1159 = arith.addf %1133, %1158 : vector<222xf32>
    %c1_255 = arith.constant 1 : index
    %c1_256 = arith.constant 1 : index
    %c33_257 = arith.constant 33 : index
    %1160 = vector.load %arg1[%c1_255, %c1_256, %c33_257] : memref<2x3x256xf32, #tpu.memory_space<vmem>>, vector<1x1x222xf32>
    %1161 = vector.shape_cast %1160 : vector<1x1x222xf32> to vector<222xf32>
    %c16_258 = arith.constant 16 : index
    %1162 = memref.load %arg2[%c16_258] : memref<162xf32, #tpu.memory_space<smem>>
    %1163 = vector.broadcast %1162 : f32 to vector<222xf32>
    %1164 = arith.mulf %1163, %1161 : vector<222xf32>
    %1165 = arith.addf %1139, %1164 : vector<222xf32>
    %c43_259 = arith.constant 43 : index
    %1166 = memref.load %arg2[%c43_259] : memref<162xf32, #tpu.memory_space<smem>>
    %1167 = vector.broadcast %1166 : f32 to vector<222xf32>
    %1168 = arith.mulf %1167, %1161 : vector<222xf32>
    %1169 = arith.addf %1143, %1168 : vector<222xf32>
    %c70_260 = arith.constant 70 : index
    %1170 = memref.load %arg2[%c70_260] : memref<162xf32, #tpu.memory_space<smem>>
    %1171 = vector.broadcast %1170 : f32 to vector<222xf32>
    %1172 = arith.mulf %1171, %1161 : vector<222xf32>
    %1173 = arith.addf %1147, %1172 : vector<222xf32>
    %c97_261 = arith.constant 97 : index
    %1174 = memref.load %arg2[%c97_261] : memref<162xf32, #tpu.memory_space<smem>>
    %1175 = vector.broadcast %1174 : f32 to vector<222xf32>
    %1176 = arith.mulf %1175, %1161 : vector<222xf32>
    %1177 = arith.addf %1151, %1176 : vector<222xf32>
    %c124_262 = arith.constant 124 : index
    %1178 = memref.load %arg2[%c124_262] : memref<162xf32, #tpu.memory_space<smem>>
    %1179 = vector.broadcast %1178 : f32 to vector<222xf32>
    %1180 = arith.mulf %1179, %1161 : vector<222xf32>
    %1181 = arith.addf %1155, %1180 : vector<222xf32>
    %c151_263 = arith.constant 151 : index
    %1182 = memref.load %arg2[%c151_263] : memref<162xf32, #tpu.memory_space<smem>>
    %1183 = vector.broadcast %1182 : f32 to vector<222xf32>
    %1184 = arith.mulf %1183, %1161 : vector<222xf32>
    %1185 = arith.addf %1159, %1184 : vector<222xf32>
    %c1_264 = arith.constant 1 : index
    %c1_265 = arith.constant 1 : index
    %c34_266 = arith.constant 34 : index
    %1186 = vector.load %arg1[%c1_264, %c1_265, %c34_266] : memref<2x3x256xf32, #tpu.memory_space<vmem>>, vector<1x1x222xf32>
    %1187 = vector.shape_cast %1186 : vector<1x1x222xf32> to vector<222xf32>
    %c17_267 = arith.constant 17 : index
    %1188 = memref.load %arg2[%c17_267] : memref<162xf32, #tpu.memory_space<smem>>
    %1189 = vector.broadcast %1188 : f32 to vector<222xf32>
    %1190 = arith.mulf %1189, %1187 : vector<222xf32>
    %1191 = arith.addf %1165, %1190 : vector<222xf32>
    %c44_268 = arith.constant 44 : index
    %1192 = memref.load %arg2[%c44_268] : memref<162xf32, #tpu.memory_space<smem>>
    %1193 = vector.broadcast %1192 : f32 to vector<222xf32>
    %1194 = arith.mulf %1193, %1187 : vector<222xf32>
    %1195 = arith.addf %1169, %1194 : vector<222xf32>
    %c71_269 = arith.constant 71 : index
    %1196 = memref.load %arg2[%c71_269] : memref<162xf32, #tpu.memory_space<smem>>
    %1197 = vector.broadcast %1196 : f32 to vector<222xf32>
    %1198 = arith.mulf %1197, %1187 : vector<222xf32>
    %1199 = arith.addf %1173, %1198 : vector<222xf32>
    %c98_270 = arith.constant 98 : index
    %1200 = memref.load %arg2[%c98_270] : memref<162xf32, #tpu.memory_space<smem>>
    %1201 = vector.broadcast %1200 : f32 to vector<222xf32>
    %1202 = arith.mulf %1201, %1187 : vector<222xf32>
    %1203 = arith.addf %1177, %1202 : vector<222xf32>
    %c125_271 = arith.constant 125 : index
    %1204 = memref.load %arg2[%c125_271] : memref<162xf32, #tpu.memory_space<smem>>
    %1205 = vector.broadcast %1204 : f32 to vector<222xf32>
    %1206 = arith.mulf %1205, %1187 : vector<222xf32>
    %1207 = arith.addf %1181, %1206 : vector<222xf32>
    %c152_272 = arith.constant 152 : index
    %1208 = memref.load %arg2[%c152_272] : memref<162xf32, #tpu.memory_space<smem>>
    %1209 = vector.broadcast %1208 : f32 to vector<222xf32>
    %1210 = arith.mulf %1209, %1187 : vector<222xf32>
    %1211 = arith.addf %1185, %1210 : vector<222xf32>
    %c1_273 = arith.constant 1 : index
    %c2_274 = arith.constant 2 : index
    %c0_275 = arith.constant 0 : index
    %1212 = vector.load %arg1[%c1_273, %c2_274, %c0_275] : memref<2x3x256xf32, #tpu.memory_space<vmem>>, vector<1x1x222xf32>
    %1213 = vector.shape_cast %1212 : vector<1x1x222xf32> to vector<222xf32>
    %c18_276 = arith.constant 18 : index
    %1214 = memref.load %arg2[%c18_276] : memref<162xf32, #tpu.memory_space<smem>>
    %1215 = vector.broadcast %1214 : f32 to vector<222xf32>
    %1216 = arith.mulf %1215, %1213 : vector<222xf32>
    %1217 = arith.addf %1191, %1216 : vector<222xf32>
    %c45_277 = arith.constant 45 : index
    %1218 = memref.load %arg2[%c45_277] : memref<162xf32, #tpu.memory_space<smem>>
    %1219 = vector.broadcast %1218 : f32 to vector<222xf32>
    %1220 = arith.mulf %1219, %1213 : vector<222xf32>
    %1221 = arith.addf %1195, %1220 : vector<222xf32>
    %c72_278 = arith.constant 72 : index
    %1222 = memref.load %arg2[%c72_278] : memref<162xf32, #tpu.memory_space<smem>>
    %1223 = vector.broadcast %1222 : f32 to vector<222xf32>
    %1224 = arith.mulf %1223, %1213 : vector<222xf32>
    %1225 = arith.addf %1199, %1224 : vector<222xf32>
    %c99_279 = arith.constant 99 : index
    %1226 = memref.load %arg2[%c99_279] : memref<162xf32, #tpu.memory_space<smem>>
    %1227 = vector.broadcast %1226 : f32 to vector<222xf32>
    %1228 = arith.mulf %1227, %1213 : vector<222xf32>
    %1229 = arith.addf %1203, %1228 : vector<222xf32>
    %c126_280 = arith.constant 126 : index
    %1230 = memref.load %arg2[%c126_280] : memref<162xf32, #tpu.memory_space<smem>>
    %1231 = vector.broadcast %1230 : f32 to vector<222xf32>
    %1232 = arith.mulf %1231, %1213 : vector<222xf32>
    %1233 = arith.addf %1207, %1232 : vector<222xf32>
    %c153_281 = arith.constant 153 : index
    %1234 = memref.load %arg2[%c153_281] : memref<162xf32, #tpu.memory_space<smem>>
    %1235 = vector.broadcast %1234 : f32 to vector<222xf32>
    %1236 = arith.mulf %1235, %1213 : vector<222xf32>
    %1237 = arith.addf %1211, %1236 : vector<222xf32>
    %c1_282 = arith.constant 1 : index
    %c2_283 = arith.constant 2 : index
    %c1_284 = arith.constant 1 : index
    %1238 = vector.load %arg1[%c1_282, %c2_283, %c1_284] : memref<2x3x256xf32, #tpu.memory_space<vmem>>, vector<1x1x222xf32>
    %1239 = vector.shape_cast %1238 : vector<1x1x222xf32> to vector<222xf32>
    %c19_285 = arith.constant 19 : index
    %1240 = memref.load %arg2[%c19_285] : memref<162xf32, #tpu.memory_space<smem>>
    %1241 = vector.broadcast %1240 : f32 to vector<222xf32>
    %1242 = arith.mulf %1241, %1239 : vector<222xf32>
    %1243 = arith.addf %1217, %1242 : vector<222xf32>
    %c46_286 = arith.constant 46 : index
    %1244 = memref.load %arg2[%c46_286] : memref<162xf32, #tpu.memory_space<smem>>
    %1245 = vector.broadcast %1244 : f32 to vector<222xf32>
    %1246 = arith.mulf %1245, %1239 : vector<222xf32>
    %1247 = arith.addf %1221, %1246 : vector<222xf32>
    %c73_287 = arith.constant 73 : index
    %1248 = memref.load %arg2[%c73_287] : memref<162xf32, #tpu.memory_space<smem>>
    %1249 = vector.broadcast %1248 : f32 to vector<222xf32>
    %1250 = arith.mulf %1249, %1239 : vector<222xf32>
    %1251 = arith.addf %1225, %1250 : vector<222xf32>
    %c100_288 = arith.constant 100 : index
    %1252 = memref.load %arg2[%c100_288] : memref<162xf32, #tpu.memory_space<smem>>
    %1253 = vector.broadcast %1252 : f32 to vector<222xf32>
    %1254 = arith.mulf %1253, %1239 : vector<222xf32>
    %1255 = arith.addf %1229, %1254 : vector<222xf32>
    %c127_289 = arith.constant 127 : index
    %1256 = memref.load %arg2[%c127_289] : memref<162xf32, #tpu.memory_space<smem>>
    %1257 = vector.broadcast %1256 : f32 to vector<222xf32>
    %1258 = arith.mulf %1257, %1239 : vector<222xf32>
    %1259 = arith.addf %1233, %1258 : vector<222xf32>
    %c154_290 = arith.constant 154 : index
    %1260 = memref.load %arg2[%c154_290] : memref<162xf32, #tpu.memory_space<smem>>
    %1261 = vector.broadcast %1260 : f32 to vector<222xf32>
    %1262 = arith.mulf %1261, %1239 : vector<222xf32>
    %1263 = arith.addf %1237, %1262 : vector<222xf32>
    %c1_291 = arith.constant 1 : index
    %c2_292 = arith.constant 2 : index
    %c2_293 = arith.constant 2 : index
    %1264 = vector.load %arg1[%c1_291, %c2_292, %c2_293] : memref<2x3x256xf32, #tpu.memory_space<vmem>>, vector<1x1x222xf32>
    %1265 = vector.shape_cast %1264 : vector<1x1x222xf32> to vector<222xf32>
    %c20_294 = arith.constant 20 : index
    %1266 = memref.load %arg2[%c20_294] : memref<162xf32, #tpu.memory_space<smem>>
    %1267 = vector.broadcast %1266 : f32 to vector<222xf32>
    %1268 = arith.mulf %1267, %1265 : vector<222xf32>
    %1269 = arith.addf %1243, %1268 : vector<222xf32>
    %c47_295 = arith.constant 47 : index
    %1270 = memref.load %arg2[%c47_295] : memref<162xf32, #tpu.memory_space<smem>>
    %1271 = vector.broadcast %1270 : f32 to vector<222xf32>
    %1272 = arith.mulf %1271, %1265 : vector<222xf32>
    %1273 = arith.addf %1247, %1272 : vector<222xf32>
    %c74_296 = arith.constant 74 : index
    %1274 = memref.load %arg2[%c74_296] : memref<162xf32, #tpu.memory_space<smem>>
    %1275 = vector.broadcast %1274 : f32 to vector<222xf32>
    %1276 = arith.mulf %1275, %1265 : vector<222xf32>
    %1277 = arith.addf %1251, %1276 : vector<222xf32>
    %c101_297 = arith.constant 101 : index
    %1278 = memref.load %arg2[%c101_297] : memref<162xf32, #tpu.memory_space<smem>>
    %1279 = vector.broadcast %1278 : f32 to vector<222xf32>
    %1280 = arith.mulf %1279, %1265 : vector<222xf32>
    %1281 = arith.addf %1255, %1280 : vector<222xf32>
    %c128_298 = arith.constant 128 : index
    %1282 = memref.load %arg2[%c128_298] : memref<162xf32, #tpu.memory_space<smem>>
    %1283 = vector.broadcast %1282 : f32 to vector<222xf32>
    %1284 = arith.mulf %1283, %1265 : vector<222xf32>
    %1285 = arith.addf %1259, %1284 : vector<222xf32>
    %c155_299 = arith.constant 155 : index
    %1286 = memref.load %arg2[%c155_299] : memref<162xf32, #tpu.memory_space<smem>>
    %1287 = vector.broadcast %1286 : f32 to vector<222xf32>
    %1288 = arith.mulf %1287, %1265 : vector<222xf32>
    %1289 = arith.addf %1263, %1288 : vector<222xf32>
    %c1_300 = arith.constant 1 : index
    %c2_301 = arith.constant 2 : index
    %c16_302 = arith.constant 16 : index
    %1290 = vector.load %arg1[%c1_300, %c2_301, %c16_302] : memref<2x3x256xf32, #tpu.memory_space<vmem>>, vector<1x1x222xf32>
    %1291 = vector.shape_cast %1290 : vector<1x1x222xf32> to vector<222xf32>
    %c21_303 = arith.constant 21 : index
    %1292 = memref.load %arg2[%c21_303] : memref<162xf32, #tpu.memory_space<smem>>
    %1293 = vector.broadcast %1292 : f32 to vector<222xf32>
    %1294 = arith.mulf %1293, %1291 : vector<222xf32>
    %1295 = arith.addf %1269, %1294 : vector<222xf32>
    %c48_304 = arith.constant 48 : index
    %1296 = memref.load %arg2[%c48_304] : memref<162xf32, #tpu.memory_space<smem>>
    %1297 = vector.broadcast %1296 : f32 to vector<222xf32>
    %1298 = arith.mulf %1297, %1291 : vector<222xf32>
    %1299 = arith.addf %1273, %1298 : vector<222xf32>
    %c75_305 = arith.constant 75 : index
    %1300 = memref.load %arg2[%c75_305] : memref<162xf32, #tpu.memory_space<smem>>
    %1301 = vector.broadcast %1300 : f32 to vector<222xf32>
    %1302 = arith.mulf %1301, %1291 : vector<222xf32>
    %1303 = arith.addf %1277, %1302 : vector<222xf32>
    %c102_306 = arith.constant 102 : index
    %1304 = memref.load %arg2[%c102_306] : memref<162xf32, #tpu.memory_space<smem>>
    %1305 = vector.broadcast %1304 : f32 to vector<222xf32>
    %1306 = arith.mulf %1305, %1291 : vector<222xf32>
    %1307 = arith.addf %1281, %1306 : vector<222xf32>
    %c129_307 = arith.constant 129 : index
    %1308 = memref.load %arg2[%c129_307] : memref<162xf32, #tpu.memory_space<smem>>
    %1309 = vector.broadcast %1308 : f32 to vector<222xf32>
    %1310 = arith.mulf %1309, %1291 : vector<222xf32>
    %1311 = arith.addf %1285, %1310 : vector<222xf32>
    %c156_308 = arith.constant 156 : index
    %1312 = memref.load %arg2[%c156_308] : memref<162xf32, #tpu.memory_space<smem>>
    %1313 = vector.broadcast %1312 : f32 to vector<222xf32>
    %1314 = arith.mulf %1313, %1291 : vector<222xf32>
    %1315 = arith.addf %1289, %1314 : vector<222xf32>
    %c1_309 = arith.constant 1 : index
    %c2_310 = arith.constant 2 : index
    %c17_311 = arith.constant 17 : index
    %1316 = vector.load %arg1[%c1_309, %c2_310, %c17_311] : memref<2x3x256xf32, #tpu.memory_space<vmem>>, vector<1x1x222xf32>
    %1317 = vector.shape_cast %1316 : vector<1x1x222xf32> to vector<222xf32>
    %c22_312 = arith.constant 22 : index
    %1318 = memref.load %arg2[%c22_312] : memref<162xf32, #tpu.memory_space<smem>>
    %1319 = vector.broadcast %1318 : f32 to vector<222xf32>
    %1320 = arith.mulf %1319, %1317 : vector<222xf32>
    %1321 = arith.addf %1295, %1320 : vector<222xf32>
    %c49_313 = arith.constant 49 : index
    %1322 = memref.load %arg2[%c49_313] : memref<162xf32, #tpu.memory_space<smem>>
    %1323 = vector.broadcast %1322 : f32 to vector<222xf32>
    %1324 = arith.mulf %1323, %1317 : vector<222xf32>
    %1325 = arith.addf %1299, %1324 : vector<222xf32>
    %c76_314 = arith.constant 76 : index
    %1326 = memref.load %arg2[%c76_314] : memref<162xf32, #tpu.memory_space<smem>>
    %1327 = vector.broadcast %1326 : f32 to vector<222xf32>
    %1328 = arith.mulf %1327, %1317 : vector<222xf32>
    %1329 = arith.addf %1303, %1328 : vector<222xf32>
    %c103_315 = arith.constant 103 : index
    %1330 = memref.load %arg2[%c103_315] : memref<162xf32, #tpu.memory_space<smem>>
    %1331 = vector.broadcast %1330 : f32 to vector<222xf32>
    %1332 = arith.mulf %1331, %1317 : vector<222xf32>
    %1333 = arith.addf %1307, %1332 : vector<222xf32>
    %c130_316 = arith.constant 130 : index
    %1334 = memref.load %arg2[%c130_316] : memref<162xf32, #tpu.memory_space<smem>>
    %1335 = vector.broadcast %1334 : f32 to vector<222xf32>
    %1336 = arith.mulf %1335, %1317 : vector<222xf32>
    %1337 = arith.addf %1311, %1336 : vector<222xf32>
    %c157_317 = arith.constant 157 : index
    %1338 = memref.load %arg2[%c157_317] : memref<162xf32, #tpu.memory_space<smem>>
    %1339 = vector.broadcast %1338 : f32 to vector<222xf32>
    %1340 = arith.mulf %1339, %1317 : vector<222xf32>
    %1341 = arith.addf %1315, %1340 : vector<222xf32>
    %c1_318 = arith.constant 1 : index
    %c2_319 = arith.constant 2 : index
    %c18_320 = arith.constant 18 : index
    %1342 = vector.load %arg1[%c1_318, %c2_319, %c18_320] : memref<2x3x256xf32, #tpu.memory_space<vmem>>, vector<1x1x222xf32>
    %1343 = vector.shape_cast %1342 : vector<1x1x222xf32> to vector<222xf32>
    %c23_321 = arith.constant 23 : index
    %1344 = memref.load %arg2[%c23_321] : memref<162xf32, #tpu.memory_space<smem>>
    %1345 = vector.broadcast %1344 : f32 to vector<222xf32>
    %1346 = arith.mulf %1345, %1343 : vector<222xf32>
    %1347 = arith.addf %1321, %1346 : vector<222xf32>
    %c50_322 = arith.constant 50 : index
    %1348 = memref.load %arg2[%c50_322] : memref<162xf32, #tpu.memory_space<smem>>
    %1349 = vector.broadcast %1348 : f32 to vector<222xf32>
    %1350 = arith.mulf %1349, %1343 : vector<222xf32>
    %1351 = arith.addf %1325, %1350 : vector<222xf32>
    %c77_323 = arith.constant 77 : index
    %1352 = memref.load %arg2[%c77_323] : memref<162xf32, #tpu.memory_space<smem>>
    %1353 = vector.broadcast %1352 : f32 to vector<222xf32>
    %1354 = arith.mulf %1353, %1343 : vector<222xf32>
    %1355 = arith.addf %1329, %1354 : vector<222xf32>
    %c104_324 = arith.constant 104 : index
    %1356 = memref.load %arg2[%c104_324] : memref<162xf32, #tpu.memory_space<smem>>
    %1357 = vector.broadcast %1356 : f32 to vector<222xf32>
    %1358 = arith.mulf %1357, %1343 : vector<222xf32>
    %1359 = arith.addf %1333, %1358 : vector<222xf32>
    %c131_325 = arith.constant 131 : index
    %1360 = memref.load %arg2[%c131_325] : memref<162xf32, #tpu.memory_space<smem>>
    %1361 = vector.broadcast %1360 : f32 to vector<222xf32>
    %1362 = arith.mulf %1361, %1343 : vector<222xf32>
    %1363 = arith.addf %1337, %1362 : vector<222xf32>
    %c158_326 = arith.constant 158 : index
    %1364 = memref.load %arg2[%c158_326] : memref<162xf32, #tpu.memory_space<smem>>
    %1365 = vector.broadcast %1364 : f32 to vector<222xf32>
    %1366 = arith.mulf %1365, %1343 : vector<222xf32>
    %1367 = arith.addf %1341, %1366 : vector<222xf32>
    %c1_327 = arith.constant 1 : index
    %c2_328 = arith.constant 2 : index
    %c32_329 = arith.constant 32 : index
    %1368 = vector.load %arg1[%c1_327, %c2_328, %c32_329] : memref<2x3x256xf32, #tpu.memory_space<vmem>>, vector<1x1x222xf32>
    %1369 = vector.shape_cast %1368 : vector<1x1x222xf32> to vector<222xf32>
    %c24_330 = arith.constant 24 : index
    %1370 = memref.load %arg2[%c24_330] : memref<162xf32, #tpu.memory_space<smem>>
    %1371 = vector.broadcast %1370 : f32 to vector<222xf32>
    %1372 = arith.mulf %1371, %1369 : vector<222xf32>
    %1373 = arith.addf %1347, %1372 : vector<222xf32>
    %c51_331 = arith.constant 51 : index
    %1374 = memref.load %arg2[%c51_331] : memref<162xf32, #tpu.memory_space<smem>>
    %1375 = vector.broadcast %1374 : f32 to vector<222xf32>
    %1376 = arith.mulf %1375, %1369 : vector<222xf32>
    %1377 = arith.addf %1351, %1376 : vector<222xf32>
    %c78_332 = arith.constant 78 : index
    %1378 = memref.load %arg2[%c78_332] : memref<162xf32, #tpu.memory_space<smem>>
    %1379 = vector.broadcast %1378 : f32 to vector<222xf32>
    %1380 = arith.mulf %1379, %1369 : vector<222xf32>
    %1381 = arith.addf %1355, %1380 : vector<222xf32>
    %c105_333 = arith.constant 105 : index
    %1382 = memref.load %arg2[%c105_333] : memref<162xf32, #tpu.memory_space<smem>>
    %1383 = vector.broadcast %1382 : f32 to vector<222xf32>
    %1384 = arith.mulf %1383, %1369 : vector<222xf32>
    %1385 = arith.addf %1359, %1384 : vector<222xf32>
    %c132_334 = arith.constant 132 : index
    %1386 = memref.load %arg2[%c132_334] : memref<162xf32, #tpu.memory_space<smem>>
    %1387 = vector.broadcast %1386 : f32 to vector<222xf32>
    %1388 = arith.mulf %1387, %1369 : vector<222xf32>
    %1389 = arith.addf %1363, %1388 : vector<222xf32>
    %c159_335 = arith.constant 159 : index
    %1390 = memref.load %arg2[%c159_335] : memref<162xf32, #tpu.memory_space<smem>>
    %1391 = vector.broadcast %1390 : f32 to vector<222xf32>
    %1392 = arith.mulf %1391, %1369 : vector<222xf32>
    %1393 = arith.addf %1367, %1392 : vector<222xf32>
    %c1_336 = arith.constant 1 : index
    %c2_337 = arith.constant 2 : index
    %c33_338 = arith.constant 33 : index
    %1394 = vector.load %arg1[%c1_336, %c2_337, %c33_338] : memref<2x3x256xf32, #tpu.memory_space<vmem>>, vector<1x1x222xf32>
    %1395 = vector.shape_cast %1394 : vector<1x1x222xf32> to vector<222xf32>
    %c25_339 = arith.constant 25 : index
    %1396 = memref.load %arg2[%c25_339] : memref<162xf32, #tpu.memory_space<smem>>
    %1397 = vector.broadcast %1396 : f32 to vector<222xf32>
    %1398 = arith.mulf %1397, %1395 : vector<222xf32>
    %1399 = arith.addf %1373, %1398 : vector<222xf32>
    %c52_340 = arith.constant 52 : index
    %1400 = memref.load %arg2[%c52_340] : memref<162xf32, #tpu.memory_space<smem>>
    %1401 = vector.broadcast %1400 : f32 to vector<222xf32>
    %1402 = arith.mulf %1401, %1395 : vector<222xf32>
    %1403 = arith.addf %1377, %1402 : vector<222xf32>
    %c79_341 = arith.constant 79 : index
    %1404 = memref.load %arg2[%c79_341] : memref<162xf32, #tpu.memory_space<smem>>
    %1405 = vector.broadcast %1404 : f32 to vector<222xf32>
    %1406 = arith.mulf %1405, %1395 : vector<222xf32>
    %1407 = arith.addf %1381, %1406 : vector<222xf32>
    %c106_342 = arith.constant 106 : index
    %1408 = memref.load %arg2[%c106_342] : memref<162xf32, #tpu.memory_space<smem>>
    %1409 = vector.broadcast %1408 : f32 to vector<222xf32>
    %1410 = arith.mulf %1409, %1395 : vector<222xf32>
    %1411 = arith.addf %1385, %1410 : vector<222xf32>
    %c133_343 = arith.constant 133 : index
    %1412 = memref.load %arg2[%c133_343] : memref<162xf32, #tpu.memory_space<smem>>
    %1413 = vector.broadcast %1412 : f32 to vector<222xf32>
    %1414 = arith.mulf %1413, %1395 : vector<222xf32>
    %1415 = arith.addf %1389, %1414 : vector<222xf32>
    %c160_344 = arith.constant 160 : index
    %1416 = memref.load %arg2[%c160_344] : memref<162xf32, #tpu.memory_space<smem>>
    %1417 = vector.broadcast %1416 : f32 to vector<222xf32>
    %1418 = arith.mulf %1417, %1395 : vector<222xf32>
    %1419 = arith.addf %1393, %1418 : vector<222xf32>
    %c1_345 = arith.constant 1 : index
    %c2_346 = arith.constant 2 : index
    %c34_347 = arith.constant 34 : index
    %1420 = vector.load %arg1[%c1_345, %c2_346, %c34_347] : memref<2x3x256xf32, #tpu.memory_space<vmem>>, vector<1x1x222xf32>
    %1421 = vector.shape_cast %1420 : vector<1x1x222xf32> to vector<222xf32>
    %c26_348 = arith.constant 26 : index
    %1422 = memref.load %arg2[%c26_348] : memref<162xf32, #tpu.memory_space<smem>>
    %1423 = vector.broadcast %1422 : f32 to vector<222xf32>
    %1424 = arith.mulf %1423, %1421 : vector<222xf32>
    %1425 = arith.addf %1399, %1424 : vector<222xf32>
    %c53_349 = arith.constant 53 : index
    %1426 = memref.load %arg2[%c53_349] : memref<162xf32, #tpu.memory_space<smem>>
    %1427 = vector.broadcast %1426 : f32 to vector<222xf32>
    %1428 = arith.mulf %1427, %1421 : vector<222xf32>
    %1429 = arith.addf %1403, %1428 : vector<222xf32>
    %c80_350 = arith.constant 80 : index
    %1430 = memref.load %arg2[%c80_350] : memref<162xf32, #tpu.memory_space<smem>>
    %1431 = vector.broadcast %1430 : f32 to vector<222xf32>
    %1432 = arith.mulf %1431, %1421 : vector<222xf32>
    %1433 = arith.addf %1407, %1432 : vector<222xf32>
    %c107_351 = arith.constant 107 : index
    %1434 = memref.load %arg2[%c107_351] : memref<162xf32, #tpu.memory_space<smem>>
    %1435 = vector.broadcast %1434 : f32 to vector<222xf32>
    %1436 = arith.mulf %1435, %1421 : vector<222xf32>
    %1437 = arith.addf %1411, %1436 : vector<222xf32>
    %c134_352 = arith.constant 134 : index
    %1438 = memref.load %arg2[%c134_352] : memref<162xf32, #tpu.memory_space<smem>>
    %1439 = vector.broadcast %1438 : f32 to vector<222xf32>
    %1440 = arith.mulf %1439, %1421 : vector<222xf32>
    %1441 = arith.addf %1415, %1440 : vector<222xf32>
    %c161_353 = arith.constant 161 : index
    %1442 = memref.load %arg2[%c161_353] : memref<162xf32, #tpu.memory_space<smem>>
    %1443 = vector.broadcast %1442 : f32 to vector<222xf32>
    %1444 = arith.mulf %1443, %1421 : vector<222xf32>
    %1445 = arith.addf %1419, %1444 : vector<222xf32>
    %c1_354 = arith.constant 1 : index
    %c0_355 = arith.constant 0 : index
    %c0_356 = arith.constant 0 : index
    %1446 = vector.load %arg4[%c1_354, %c0_355, %c0_356] : memref<2x6x224xf32, #tpu.memory_space<vmem>>, vector<1x1x222xf32>
    %1447 = vector.shape_cast %1446 : vector<1x1x222xf32> to vector<222xf32>
    %1448 = vector.shape_cast %1425 : vector<222xf32> to vector<1x1x222xf32>
    tpu.vector_store %arg4[%c1_354, %c0_355, %c0_356], %1448 {strides = array<i32>} : memref<2x6x224xf32, #tpu.memory_space<vmem>>, vector<1x1x222xf32>,
    %c1_357 = arith.constant 1 : index
    %c1_358 = arith.constant 1 : index
    %c0_359 = arith.constant 0 : index
    %1449 = vector.load %arg4[%c1_357, %c1_358, %c0_359] : memref<2x6x224xf32, #tpu.memory_space<vmem>>, vector<1x1x222xf32>
    %1450 = vector.shape_cast %1449 : vector<1x1x222xf32> to vector<222xf32>
    %1451 = vector.shape_cast %1429 : vector<222xf32> to vector<1x1x222xf32>
    tpu.vector_store %arg4[%c1_357, %c1_358, %c0_359], %1451 {strides = array<i32>} : memref<2x6x224xf32, #tpu.memory_space<vmem>>, vector<1x1x222xf32>,
    %c1_360 = arith.constant 1 : index
    %c2_361 = arith.constant 2 : index
    %c0_362 = arith.constant 0 : index
    %1452 = vector.load %arg4[%c1_360, %c2_361, %c0_362] : memref<2x6x224xf32, #tpu.memory_space<vmem>>, vector<1x1x222xf32>
    %1453 = vector.shape_cast %1452 : vector<1x1x222xf32> to vector<222xf32>
    %1454 = vector.shape_cast %1433 : vector<222xf32> to vector<1x1x222xf32>
    tpu.vector_store %arg4[%c1_360, %c2_361, %c0_362], %1454 {strides = array<i32>} : memref<2x6x224xf32, #tpu.memory_space<vmem>>, vector<1x1x222xf32>,
    %c1_363 = arith.constant 1 : index
    %c3_364 = arith.constant 3 : index
    %c0_365 = arith.constant 0 : index
    %1455 = vector.load %arg4[%c1_363, %c3_364, %c0_365] : memref<2x6x224xf32, #tpu.memory_space<vmem>>, vector<1x1x222xf32>
    %1456 = vector.shape_cast %1455 : vector<1x1x222xf32> to vector<222xf32>
    %1457 = vector.shape_cast %1437 : vector<222xf32> to vector<1x1x222xf32>
    tpu.vector_store %arg4[%c1_363, %c3_364, %c0_365], %1457 {strides = array<i32>} : memref<2x6x224xf32, #tpu.memory_space<vmem>>, vector<1x1x222xf32>,
    %c1_366 = arith.constant 1 : index
    %c4_367 = arith.constant 4 : index
    %c0_368 = arith.constant 0 : index
    %1458 = vector.load %arg4[%c1_366, %c4_367, %c0_368] : memref<2x6x224xf32, #tpu.memory_space<vmem>>, vector<1x1x222xf32>
    %1459 = vector.shape_cast %1458 : vector<1x1x222xf32> to vector<222xf32>
    %1460 = vector.shape_cast %1441 : vector<222xf32> to vector<1x1x222xf32>
    tpu.vector_store %arg4[%c1_366, %c4_367, %c0_368], %1460 {strides = array<i32>} : memref<2x6x224xf32, #tpu.memory_space<vmem>>, vector<1x1x222xf32>,
    %c1_369 = arith.constant 1 : index
    %c5_370 = arith.constant 5 : index
    %c0_371 = arith.constant 0 : index
    %1461 = vector.load %arg4[%c1_369, %c5_370, %c0_371] : memref<2x6x224xf32, #tpu.memory_space<vmem>>, vector<1x1x222xf32>
    %1462 = vector.shape_cast %1461 : vector<1x1x222xf32> to vector<222xf32>
    %1463 = vector.shape_cast %1445 : vector<222xf32> to vector<1x1x222xf32>
    tpu.vector_store %arg4[%c1_369, %c5_370, %c0_371], %1463 {strides = array<i32>} : memref<2x6x224xf32, #tpu.memory_space<vmem>>, vector<1x1x222xf32>,
    return
  }
  func.func @transform_0(%arg0: i32) -> (i32, i32, i32) {
    %c0_i32 = arith.constant 0 : i32
    %c0_i32_0 = arith.constant 0 : i32
    %c0_i32_1 = arith.constant 0 : i32
    %c0_i32_2 = arith.constant 0 : i32
    return %c0_i32, %c0_i32_0, %c0_i32_1 : i32, i32, i32
  }
  func.func @transform_1(%arg0: i32) -> i32 {
    %c0_i32 = arith.constant 0 : i32
    %c0_i32_0 = arith.constant 0 : i32
    return %c0_i32 : i32
  }
  func.func @transform_2(%arg0: i32) -> i32 {
    %c0_i32 = arith.constant 0 : i32
    %c0_i32_0 = arith.constant 0 : i32
    return %c0_i32 : i32
  }
  func.func @transform_3(%arg0: i32) -> (i32, i32, i32) {
    %c0_i32 = arith.constant 0 : i32
    %c0_i32_0 = arith.constant 0 : i32
    %c0_i32_1 = arith.constant 0 : i32
    %c0_i32_2 = arith.constant 0 : i32
    return %c0_i32, %c0_i32_0, %c0_i32_1 : i32, i32, i32
  }
}

</mosaic_0001>

<bundles_post_ra>
// kernel: tpu_custom_call.1
= control target key start
LH: loop header
LB: loop body
LE: loop exit
PB: predicated region body
PF: predicated region fallthrough
CT: control target
= control target key end

     0   :  { %8 = vsyncpa [#allocation3], 0  ;;  %s6336_s0 = inlined_call_operand.vmem [shape: f32[2,3,256], index: 0, kind: input, shape index: {}]   ;;  %s6337_s1 = inlined_call_operand.vmem [shape: f32[162], index: 1, kind: input, shape index: {}]   ;;  %s6338_s2 = inlined_call_operand.vmem [shape: f32[6], index: 2, kind: input, shape index: {}]   ;;  %s6339_s3 = inlined_call_operand.vmem [shape: f32[2,6,224], index: 3, kind: output, shape index: {}]  }
   0x1   :  { %s18_s14 = sshll.u32 %s6337_s1, 4  ;;  %s19_s14 = int_to_ptr.vmem [resolvable:$true] %s18_s14 }
   0x2   :  { %9 = vsyncpa [#allocation5], 0  ;;  %s28_s17 = sshll.u32 %s6338_s2, 4  ;;  %s3520_s18 = scalar_lea.vmem %s19_s14, 32  ;;  %s29_s17 = int_to_ptr.vmem [resolvable:$true] %s28_s17 }
   0x3   :  { %p3521_p0 = scmp.ne.s32.totalorder %s19_s14, %s3520_s18  ;;  %p3525_p1 = scmp.lt.s32.totalorder %s19_s14, %s19_s14 }
   0x4   :  { %p3526_p2 = scmp.lt.s32.totalorder %s3520_s18, %s3520_s18 }
   0x6   :  { %p3527_p3 = por %p3526_p2, %p3525_p1 }
   0x8   :  { %p3528_p4 = pnand %p3527_p3, %p3521_p0 }
   0xa   :  { %3531 = shalt.err (!%p3528_p4)
}
   0xb   :  { %s3548_s19 = smov [#allocation2]   ;;  %s3532_s20 = scalar_lea.vmem %s29_s17, 16 }
   0xc   :  { %21 = dma.vmem_to_smem %s19_s14, 32, %s3548_s19, [#allocation3]  }
   0xd   :  { %p3533_p5 = scmp.ne.s32.totalorder %s29_s17, %s3532_s20  ;;  %p3537_p6 = scmp.lt.s32.totalorder %s29_s17, %s29_s17 }
   0xe   :  { %p3538_p7 = scmp.lt.s32.totalorder %s3532_s20, %s3532_s20 }
  0x10   :  { %p3539_p8 = por %p3538_p7, %p3537_p6 }
  0x12   :  { %p3540_p9 = pnand %p3539_p8, %p3533_p5 }
  0x14   :  { %3543 = shalt.err (!%p3540_p9)
}
  0x15   :  { %s3549_s1 = smov [#allocation4]  }
  0x16   :  { %31 = dma.vmem_to_smem %s29_s17, 16, %s3549_s1, [#allocation5]  }
  0x17   :  { %3544 = dma.done.wait [#allocation3], 32  }
  0x18   :  { %3545 = vsyncadd [#allocation3], 4294967264 }
  0x19   :  { %3546 = dma.done.wait [#allocation5], 16  }
  0x1a   :  { %3547 = vsyncadd [#allocation5], 4294967280 }
  0x1b   :  { %38 = sfence }
  0x1c   :  { %s3170_s2 = sld [smem:[#allocation2 + $0x37]]  ;;  %s3168_s21 = sld [smem:[#allocation2 + $0x1]]  ;;  %v3587_v0 = vld [vmem:[%s6336_s0] ss:$4 sm:$0x3]  ;;  %vm83_vm0 = vcmask 1039360  }
  0x1d   :  { %s3171_s22 = sld [smem:[#allocation2 + $0x52]]  ;;  %s3169_s23 = sld [smem:[#allocation2 + $0x1c]]  ;;  %vm144_vm1 = vcmask 1031168   ;;  %vm205_vm2 = vcmask 916480   ;;  %vm266_vm3 = vcmask 908288   ;;  %vm327_vm4 = vcmask 900096  }
  0x1e   :  { %s3173_s24 = sld [smem:[#allocation2 + $0x88]]  ;;  %s3172_s25 = sld [smem:[#allocation2 + $0x6d]]  ;;  %vm388_vm5 = vcmask 785408   ;;  %vm449_vm6 = vcmask 777216   ;;  %vm510_vm7 = vcmask 769024  }
  0x1f   :  { %s3175_s28 = sld [smem:[#allocation2 + $0x1d]]  ;;  %s3174_s29 = sld [smem:[#allocation2 + $0x2]] }
  0x20   :  { %s3550_s30 = smov 127   ;;  %s3177_s4 = sld [smem:[#allocation2 + $0x53]] }
  0x21   :  { %s3176_s5 = sld [smem:[#allocation2 + $0x38]]  ;;  %s3179_s6 = sld [smem:[#allocation2 + $0x89]] }
  0x22   :  { %v98_v1 = vstv %s3170_s2  ;;  %v77_v3 = vstv %s3168_s21  ;;  %s3178_s7 = sld [smem:[#allocation2 + $0x6e]]  ;;  %s3180_s9 = sld [smem:[#allocation2 + $0x3]] }
  0x23   :  { %v99_v2 = vmul.f32 %v98_v1, %v3587_v0  ;;  %v108_v4 = vstv %s3171_s22  ;;  %v78_v5 = vmul.f32 %v77_v3, %v3587_v0  ;;  %v88_v6 = vstv %s3169_s23  ;;  %s3181_s8 = sld [smem:[#allocation2 + $0x1e]]  ;;  %s3551_s10 = smov 126  }
  0x24   :  { %v109_v7 = vmul.f32 %v108_v4, %v3587_v0  ;;  %v89_v8 = vmul.f32 %v88_v6, %v3587_v0  ;;  %v128_v9 = vstv %s3173_s24  ;;  %v118_v10 = vstv %s3172_s25  ;;  %s3183_s11 = sld [smem:[#allocation2 + $0x54]]  ;;  %s3182_s12 = sld [smem:[#allocation2 + $0x39]] }
  0x25   :  { %101 = vrot.lane.b32.xlu1 %v99_v2, %s3550_s30  ;;  %80 = vrot.lane.b32.xlu0 %v78_v5, %s3550_s30  ;;  %v129_v11 = vmul.f32 %v128_v9, %v3587_v0  ;;  %v119_v12 = vmul.f32 %v118_v10, %v3587_v0  ;;  %v149_v13 = vstv %s3175_s28  ;;  %v138_v14 = vstv %s3174_s29  ;;  %s3185_s13 = sld [smem:[#allocation2 + $0x8a]]  ;;  %s3184_s14 = sld [smem:[#allocation2 + $0x6f]] }
  0x26   :  { %v150_v15 = vmul.f32 %v149_v13, %v3587_v0  ;;  %v139_v16 = vmul.f32 %v138_v14, %v3587_v0  ;;  %v169_v17 = vstv %s3177_s4  ;;  %s3187_s15 = sld [smem:[#allocation2 + $0x1f]]  ;;  %s3186_s16 = sld [smem:[#allocation2 + $0x4]] }
  0x27   :  { %v159_v18 = vstv %s3176_s5  ;;  %v170_v19 = vmul.f32 %v169_v17, %v3587_v0  ;;  %v189_v21 = vstv %s3179_s6  ;;  %s3552_s17 = smov 112   ;;  %s3189_s18 = sld [smem:[#allocation2 + $0x55]] }
  0x28   :  { %v160_v20 = vmul.f32 %v159_v18, %v3587_v0  ;;  %v179_v22 = vstv %s3178_s7  ;;  %v190_v23 = vmul.f32 %v189_v21, %v3587_v0  ;;  %v199_v26 = vstv %s3180_s9  ;;  %s3188_s19 = sld [smem:[#allocation2 + $0x3a]]  ;;  %s3191_s20 = sld [smem:[#allocation2 + $0x8b]] }
  0x29   :  { %111 = vrot.lane.b32.xlu1 %v109_v7, %s3550_s30  ;;  %91 = vrot.lane.b32.xlu0 %v89_v8, %s3550_s30  ;;  %v180_v24 = vmul.f32 %v179_v22, %v3587_v0  ;;  %v210_v25 = vstv %s3181_s8  ;;  %v200_v28 = vmul.f32 %v199_v26, %v3587_v0  ;;  %s3190_s1 = sld [smem:[#allocation2 + $0x70]]  ;;  %s3192_s21 = sld [smem:[#allocation2 + $0x5]] }
  0x2a   :  { %v211_v27 = vmul.f32 %v210_v25, %v3587_v0  ;;  %v230_v29 = vstv %s3183_s11  ;;  %v220_v30 = vstv %s3182_s12  ;;  %s3193_s2 = sld [smem:[#allocation2 + $0x20]]  ;;  %s3553_s22 = smov 111  }
  0x2b   :  { %v231_v31 = vmul.f32 %v230_v29, %v3587_v0  ;;  %v221_v32 = vmul.f32 %v220_v30, %v3587_v0  ;;  %v250_v33 = vstv %s3185_s13  ;;  %v240_v34 = vstv %s3184_s14  ;;  %s3195_s23 = sld [smem:[#allocation2 + $0x56]]  ;;  %s3194_s24 = sld [smem:[#allocation2 + $0x3b]] }
  0x2c   :  { %v251_v35 = vmul.f32 %v250_v33, %v3587_v0  ;;  %v241_v36 = vmul.f32 %v240_v34, %v3587_v0  ;;  %v271_v37 = vstv %s3187_s15  ;;  %v260_v38 = vstv %s3186_s16  ;;  %s3197_s25 = sld [smem:[#allocation2 + $0x8c]]  ;;  %s3196_s26 = sld [smem:[#allocation2 + $0x71]]  ;;  %v3686_v34 = vld [vmem:[%s6336_s0 + $0x1] ss:$4 sm:$0x3] }
  0x2d   :  { %131 = vrot.lane.b32.xlu1 %v129_v11, %s3550_s30  ;;  %121 = vrot.lane.b32.xlu0 %v119_v12, %s3550_s30  ;;  %v272_v39 = vmul.f32 %v271_v37, %v3587_v0  ;;  %v261_v40 = vmul.f32 %v260_v38, %v3587_v0  ;;  %v291_v41 = vstv %s3189_s18  ;;  %s3199_s27 = sld [smem:[#allocation2 + $0x21]]  ;;  %s3198_s28 = sld [smem:[#allocation2 + $0x6]] }
  0x2e   :  { %v281_v42 = vstv %s3188_s19  ;;  %v292_v43 = vmul.f32 %v291_v41, %v3587_v0  ;;  %v311_v45 = vstv %s3191_s20  ;;  %s6373_s29 = smov 110   ;;  %s3201_s4 = sld [smem:[#allocation2 + $0x57]] }
  0x2f   :  { %v282_v44 = vmul.f32 %v281_v42, %v3587_v0  ;;  %v301_v46 = vstv %s3190_s1  ;;  %v312_v47 = vmul.f32 %v311_v45, %v3587_v0  ;;  %v321_v50 = vstv %s3192_s21  ;;  %s3200_s5 = sld [smem:[#allocation2 + $0x3c]]  ;;  %s3203_s6 = sld [smem:[#allocation2 + $0x8d]] }
  0x30   :  { %v302_v48 = vmul.f32 %v301_v46, %v3587_v0  ;;  %v332_v49 = vstv %s3193_s2  ;;  %v322_v52 = vmul.f32 %v321_v50, %v3587_v0  ;;  %s3202_s7 = sld [smem:[#allocation2 + $0x72]]  ;;  %s3204_s9 = sld [smem:[#allocation2 + $0x7]] }
  0x31   :  { %152 = vrot.lane.b32.xlu1 %v150_v15, %s3551_s10  ;;  %141 = vrot.lane.b32.xlu0 %v139_v16, %s3551_s10  ;;  %v333_v51 = vmul.f32 %v332_v49, %v3587_v0  ;;  %v352_v53 = vstv %s3195_s23  ;;  %v342_v54 = vstv %s3194_s24  ;;  %s3205_s8 = sld [smem:[#allocation2 + $0x22]]  ;;  %s3555_s11 = smov 96  }
  0x32   :  { %v353_v55 = vmul.f32 %v352_v53, %v3587_v0  ;;  %v343_v56 = vmul.f32 %v342_v54, %v3587_v0  ;;  %v372_v57 = vstv %s3197_s25  ;;  %v362_v58 = vstv %s3196_s26  ;;  %s3207_s12 = sld [smem:[#allocation2 + $0x58]]  ;;  %s3206_s13 = sld [smem:[#allocation2 + $0x3d]] }
  0x33   :  { %v373_v59 = vmul.f32 %v372_v57, %v3587_v0  ;;  %v363_v60 = vmul.f32 %v362_v58, %v3587_v0  ;;  %v393_v61 = vstv %s3199_s27  ;;  %v382_v62 = vstv %s3198_s28  ;;  %s3209_s14 = sld [smem:[#allocation2 + $0x8e]]  ;;  %s3208_s15 = sld [smem:[#allocation2 + $0x73]] }
  0x34   :  { %v394_v63 = vmul.f32 %v393_v61, %v3587_v0  ;;  %v383_v1 = vmul.f32 %v382_v62, %v3587_v0  ;;  %v413_v2 = vstv %s3201_s4  ;;  %s3211_s16 = sld [smem:[#allocation2 + $0x23]]  ;;  %s3210_s18 = sld [smem:[#allocation2 + $0x8]] }
  0x35   :  { %172 = vrot.lane.b32.xlu1 %v170_v19, %s3551_s10  ;;  %162 = vrot.lane.b32.xlu0 %v160_v20, %s3551_s10  ;;  %v403_v3 = vstv %s3200_s5  ;;  %v414_v4 = vmul.f32 %v413_v2, %v3587_v0  ;;  %v433_v6 = vstv %s3203_s6  ;;  %s3556_s19 = smov 95   ;;  %s3213_s20 = sld [smem:[#allocation2 + $0x59]] }
  0x36   :  { %v404_v5 = vmul.f32 %v403_v3, %v3587_v0  ;;  %v423_v7 = vstv %s3202_s7  ;;  %v434_v8 = vmul.f32 %v433_v6, %v3587_v0  ;;  %v443_v11 = vstv %s3204_s9  ;;  %s3212_s1 = sld [smem:[#allocation2 + $0x3e]]  ;;  %s3215_s2 = sld [smem:[#allocation2 + $0x8f]] }
  0x37   :  { %v424_v9 = vmul.f32 %v423_v7, %v3587_v0  ;;  %v454_v10 = vstv %s3205_s8  ;;  %v444_v13 = vmul.f32 %v443_v11, %v3587_v0  ;;  %s3214_s21 = sld [smem:[#allocation2 + $0x74]]  ;;  %s3224_s23 = sld [smem:[#allocation2 + $0x25]] }
  0x38   :  { %v455_v12 = vmul.f32 %v454_v10, %v3587_v0  ;;  %v474_v14 = vstv %s3207_s12  ;;  %v464_v15 = vstv %s3206_s13  ;;  %s3223_s24 = sld [smem:[#allocation2 + $0xa]]  ;;  %s3557_s25 = smov 94  }
  0x39   :  { %192 = vrot.lane.b32.xlu1 %v190_v23, %s3551_s10  ;;  %182 = vrot.lane.b32.xlu0 %v180_v24, %s3551_s10  ;;  %v475_v16 = vmul.f32 %v474_v14, %v3587_v0  ;;  %v465_v17 = vmul.f32 %v464_v15, %v3587_v0  ;;  %v494_v18 = vstv %s3209_s14  ;;  %v484_v19 = vstv %s3208_s15  ;;  %s3226_s26 = sld [smem:[#allocation2 + $0x5b]]  ;;  %s3225_s27 = sld [smem:[#allocation2 + $0x40]] }
  0x3a   :  { %v495_v20 = vmul.f32 %v494_v18, %v3587_v0  ;;  %v485_v21 = vmul.f32 %v484_v19, %v3587_v0  ;;  %v515_v22 = vstv %s3211_s16  ;;  %v504_v23 = vstv %s3210_s18  ;;  %s3228_s5 = sld [smem:[#allocation2 + $0x91]]  ;;  %s3227_s6 = sld [smem:[#allocation2 + $0x76]] }
  0x3b   :  { %v516_v24 = vmul.f32 %v515_v22, %v3587_v0  ;;  %v505_v25 = vmul.f32 %v504_v23, %v3587_v0  ;;  %v535_v26 = vstv %s3213_s20  ;;  %s3230_s7 = sld [smem:[#allocation2 + $0x26]]  ;;  %s3229_s8 = sld [smem:[#allocation2 + $0xb]] }
  0x3c   :  { %v555_v30 = vstv %s3215_s2  ;;  %s3232_s9 = sld [smem:[#allocation2 + $0x5c]]  ;;  %s3231_s12 = sld [smem:[#allocation2 + $0x41]] }
  0x3d   :  { %213 = vrot.lane.b32.xlu1 %v211_v27, %s3552_s17  ;;  %202 = vrot.lane.b32.xlu0 %v200_v28, %s3552_s17  ;;  %v525_v27 = vstv %s3212_s1  ;;  %v536_v28 = vmul.f32 %v535_v26, %v3587_v0  ;;  %s3234_s13 = sld [smem:[#allocation2 + $0x92]]  ;;  %s3233_s14 = sld [smem:[#allocation2 + $0x77]] }
  0x3e   :  { %v526_v29 = vmul.f32 %v525_v27, %v3587_v0  ;;  %s3236_s15 = sld [smem:[#allocation2 + $0x27]]  ;;  %s3235_s16 = sld [smem:[#allocation2 + $0xc]] }
  0x3f   :  { %s3238_s18 = sld [smem:[#allocation2 + $0x5d]]  ;;  %s3237_s20 = sld [smem:[#allocation2 + $0x42]] }
  0x40   :  { %s3240_s1 = sld [smem:[#allocation2 + $0x93]]  ;;  %s3239_s2 = sld [smem:[#allocation2 + $0x78]] }
  0x41   :  { %233 = vrot.lane.b32.xlu1 %v231_v31, %s3552_s17  ;;  %223 = vrot.lane.b32.xlu0 %v221_v32, %s3552_s17  ;;  %v545_v31 = vstv %s3214_s21  ;;  %v556_v32 = vmul.f32 %v555_v30, %v3587_v0  ;;  %s3242_s21 = sld [smem:[#allocation2 + $0x28]]  ;;  %s3245_s28 = sld [smem:[#allocation2 + $0x79]] }
  0x42   :  { %v546_v33 = vmul.f32 %v545_v31, %v3587_v0  ;;  %s3744_s4 = sld [smem:[#allocation2 + $0x29]] }
  0x44   :  { %v711_v61 = vstv %s3235_s16  ;;  %s3788_s16 = sld [smem:[#allocation4]] }
  0x45   :  { %253 = vrot.lane.b32.xlu1 %v251_v35, %s3552_s17  ;;  %243 = vrot.lane.b32.xlu0 %v241_v36, %s3552_s17  ;;  %v601_v35 = vstv %s3224_s23  ;;  %v591_v36 = vstv %s3223_s24  ;;  %s3241_s23 = sld [smem:[#allocation2 + $0xd]]  ;;  %s3244_s24 = sld [smem:[#allocation2 + $0x5e]] }
  0x46   :  { %v602_v37 = vmul.f32 %v3686_v34, %v601_v35  ;;  %v592_v38 = vmul.f32 %v3686_v34, %v591_v36  ;;  %v741_v2 = vstv %s3238_s18  ;;  %v751_v10 = vstv %s3239_s2  ;;  %s3793_s18 = sld [smem:[#allocation2 + $0x2a]]  ;;  %s3802_s2 = sld [smem:[#allocation2 + $0x1b]] }
  0x47   :  { %v742_v6 = vmul.f32 %v3686_v34, %v741_v2  ;;  %v781_v14 = vstv %s3242_s21  ;;  %s3804_s21 = sld [smem:[#allocation4 + $0x1]] }
  0x48   :  { %v782_v18 = vmul.f32 %v3686_v34, %v781_v14 }
  0x49   :  { %274 = vrot.lane.b32.xlu1 %v272_v39, %s3553_s22  ;;  %263 = vrot.lane.b32.xlu0 %v261_v40, %s3553_s22  ;;  %v621_v39 = vstv %s3226_s26  ;;  %v611_v40 = vstv %s3225_s27  ;;  %s3243_s26 = sld [smem:[#allocation2 + $0x43]]  ;;  %s3246_s27 = sld [smem:[#allocation2 + $0x94]] }
  0x4a   :  { %v622_v41 = vmul.f32 %v3686_v34, %v621_v39  ;;  %v612_v42 = vmul.f32 %v3686_v34, %v611_v40 }
  0x4d   :  { %294 = vrot.lane.b32.xlu1 %v292_v43, %s3553_s22  ;;  %284 = vrot.lane.b32.xlu0 %v282_v44, %s3553_s22  ;;  %v641_v43 = vstv %s3228_s5  ;;  %v631_v44 = vstv %s3227_s6  ;;  %s3748_s5 = sld [smem:[#allocation2 + $0xe]]  ;;  %s3756_s6 = sld [smem:[#allocation2 + $0x5f]] }
  0x4e   :  { %v642_v45 = vmul.f32 %v3686_v34, %v641_v43  ;;  %v632_v46 = vmul.f32 %v3686_v34, %v631_v44 }
  0x4f   :  { %v791_v22 = vstv %s3243_s26  ;;  %v821_v26 = vstv %s3246_s27  ;;  %s3814_s26 = sld [smem:[#allocation4 + $0x5]]  ;;  %s3819_s27 = sld [smem:[#allocation2 + $0x60]] }
  0x50   :  { %v822_v30 = vmul.f32 %v3686_v34, %v821_v26 }
  0x51   :  { %314 = vrot.lane.b32.xlu1 %v312_v47, %s3553_s22  ;;  %304 = vrot.lane.b32.xlu0 %v302_v48, %s3553_s22  ;;  %v661_v47 = vstv %s3230_s7  ;;  %v651_v48 = vstv %s3229_s8  ;;  %s3760_s7 = sld [smem:[#allocation2 + $0x44]]  ;;  %s3769_s8 = sld [smem:[#allocation2 + $0x95]] }
  0x52   :  { %v662_v49 = vmul.f32 %v3686_v34, %v661_v47  ;;  %v652_v50 = vmul.f32 %v3686_v34, %v651_v48 }
  0x53   :  { %v831_v35 = vstv %s3748_s5  ;;  %v861_v39 = vstv %s3756_s6  ;;  %s3832_s5 = sld [smem:[#allocation2 + $0x96]]  ;;  %s3834_s6 = sld [smem:[#allocation2 + $0x7b]] }
  0x54   :  { %v862_v43 = vmul.f32 %v3686_v34, %v861_v39 }
  0x55   :  { %335 = vrot.lane.b32.xlu1 %v333_v51, %s6373_s29  ;;  %324 = vrot.lane.b32.xlu0 %v322_v52, %s6373_s29  ;;  %v681_v51 = vstv %s3232_s9  ;;  %v671_v52 = vstv %s3231_s12  ;;  %s3771_s9 = sld [smem:[#allocation2 + $0x36]]  ;;  %s3776_s12 = sld [smem:[#allocation2 + $0x7a]] }
  0x56   :  { %v682_v53 = vmul.f32 %v3686_v34, %v681_v51  ;;  %v672_v54 = vmul.f32 %v3686_v34, %v671_v52 }
  0x59   :  { %355 = vrot.lane.b32.xlu1 %v353_v55, %s6373_s29  ;;  %345 = vrot.lane.b32.xlu0 %v343_v56, %s6373_s29  ;;  %v701_v55 = vstv %s3234_s13  ;;  %v691_v56 = vstv %s3233_s14  ;;  %s3778_s13 = sld [smem:[#allocation2]]  ;;  %s3782_s14 = sld [smem:[#allocation4 + $0x2]] }
  0x5a   :  { %v702_v57 = vmul.f32 %v3686_v34, %v701_v55  ;;  %v692_v58 = vmul.f32 %v3686_v34, %v691_v56  ;;  %v901_v55 = vstv %s3793_s18  ;;  %s3865_s18 = sld [smem:[#allocation2 + $0x2c]] }
  0x5b   :  { %v871_v48 = vstv %s3776_s12  ;;  %s3849_s12 = sld [smem:[#allocation2 + $0x46]] }
  0x5d   :  { %375 = vrot.lane.b32.xlu1 %v373_v59, %s6373_s29  ;;  %365 = vrot.lane.b32.xlu0 %v363_v60, %s6373_s29  ;;  %v721_v59 = vstv %s3236_s15  ;;  %s3784_s15 = sld [smem:[#allocation2 + $0x51]] }
  0x5f   :  { %v44_v56 = vstv %s3782_s14  ;;  %s3867_s14 = sld [smem:[#allocation2 + $0x11]] }
  0x61   :  { %396 = vrot.lane.b32.xlu1 %v394_v63, %s3555_s11  ;;  %385 = vrot.lane.b32.xlu0 %v383_v1, %s3555_s11  ;;  %v722_v63 = vmul.f32 %v3686_v34, %v721_v59  ;;  %v712_v1 = vmul.f32 %v3686_v34, %v711_v61  ;;  %v40_v61 = vstv %s3788_s16  ;;  %s3874_s16 = sld [smem:[#allocation2 + $0x62]] }
  0x63   :  { %v65_v51 = vstv %s3784_s15  ;;  %s3858_s15 = sld [smem:[#allocation2 + $0x7c]] }
  0x65   :  { %416 = vrot.lane.b32.xlu1 %v414_v4, %s3555_s11  ;;  %406 = vrot.lane.b32.xlu0 %v404_v5, %s3555_s11  ;;  %v731_v4 = vstv %s3237_s20  ;;  %s3795_s20 = sld [smem:[#allocation4 + $0x3]] }
  0x66   :  { %v732_v7 = vmul.f32 %v3686_v34, %v731_v4 }
  0x69   :  { %436 = vrot.lane.b32.xlu1 %v434_v8, %s3555_s11  ;;  %426 = vrot.lane.b32.xlu0 %v424_v9, %s3555_s11  ;;  %v761_v8 = vstv %s3240_s1  ;;  %s3800_s1 = sld [smem:[#allocation2 + $0xf]] }
  0x6b   :  { %v46_v4 = vstv %s3795_s20  ;;  %s3883_s20 = sld [smem:[#allocation2 + $0x98]] }
  0x6d   :  { %457 = vrot.lane.b32.xlu1 %v455_v12, %s3556_s19  ;;  %446 = vrot.lane.b32.xlu0 %v444_v13, %s3556_s19  ;;  %v762_v12 = vmul.f32 %v3686_v34, %v761_v8  ;;  %v752_v13 = vmul.f32 %v3686_v34, %v751_v10  ;;  %v902_v8 = vmul.f32 %v3686_v34, %v901_v55 }
  0x6f   :  { %v891_v59 = vstv %s3800_s1  ;;  %s3876_s1 = sld [smem:[#allocation2 + $0x47]] }
  0x71   :  { %477 = vrot.lane.b32.xlu1 %v475_v16, %s3556_s19  ;;  %467 = vrot.lane.b32.xlu0 %v465_v17, %s3556_s19  ;;  %v771_v16 = vstv %s3241_s23  ;;  %s3808_s23 = sld [smem:[#allocation2 + $0x87]] }
  0x72   :  { %v772_v19 = vmul.f32 %v3686_v34, %v771_v16  ;;  %v42_v16 = vstv %s3804_s21  ;;  %s3905_s21 = sld [smem:[#allocation2 + $0x64]] }
  0x75   :  { %497 = vrot.lane.b32.xlu1 %v495_v20, %s3556_s19  ;;  %487 = vrot.lane.b32.xlu0 %v485_v21, %s3556_s19  ;;  %v801_v20 = vstv %s3244_s24  ;;  %s3810_s24 = sld [smem:[#allocation2 + $0x6c]] }
  0x79   :  { %518 = vrot.lane.b32.xlu1 %v516_v24, %s3557_s25  ;;  %507 = vrot.lane.b32.xlu0 %v505_v25, %s3557_s25  ;;  %v802_v24 = vmul.f32 %v3686_v34, %v801_v20  ;;  %v792_v25 = vmul.f32 %v3686_v34, %v791_v22 }
  0x7d   :  { %538 = vrot.lane.b32.xlu1 %v536_v28, %s3557_s25  ;;  %528 = vrot.lane.b32.xlu0 %v526_v29, %s3557_s25  ;;  %v811_v28 = vstv %s3245_s28  ;;  %s3822_s28 = sld [smem:[#allocation4 + $0x4]] }
  0x7e   :  { %v812_v31 = vmul.f32 %v3686_v34, %v811_v28 }
  0x81   :  { %558 = vrot.lane.b32.xlu1 %v556_v32, %s3557_s25  ;;  %548 = vrot.lane.b32.xlu0 %v546_v33, %s3557_s25  ;;  %v841_v32 = vstv %s3744_s4  ;;  %s3827_s4 = sld [smem:[#allocation2 + $0x45]] }
  0x85   :  { %604 = vrot.lane.b32.xlu1 %v602_v37, %s3550_s30  ;;  %594 = vrot.lane.b32.xlu0 %v592_v38, %s3550_s30  ;;  %v842_v37 = vmul.f32 %v3686_v34, %v841_v32  ;;  %v832_v38 = vmul.f32 %v3686_v34, %v831_v35  ;;  %v941_v32 = vstv %s3832_s5  ;;  %v931_v35 = vstv %s3834_s6  ;;  %s3940_s5 = sld [smem:[#allocation2 + $0x14]] }
  0x86   :  { %s3942_s6 = sld [smem:[#allocation2 + $0x24]] }
  0x87   :  { %v911_v20 = vstv %s3827_s4  ;;  %s3916_s4 = sld [smem:[#allocation2 + $0x7f]] }
  0x89   :  { %624 = vrot.lane.b32.xlu1 %v622_v41, %s3550_s30  ;;  %614 = vrot.lane.b32.xlu0 %v612_v42, %s3550_s30  ;;  %v851_v41 = vstv %s3760_s7  ;;  %s3839_s7 = sld [smem:[#allocation2 + $0x2b]] }
  0x8a   :  { %v852_v44 = vmul.f32 %v3686_v34, %v851_v41 }
  0x8d   :  { %644 = vrot.lane.b32.xlu1 %v642_v45, %s3550_s30  ;;  %634 = vrot.lane.b32.xlu0 %v632_v46, %s3550_s30  ;;  %v881_v45 = vstv %s3769_s8  ;;  %v61_v46 = vstv %s3771_s9  ;;  %s3841_s8 = sld [smem:[#allocation2 + $0x10]]  ;;  %s3847_s9 = sld [smem:[#allocation2 + $0x61]] }
  0x8e   :  { %v882_v52 = vmul.f32 %v3686_v34, %v881_v45 }
  0x91   :  { %664 = vrot.lane.b32.xlu1 %v662_v49, %s3551_s10  ;;  %654 = vrot.lane.b32.xlu0 %v652_v50, %s3551_s10  ;;  %v53_v49 = vstv %s3778_s13  ;;  %s3856_s13 = sld [smem:[#allocation2 + $0x97]] }
  0x93   :  { %v981_v39 = vstv %s3847_s9  ;;  %s3966_s9 = sld [smem:[#allocation2 + $0x4a]] }
  0x95   :  { %684 = vrot.lane.b32.xlu1 %v682_v53, %s3551_s10  ;;  %674 = vrot.lane.b32.xlu0 %v672_v54, %s3551_s10  ;;  %v62_v53 = vmul.f32 %v61_v46, %v3587_v0  ;;  %v872_v54 = vmul.f32 %v3686_v34, %v871_v48  ;;  %v991_v46 = vstv %s3858_s15  ;;  %s3978_s15 = sld [smem:[#allocation2 + $0x3f]] }
  0x97   :  { %v3712_v60 = vpop.permute.xlu1 %101  ;;  %v3714_v62 = vpop.permute.xlu0 %80  ;;  %v3878_v10 = vadd.f32 %v62_v53, %v44_v56  ;;  %v1001_v45 = vstv %s3856_s13  ;;  %v932_v53 = vmul.f32 %v3686_v34, %v931_v35  ;;  %v3948_v56 = vmul.f32 %v3686_v34, %v981_v39  ;;  %s3976_s13 = sld [smem:[#allocation2 + $0x9b]] }
  0x99   :  { %704 = vrot.lane.b32.xlu1 %v702_v57, %s3551_s10  ;;  %694 = vrot.lane.b32.xlu0 %v692_v58, %s3551_s10  ;;  %v54_v57 = vmul.f32 %v53_v49, %v3587_v0 }
  0x9b   :  { %v3720_v3 = vpop.permute.xlu1 %111  ;;  %v3722_v5 = vpop.permute.xlu0 %91  ;;  %v3887_v14 = vadd.f32 %v54_v57, %v40_v61  ;;  %v1021_v57 = vstv %s3865_s18  ;;  %v3960_v61 = vmul.f32 %v3686_v34, %v1001_v45  ;;  %s3307_s18 = sld [smem:[#allocation2 + $0x9e]] }
  0x9d   :  { %724 = vrot.lane.b32.xlu1 %v722_v63, %s3552_s17  ;;  %714 = vrot.lane.b32.xlu0 %v712_v1, %s3552_s17  ;;  %v66_v63 = vmul.f32 %v65_v51, %v3587_v0  ;;  %v57_v1 = vstv %s3802_s2  ;;  %s3885_s2 = sld [smem:[#allocation2 + $0x7d]] }
  0x9f   :  { %v3728_v9 = vpop.permute.xlu1 %131  ;;  %v3730_v11 = vpop.permute.xlu0 %121  ;;  %v3898_v22 = vadd.f32 %v66_v63, %v46_v4  ;;  %v3963_v63 = vmul.f32 %v3686_v34, %v991_v46 }
  0xa1   :  { %744 = vrot.lane.b32.xlu1 %v742_v6, %s3552_s17  ;;  %734 = vrot.lane.b32.xlu0 %v732_v7, %s3552_s17  ;;  %v73_v6 = vstv %s3808_s23  ;;  %v69_v7 = vstv %s3810_s24  ;;  %s3894_s23 = sld [smem:[#allocation2 + $0x2e]]  ;;  %s3896_s24 = sld [smem:[#allocation2 + $0x13]] }
  0xa2   :  { %v70_v26 = vmul.f32 %v69_v7, %v3587_v0  ;;  %v1031_v7 = vstv %s3876_s1  ;;  %s4046_s1 = sld [smem:[#allocation2 + $0x90]] }
  0xa3   :  { %v3736_v15 = vpop.permute.xlu1 %152  ;;  %v3738_v17 = vpop.permute.xlu0 %141 }
  0xa5   :  { %764 = vrot.lane.b32.xlu1 %v762_v12, %s3552_s17  ;;  %754 = vrot.lane.b32.xlu0 %v752_v13, %s3552_s17  ;;  %v892_v12 = vmul.f32 %v3686_v34, %v891_v59  ;;  %v921_v13 = vstv %s3819_s27  ;;  %s3907_s27 = sld [smem:[#allocation2 + $0x49]] }
  0xa7   :  { %v3746_v21 = vpop.permute.xlu1 %172  ;;  %v3750_v23 = vpop.permute.xlu0 %162 }
  0xa9   :  { %784 = vrot.lane.b32.xlu1 %v782_v18, %s3553_s22  ;;  %774 = vrot.lane.b32.xlu0 %v772_v19, %s3553_s22  ;;  %v58_v18 = vmul.f32 %v57_v1, %v3587_v0  ;;  %v1011_v1 = vstv %s3867_s14  ;;  %s3306_s14 = sld [smem:[#allocation2 + $0x83]] }
  0xab   :  { %v3758_v27 = vpop.permute.xlu1 %192  ;;  %v3762_v29 = vpop.permute.xlu0 %182  ;;  %v3925_v41 = vadd.f32 %v58_v18, %v42_v16  ;;  %v3983_v16 = vmul.f32 %v3686_v34, %v1021_v57  ;;  %v3988_v18 = vld [vmem:[%s6336_s0 + $0x2] ss:$4 sm:$0x3] }
  0xad   :  { %804 = vrot.lane.b32.xlu1 %v802_v24, %s3553_s22  ;;  %794 = vrot.lane.b32.xlu0 %v792_v25, %s3553_s22  ;;  %v50_v24 = vstv %s3814_s26  ;;  %v74_v25 = vmul.f32 %v73_v6, %v3587_v0  ;;  %s3914_s26 = sld [smem:[#allocation2 + $0x9a]]  ;;  %v912_v0 = vmul.f32 %v3686_v34, %v911_v20  ;;  %v1041_v6 = vstv %s3874_s16  ;;  %s4000_s16 = sld [smem:[#allocation2 + $0x80]] }
  0xae   :  { %v1107_v20 = vstv %s3894_s23  ;;  %v4004_v35 = vmul.f32 %v3686_v34, %v1041_v6  ;;  %s4251_s23 = sld [smem:[#allocation2 + $0x15]] }
  0xaf   :  { %v3773_v33 = vpop.permute.xlu1 %213  ;;  %v3780_v36 = vpop.permute.xlu0 %202  ;;  %v3932_v48 = vadd.f32 %v74_v25, %v50_v24  ;;  %v1097_v24 = vstv %s3896_s24  ;;  %v1127_v25 = vstv %s3905_s21  ;;  %v4019_v45 = vmul.f32 %v3988_v18, %v1107_v20  ;;  %s4269_s24 = sld [smem:[#allocation2 + $0x66]]  ;;  %s4273_s21 = sld [smem:[#allocation2 + $0x4b]] }
  0xb0   :  { %v4022_v46 = vmul.f32 %v3988_v18, %v1097_v24  ;;  %v571_v20 = vstv %s3942_s6  ;;  %s3298_s6 = sld [smem:[#allocation2 + $0x4c]] }
  0xb1   :  { %824 = vrot.lane.b32.xlu1 %v822_v30, %s3553_s22  ;;  %814 = vrot.lane.b32.xlu0 %v812_v31, %s3553_s22  ;;  %v48_v30 = vstv %s3822_s28  ;;  %v922_v31 = vmul.f32 %v3686_v34, %v921_v13  ;;  %s3923_s28 = sld [smem:[#allocation2 + $0x2f]]  ;;  %6382 = vst [vmem:[#allocation8_spill] sm:$0xff] %v4019_v45 }
  0xb2   :  { %v3934_v49 = vadd.f32 %v70_v26, %v48_v30  ;;  %v3995_v26 = vmul.f32 %v3686_v34, %v1011_v1  ;;  %v1117_v30 = vstv %s3907_s27  ;;  %6383 = vst [vmem:[#allocation9_spill] sm:$0xff] %v4022_v46  ;;  %s4293_s27 = sld [smem:[#allocation2 + $0x9c]] }
  0xb3   :  { %v3797_v40 = vpop.permute.xlu1 %233  ;;  %v3806_v42 = vpop.permute.xlu0 %223  ;;  %v4030_v57 = vmul.f32 %v3988_v18, %v1117_v30  ;;  %v82_v30 = vrot.slane %v3714_v62, 1 }
  0xb5   :  { %844 = vrot.lane.b32.xlu1 %v842_v37, %s6373_s29  ;;  %834 = vrot.lane.b32.xlu0 %v832_v38, %s6373_s29  ;;  %v961_v37 = vstv %s3839_s7  ;;  %v951_v38 = vstv %s3841_s8  ;;  %s3951_s7 = sld [smem:[#allocation2 + $0x65]]  ;;  %s3953_s8 = sld [smem:[#allocation2 + $0x9]]  ;;  %6386 = vst [vmem:[#allocation12_spill] sm:$0xff] %v4030_v57 }
  0xb6   :  { %v952_v55 = vmul.f32 %v3686_v34, %v951_v38 }
  0xb7   :  { %v3824_v47 = vpop.permute.xlu1 %253  ;;  %v3830_v50 = vpop.permute.xlu0 %243  ;;  %v1167_v38 = vstv %s3923_s28  ;;  %s3296_s28 = sld [smem:[#allocation2 + $0x16]] }
  0xb9   :  { %864 = vrot.lane.b32.xlu1 %v862_v43, %s6373_s29  ;;  %854 = vrot.lane.b32.xlu0 %v852_v44, %s6373_s29  ;;  %v971_v44 = vstv %s3849_s12  ;;  %s3968_s12 = sld [smem:[#allocation2 + $0x5a]] }
  0xba   :  { %v3957_v59 = vmul.f32 %v3686_v34, %v971_v44 }
  0xbb   :  { %v3853_v58 = vpop.permute.xlu1 %274  ;;  %v3863_v2 = vpop.permute.xlu0 %263  ;;  %v567_v24 = vstv %s3953_s8  ;;  %s3300_s8 = sld [smem:[#allocation2 + $0x82]] }
  0xbc   :  { %v4073_v45 = vmul.f32 %v3686_v34, %v567_v24 }
  0xbd   :  { %884 = vrot.lane.b32.xlu1 %v882_v52, %s6373_s29  ;;  %874 = vrot.lane.b32.xlu0 %v872_v54, %s6373_s29  ;;  %v942_v52 = vmul.f32 %v3686_v34, %v941_v32  ;;  %v962_v54 = vmul.f32 %v3686_v34, %v961_v37  ;;  %v1137_v32 = vstv %s3916_s4  ;;  %s3297_s4 = sld [smem:[#allocation2 + $0x31]] }
  0xbe   :  { %v4036_v6 = vmul.f32 %v3988_v18, %v1137_v32  ;;  %v113_v32 = vrot.slane %v3720_v3, 1 }
  0xbf   :  { %v3891_v19 = vpop.permute.xlu1 %294  ;;  %v3903_v28 = vpop.permute.xlu0 %284 }
  0xc0   :  { %6388 = vst [vmem:[#allocation14_spill] sm:$0xff] %v4036_v6  ;;  %v1207_v6 = vstv %s3976_s13  ;;  %s3305_s13 = sld [smem:[#allocation2 + $0x68]] }
  0xc1   :  { %904 = vrot.lane.b32.xlu1 %v902_v8, %s3555_s11  ;;  %894 = vrot.lane.b32.xlu0 %v892_v12, %s3555_s11  ;;  %v1061_v8 = vstv %s3883_s20  ;;  %v1051_v12 = vstv %s3885_s2  ;;  %s4048_s20 = sld [smem:[#allocation2 + $0x75]]  ;;  %v4092_v24 = vmul.f32 %v3988_v18, %v1207_v6  ;;  %v174_v6 = vrot.slane %v3746_v21, 1  ;;  %s4247_s2 = sld [smem:[#allocation2 + $0x30]] }
  0xc2   :  { %v4010_v37 = vmul.f32 %v3686_v34, %v1061_v8  ;;  %v4016_v44 = vmul.f32 %v3686_v34, %v1051_v12  ;;  %v4041_v8 = vmul.f32 %v3988_v18, %v1167_v38  ;;  %v1187_v12 = vstv %s3951_s7  ;;  %s3301_s7 = sld [smem:[#allocation2 + $0x9d]] }
  0xc3   :  { %v3927_v43 = vpop.permute.xlu1 %314  ;;  %v3936_v51 = vpop.permute.xlu0 %304  ;;  %v93_v38 = vrot.slane %v3722_v5, 1  ;;  %v4067_v46 = vmul.f32 %v3988_v18, %v1187_v12  ;;  %6395 = vst [vmem:[#allocation21_spill] sm:$0xff] %v4092_v24 }
  0xc4   :  { %6389 = vst [vmem:[#allocation15_spill] sm:$0xff] %v4041_v8 }
  0xc5   :  { %924 = vrot.lane.b32.xlu1 %v922_v31, %s3555_s11  ;;  %914 = vrot.lane.b32.xlu0 %v912_v0, %s3555_s11  ;;  %v1147_v31 = vstv %s3914_s26  ;;  %v4007_v0 = vmul.f32 %v3686_v34, %v1031_v7  ;;  %v1157_v7 = vstv %s3940_s5  ;;  %6392 = vst [vmem:[#allocation18_spill] sm:$0xff] %v4067_v46  ;;  %s3294_s26 = sld [smem:[#allocation2 + $0x81]]  ;;  %s3299_s5 = sld [smem:[#allocation2 + $0x67]] }
  0xc6   :  { %v4033_v1 = vmul.f32 %v3988_v18, %v1147_v31  ;;  %v1177_v31 = vstv %s3966_s9  ;;  %s3303_s9 = sld [smem:[#allocation2 + $0x32]] }
  0xc7   :  { %v3970_v4 = vpop.permute.xlu1 %335  ;;  %v3980_v13 = vpop.permute.xlu0 %324  ;;  %v583_v24 = vstv %s4048_s20  ;;  %s3311_s20 = sld [smem:[#allocation2 + $0x69]] }
  0xc8   :  { %6387 = vst [vmem:[#allocation13_spill] sm:$0xff] %v4033_v1  ;;  %v575_v1 = vstv %s3978_s15  ;;  %s3304_s15 = sld [smem:[#allocation2 + $0x4d]] }
  0xc9   :  { %944 = vrot.lane.b32.xlu1 %v942_v52, %s3555_s11  ;;  %934 = vrot.lane.b32.xlu0 %v932_v53, %s3555_s11  ;;  %v4025_v52 = vmul.f32 %v3988_v18, %v1127_v25  ;;  %v103_v25 = vrot.slane %v3712_v60, 1 }
  0xcb   :  { %v4013_v39 = vpop.permute.xlu1 %355  ;;  %6384 = vst [vmem:[#allocation10_spill] sm:$0xff] %v4025_v52  ;;  %v4027_v53 = vpop.permute.xlu0 %345  ;;  %v4064_v52 = vmul.f32 %v3988_v18, %v1157_v7  ;;  %v104_v12 = vsel %vm83_vm0, %v3712_v60, %v103_v25  ;;  %v94_v60 = vsel %vm83_vm0, %v3722_v5, %v93_v38  ;;  %v123_v25 = vrot.slane %v3730_v11, 1 }
  0xcc   :  { %6385 = vst [vmem:[#allocation11_spill] sm:$0xff] %v4027_v53  ;;  %v133_v53 = vrot.slane %v3728_v9, 1  ;;  %v587_v38 = vstv %s4046_s1  ;;  %v96_v46 = vadd.f32 %v94_v60, %v3925_v41  ;;  %v175_v41 = vsel %vm144_vm1, %v3746_v21, %v174_v6  ;;  %s3308_s1 = sld [smem:[#allocation2 + $0x18]] }
  0xcd   :  { %964 = vrot.lane.b32.xlu1 %v962_v54, %s3556_s19  ;;  %954 = vrot.lane.b32.xlu0 %v952_v55, %s3556_s19  ;;  %v579_v54 = vstv %s3968_s12  ;;  %v4070_v55 = vmul.f32 %v3686_v34, %v571_v20  ;;  %v84_v20 = vsel %vm83_vm0, %v3714_v62, %v82_v30  ;;  %v154_v62 = vrot.slane %v3736_v15, 1  ;;  %s3302_s12 = sld [smem:[#allocation2 + $0x17]] }
  0xce   :  { %v4083_v7 = vmul.f32 %v3686_v34, %v579_v54  ;;  %v134_v5 = vsel %vm83_vm0, %v3728_v9, %v133_v53  ;;  %v124_v9 = vsel %vm83_vm0, %v3730_v11, %v123_v25  ;;  %v276_v25 = vrot.slane %v3853_v58, 1 }
  0xcf   :  { %v4057_v8 = vpop.permute.xlu1 %375  ;;  %v4061_v57 = vpop.permute.xlu0 %365  ;;  %v155_v53 = vsel %vm144_vm1, %v3736_v15, %v154_v62 }
  0xd0   :  { %6390 = vst [vmem:[#allocation16_spill] sm:$0xff] %v4057_v8  ;;  %6391 = vst [vmem:[#allocation17_spill] sm:$0xff] %v4061_v57  ;;  %v4079_v8 = vmul.f32 %v3988_v18, %v1177_v31  ;;  %v1197_v57 = vstv %s4000_s16  ;;  %v114_v31 = vsel %vm83_vm0, %v3720_v3, %v113_v32  ;;  %v194_v32 = vrot.slane %v3758_v27, 1  ;;  %s3309_s16 = sld [smem:[#allocation2 + $0x33]] }
  0xd1   :  { %984 = vrot.lane.b32.xlu1 %v3948_v56, %s3556_s19  ;;  %6394 = vst [vmem:[#allocation20_spill] sm:$0xff] %v4083_v7  ;;  %974 = vrot.lane.b32.xlu0 %v3957_v59, %s3556_s19  ;;  %v4095_v56 = vmul.f32 %v3686_v34, %v575_v1  ;;  %v143_v59 = vrot.slane %v3738_v17, 1  ;;  %v164_v1 = vrot.slane %v3750_v23, 1  ;;  %v4111_v3 = vmul.f32 %v3988_v18, %v1197_v57 }
  0xd2   :  { %6393 = vst [vmem:[#allocation19_spill] sm:$0xff] %v4079_v8  ;;  %v86_v8 = vadd.f32 %v84_v20, %v3887_v14  ;;  %v116_v7 = vadd.f32 %v114_v31, %v3898_v22  ;;  %v215_v57 = vrot.slane %v3773_v33, 1  ;;  %v136_v14 = vadd.f32 %v134_v5, %v3932_v48 }
  0xd3   :  { %6396 = vst [vmem:[#allocation22_spill] sm:$0xff] %v4095_v56  ;;  %v4103_v30 = vpop.permute.xlu1 %396  ;;  %v4108_v54 = vpop.permute.xlu0 %385  ;;  %v106_v56 = vadd.f32 %v104_v12, %v3878_v10  ;;  %v145_v22 = vsel %vm144_vm1, %v3738_v17, %v143_v59  ;;  %v165_v11 = vsel %vm144_vm1, %v3750_v23, %v164_v1  ;;  %v195_v15 = vsel %vm144_vm1, %v3758_v27, %v194_v32 }
  0xd4   :  { %v204_v12 = vrot.slane %v3780_v36, 1  ;;  %v235_v20 = vrot.slane %v3797_v40, 1  ;;  %v225_v48 = vrot.slane %v3806_v42, 1  ;;  %v126_v17 = vadd.f32 %v124_v9, %v3934_v49 }
  0xd5   :  { %1004 = vrot.lane.b32.xlu1 %v3960_v61, %s3556_s19  ;;  %994 = vrot.lane.b32.xlu0 %v3963_v63, %s3556_s19  ;;  %v184_v61 = vrot.slane %v3762_v29, 1  ;;  %v157_v21 = vadd.f32 %v155_v53, %v96_v46  ;;  %v255_v31 = vrot.slane %v3824_v47, 1  ;;  %v245_v23 = vrot.slane %v3830_v50, 1 }
  0xd6   :  { %v216_v60 = vsel %vm205_vm2, %v3773_v33, %v215_v57  ;;  %v147_v46 = vadd.f32 %v145_v22, %v86_v8  ;;  %v177_v62 = vadd.f32 %v175_v41, %v116_v7  ;;  %v167_v59 = vadd.f32 %v165_v11, %v106_v56 }
  0xd7   :  { %v4132_v10 = vpop.permute.xlu1 %416  ;;  %v4141_v63 = vpop.permute.xlu0 %406  ;;  %v185_v27 = vsel %vm144_vm1, %v3762_v29, %v184_v61  ;;  %v197_v6 = vadd.f32 %v195_v15, %v136_v14  ;;  %v236_v29 = vsel %vm205_vm2, %v3797_v40, %v235_v20  ;;  %v226_v33 = vsel %vm205_vm2, %v3806_v42, %v225_v48  ;;  %v6397_v20 = vld [vmem:[#allocation11_spill] sm:$0xff] }
  0xd8   :  { %v296_v5 = vrot.slane %v3891_v19, 1  ;;  %v187_v8 = vadd.f32 %v185_v27, %v126_v17  ;;  %v218_v7 = vadd.f32 %v216_v60, %v157_v21  ;;  %v256_v56 = vsel %vm205_vm2, %v3824_v47, %v255_v31  ;;  %v6398_v17 = vld [vmem:[#allocation16_spill] sm:$0xff]  ;;  %v6399_v27 = vld [vmem:[#allocation17_spill] sm:$0xff] }
  0xd9   :  { %1024 = vrot.lane.b32.xlu1 %v3983_v16, %s3557_s25  ;;  %1014 = vrot.lane.b32.xlu0 %v3995_v26, %s3557_s25  ;;  %v265_v16 = vrot.slane %v3863_v2, 1  ;;  %v206_v26 = vsel %vm205_vm2, %v3780_v36, %v204_v12  ;;  %v246_v36 = vsel %vm205_vm2, %v3830_v50, %v245_v23  ;;  %v277_v40 = vsel %vm266_vm3, %v3853_v58, %v276_v25 }
  0xda   :  { %v286_v32 = vrot.slane %v3903_v28, 1  ;;  %v208_v53 = vadd.f32 %v206_v26, %v147_v46  ;;  %v238_v47 = vadd.f32 %v236_v29, %v177_v62  ;;  %v228_v61 = vadd.f32 %v226_v33, %v167_v59  ;;  %v6400_v62 = vld [vmem:[#allocation8_spill] sm:$0xff]  ;;  %v6401_v29 = vld [vmem:[#allocation9_spill] sm:$0xff] }
  0xdb   :  { %v4161_v49 = vpop.permute.xlu1 %436  ;;  %v4163_v1 = vpop.permute.xlu0 %426  ;;  %v267_v42 = vsel %vm266_vm3, %v3863_v2, %v265_v16  ;;  %v306_v50 = vrot.slane %v3936_v51, 1  ;;  %v258_v14 = vadd.f32 %v256_v56, %v197_v6  ;;  %v337_v58 = vrot.slane %v3970_v4, 1 }
  0xdc   :  { %v326_v2 = vrot.slane %v3980_v13, 1  ;;  %v248_v22 = vadd.f32 %v246_v36, %v187_v8  ;;  %v279_v41 = vadd.f32 %v277_v40, %v218_v7  ;;  %v269_v11 = vadd.f32 %v267_v42, %v208_v53 }
  0xdd   :  { %1044 = vrot.lane.b32.xlu1 %v4004_v35, %s3557_s25  ;;  %1034 = vrot.lane.b32.xlu0 %v4007_v0, %s3557_s25  ;;  %v316_v35 = vrot.slane %v3927_v43, 1  ;;  %v297_v0 = vsel %vm266_vm3, %v3891_v19, %v296_v5  ;;  %v357_v15 = vrot.slane %v4013_v39, 1  ;;  %v287_v12 = vsel %vm266_vm3, %v3903_v28, %v286_v32 }
  0xde   :  { %v347_v48 = vrot.slane %v6397_v20, 1  ;;  %v377_v21 = vrot.slane %v6398_v17, 1  ;;  %v307_v23 = vsel %vm266_vm3, %v3936_v51, %v306_v50  ;;  %v367_v60 = vrot.slane %v6399_v27, 1 }
  0xdf   :  { %v458_v9 = vpop.permute.xlu1 %457  ;;  %v447_v57 = vpop.permute.xlu0 %446  ;;  %v317_v19 = vsel %vm266_vm3, %v3927_v43, %v316_v35  ;;  %v338_v28 = vsel %vm327_vm4, %v3970_v4, %v337_v58  ;;  %v328_v43 = vsel %vm327_vm4, %v3980_v13, %v326_v2  ;;  %v387_v16 = vrot.slane %v4108_v54, 1 }
  0xe0   :  { %v418_v46 = vrot.slane %v4132_v10, 1  ;;  %v289_v59 = vadd.f32 %v287_v12, %v228_v61  ;;  %v319_v51 = vadd.f32 %v317_v19, %v258_v14  ;;  %v358_v6 = vsel %vm327_vm4, %v4013_v39, %v357_v15 }
  0xe1   :  { %1064 = vrot.lane.b32.xlu1 %v4010_v37, %s3557_s25  ;;  %1054 = vrot.lane.b32.xlu0 %v4016_v44, %s3557_s25  ;;  %v299_v37 = vadd.f32 %v297_v0, %v238_v47  ;;  %v398_v44 = vrot.slane %v4103_v30, 1  ;;  %v459_v26 = vrot.slane %v458_v9, 1  ;;  %v309_v4 = vadd.f32 %v307_v23, %v248_v22  ;;  %v6402_v47 = vld [vmem:[#allocation10_spill] sm:$0xff] }
  0xe2   :  { %v348_v13 = vsel %vm327_vm4, %v6397_v20, %v347_v48  ;;  %v378_v33 = vsel %vm327_vm4, %v6398_v17, %v377_v21  ;;  %v448_v5 = vrot.slane %v447_v57, 1  ;;  %v340_v7 = vadd.f32 %v338_v28, %v279_v41  ;;  %v6404_v21 = vld [vmem:[#allocation13_spill] sm:$0xff] }
  0xe3   :  { %v478_v31 = vpop.permute.xlu1 %477  ;;  %v468_v25 = vpop.permute.xlu0 %467  ;;  %v330_v56 = vadd.f32 %v328_v43, %v269_v11  ;;  %v368_v36 = vsel %vm327_vm4, %v6399_v27, %v367_v60  ;;  %v399_v39 = vsel %vm388_vm5, %v4103_v30, %v398_v44  ;;  %v360_v42 = vadd.f32 %v358_v6, %v299_v37  ;;  %v6403_v30 = vld [vmem:[#allocation12_spill] sm:$0xff]  ;;  %v6405_v60 = vld [vmem:[#allocation14_spill] sm:$0xff] }
  0xe4   :  { %v389_v32 = vsel %vm388_vm5, %v4108_v54, %v387_v16  ;;  %v419_v35 = vsel %vm388_vm5, %v4132_v10, %v418_v46  ;;  %v408_v53 = vrot.slane %v4141_v63, 1  ;;  %v350_v61 = vadd.f32 %v348_v13, %v289_v59 }
  0xe5   :  { %1110 = vrot.lane.b32.xlu1 %v6400_v62, %s3550_s30  ;;  %1100 = vrot.lane.b32.xlu0 %v6401_v29, %s3550_s30  ;;  %v380_v50 = vadd.f32 %v378_v33, %v319_v51  ;;  %v460_v14 = vsel %vm449_vm6, %v458_v9, %v459_v26  ;;  %v479_v0 = vrot.slane %v478_v31, 1  ;;  %v370_v58 = vadd.f32 %v368_v36, %v309_v4 }
  0xe6   :  { %v401_v2 = vadd.f32 %v399_v39, %v340_v7  ;;  %v450_v54 = vsel %vm449_vm6, %v447_v57, %v448_v5  ;;  %v469_v22 = vrot.slane %v468_v25, 1  ;;  %v391_v10 = vadd.f32 %v389_v32, %v330_v56 }
  0xe7   :  { %v498_v8 = vpop.permute.xlu1 %497  ;;  %v488_v40 = vpop.permute.xlu0 %487  ;;  %v421_v11 = vadd.f32 %v419_v35, %v360_v42  ;;  %v438_v15 = vrot.slane %v4161_v49, 1  ;;  %v409_v20 = vsel %vm388_vm5, %v4141_v63, %v408_v53  ;;  %v428_v9 = vrot.slane %v4163_v1, 1  ;;  %v6407_v53 = vld [vmem:[#allocation18_spill] sm:$0xff] }
  0xe8   :  { %v462_v48 = vadd.f32 %v460_v14, %v401_v2  ;;  %v452_v37 = vadd.f32 %v450_v54, %v391_v10  ;;  %v480_v57 = vsel %vm449_vm6, %v478_v31, %v479_v0  ;;  %v499_v23 = vrot.slane %v498_v8, 1  ;;  %v6409_v0 = vld [vmem:[#allocation19_spill] sm:$0xff]  ;;  %v6411_v10 = vld [vmem:[#allocation21_spill] sm:$0xff] }
  0xe9   :  { %1130 = vrot.lane.b32.xlu1 %v6402_v47, %s3550_s30  ;;  %1120 = vrot.lane.b32.xlu0 %v6403_v30, %s3550_s30  ;;  %v470_v63 = vsel %vm449_vm6, %v468_v25, %v469_v22  ;;  %v489_v44 = vrot.slane %v488_v40, 1  ;;  %v411_v46 = vadd.f32 %v409_v20, %v350_v61  ;;  %v439_v31 = vsel %vm388_vm5, %v4161_v49, %v438_v15  ;;  %v6406_v25 = vld [vmem:[#allocation15_spill] sm:$0xff]  ;;  %v6410_v30 = vld [vmem:[#allocation22_spill] sm:$0xff] }
  0xea   :  { %v429_v6 = vsel %vm388_vm5, %v4163_v1, %v428_v9  ;;  %v482_v26 = vadd.f32 %v480_v57, %v421_v11  ;;  %v500_v33 = vsel %vm449_vm6, %v498_v8, %v499_v23  ;;  %v441_v1 = vadd.f32 %v439_v31, %v380_v50 }
  0xeb   :  { %v519_v41 = vpop.permute.xlu1 %518  ;;  %v508_v19 = vpop.permute.xlu0 %507  ;;  %v472_v13 = vadd.f32 %v470_v63, %v411_v46  ;;  %v490_v7 = vsel %vm449_vm6, %v488_v40, %v489_v44  ;;  %v431_v8 = vadd.f32 %v429_v6, %v370_v58  ;;  %v6408_v40 = vld [vmem:[#allocation20_spill] sm:$0xff]  ;;  %v584_v61 = vmul.f32 %v3686_v34, %v583_v24 }
  0xec   :  { %v520_v12 = vrot.slane %v519_v41, 1  ;;  %v509_v17 = vrot.slane %v508_v19, 1  ;;  %v502_v32 = vadd.f32 %v500_v33, %v441_v1  ;;  %v1247_v20 = vstv %s4269_s24  ;;  %s3312_s24 = sld [smem:[#allocation2 + $0x84]] }
  0xed   :  { %1150 = vrot.lane.b32.xlu1 %v6404_v21, %s3550_s30  ;;  %1140 = vrot.lane.b32.xlu0 %v6405_v60, %s3550_s30  ;;  %v492_v50 = vadd.f32 %v490_v7, %v431_v8  ;;  %v1248_v21 = vmul.f32 %v3988_v18, %v1247_v20  ;;  %v1257_v23 = vstv %s3294_s26  ;;  %v1287_v44 = vstv %s3297_s4  ;;  %s3317_s26 = sld [smem:[#allocation2 + $0x6a]]  ;;  %s3316_s4 = sld [smem:[#allocation2 + $0x4f]] }
  0xee   :  { %v521_v27 = vsel %vm510_vm7, %v519_v41, %v520_v12  ;;  %v511_v43 = vsel %vm510_vm7, %v508_v19, %v509_v17  ;;  %v1258_v63 = vmul.f32 %v3988_v18, %v1257_v23  ;;  %v1288_v46 = vmul.f32 %v3988_v18, %v1287_v44 }
  0xef   :  { %v523_v28 = vadd.f32 %v521_v27, %v462_v48  ;;  %v539_v16 = vpop.permute.xlu1 %538  ;;  %v513_v62 = vadd.f32 %v511_v43, %v452_v37  ;;  %v529_v51 = vpop.permute.xlu0 %528  ;;  %v1237_v48 = vstv %s4273_s21  ;;  %v1267_v37 = vstv %s4293_s27  ;;  %s3315_s21 = sld [smem:[#allocation2 + $0x34]]  ;;  %s3314_s27 = sld [smem:[#allocation2 + $0x19]] }
  0xf0   :  { %v540_v59 = vrot.slane %v539_v16, 1  ;;  %v530_v29 = vrot.slane %v529_v51, 1  ;;  %v1268_v60 = vmul.f32 %v3988_v18, %v1267_v37  ;;  %v1277_v43 = vstv %s3296_s28  ;;  %s3319_s28 = sld [smem:[#allocation2 + $0xa0]] }
  0xf1   :  { %1170 = vrot.lane.b32.xlu1 %v6406_v25, %s3551_s10  ;;  %v4260_v4 = vadd.f32 %v4070_v55, %v523_v28  ;;  %1160 = vrot.lane.b32.xlu0 %v4064_v52, %s3551_s10  ;;  %v4267_v5 = vadd.f32 %v4073_v45, %v513_v62  ;;  %v588_v45 = vmul.f32 %v3686_v34, %v587_v38  ;;  %v1227_v38 = vstv %s4247_s2  ;;  %s3310_s2 = sld [smem:[#allocation2 + $0x4e]] }
  0xf2   :  { %v541_v49 = vsel %vm510_vm7, %v539_v16, %v540_v59  ;;  %v531_v56 = vsel %vm510_vm7, %v529_v51, %v530_v29  ;;  %v1217_v34 = vstv %s4251_s23  ;;  %v1228_v11 = vmul.f32 %v3988_v18, %v1227_v38  ;;  %s3313_s23 = sld [smem:[#allocation2 + $0x9f]] }
  0xf3   :  { %v543_v55 = vadd.f32 %v541_v49, %v482_v26  ;;  %v559_v36 = vpop.permute.xlu1 %558  ;;  %v533_v39 = vadd.f32 %v531_v56, %v472_v13  ;;  %v549_v52 = vpop.permute.xlu0 %548  ;;  %v1218_v12 = vmul.f32 %v3988_v18, %v1217_v34  ;;  %v1278_v31 = vmul.f32 %v3988_v18, %v1277_v43 }
  0xf4   :  { %v560_v42 = vrot.slane %v559_v36, 1  ;;  %v550_v35 = vrot.slane %v549_v52, 1  ;;  %v1307_v62 = vstv %s3299_s5  ;;  %v1297_v51 = vstv %s3298_s6  ;;  %s3318_s5 = sld [smem:[#allocation2 + $0x85]] }
  0xf5   :  { %1190 = vrot.lane.b32.xlu1 %v6407_v53, %s3551_s10  ;;  %v4281_v47 = vadd.f32 %v6408_v40, %v543_v55  ;;  %1180 = vrot.lane.b32.xlu0 %v6409_v0, %s3551_s10  ;;  %v4290_v58 = vadd.f32 %v6410_v30, %v533_v39  ;;  %v1308_v26 = vmul.f32 %v3988_v18, %v1307_v62  ;;  %v1327_v25 = vstv %s3301_s7  ;;  %s3321_s6 = sld [smem:[#allocation2 + $0x35]]  ;;  %s3320_s7 = sld [smem:[#allocation2 + $0x1a]] }
  0xf6   :  { %v561_v14 = vsel %vm510_vm7, %v559_v36, %v560_v42  ;;  %v551_v54 = vsel %vm510_vm7, %v549_v52, %v550_v35  ;;  %v1298_v29 = vmul.f32 %v3988_v18, %v1297_v51  ;;  %v1317_v33 = vstv %s3300_s8  ;;  %s3323_s8 = sld [smem:[#allocation2 + $0x6b]] }
  0xf7   :  { %v563_v2 = vadd.f32 %v561_v14, %v502_v32  ;;  %v4296_v22 = vpop.permute.xlu1 %604  ;;  %v553_v24 = vadd.f32 %v551_v54, %v492_v50  ;;  %v4299_v41 = vpop.permute.xlu0 %594  ;;  %v1328_v1 = vmul.f32 %v3988_v18, %v1327_v25  ;;  %v1318_v7 = vmul.f32 %v3988_v18, %v1317_v33 }
  0xf8   :  { %v1347_v55 = vstv %s3303_s9  ;;  %v1337_v36 = vstv %s3302_s12  ;;  %v1367_v52 = vstv %s3305_s13  ;;  %v1357_v32 = vstv %s3304_s15  ;;  %s3322_s9 = sld [smem:[#allocation2 + $0x50]]  ;;  %s3325_s12 = sld [smem:[#allocation2 + $0xa1]] }
  0xf9   :  { %1210 = vrot.lane.b32.xlu1 %v6411_v10, %s3551_s10  ;;  %v4304_v15 = vadd.f32 %v588_v45, %v563_v2  ;;  %1200 = vrot.lane.b32.xlu0 %v4111_v3, %s3551_s10  ;;  %v4309_v19 = vadd.f32 %v584_v61, %v553_v24  ;;  %v1238_v3 = vmul.f32 %v3988_v18, %v1237_v48  ;;  %v1387_v61 = vstv %s3307_s18  ;;  %s3324_s13 = sld [smem:[#allocation2 + $0x86]]  ;;  %s3343_s15 = sld [smem:[#allocation2 + $0x1c]] }
  0xfa   :  { %v1348_v39 = vmul.f32 %v3988_v18, %v1347_v55  ;;  %v1338_v42 = vmul.f32 %v3988_v18, %v1337_v36  ;;  %v1368_v53 = vmul.f32 %v3988_v18, %v1367_v52  ;;  %v1358_v40 = vmul.f32 %v3988_v18, %v1357_v32  ;;  %s3342_s18 = sld [smem:[#allocation2 + $0x1]] }
  0xfb   :  { %v4312_v9 = vpop.permute.xlu1 %624  ;;  %v4315_v17 = vpop.permute.xlu0 %614  ;;  %v1377_v14 = vstv %s3306_s14  ;;  %v1388_v30 = vmul.f32 %v3988_v18, %v1387_v61  ;;  %v1407_v2 = vstv %s3309_s16  ;;  %v1397_v34 = vstv %s3308_s1  ;;  %s3345_s14 = sld [smem:[#allocation2 + $0x52]]  ;;  %s3344_s16 = sld [smem:[#allocation2 + $0x37]] }
  0xfc   :  { %v1378_v38 = vmul.f32 %v3988_v18, %v1377_v14  ;;  %v1408_v10 = vmul.f32 %v3988_v18, %v1407_v2  ;;  %v1417_v48 = vstv %s3310_s2  ;;  %v1447_v23 = vstv %s3313_s23  ;;  %s3347_s2 = sld [smem:[#allocation2 + $0x88]]  ;;  %s4457_s23 = sld [smem:[#allocation2 + $0x6d]] }
  0xfd   :  { %1230 = vrot.lane.b32.xlu1 %v1228_v11, %s3552_s17  ;;  %1220 = vrot.lane.b32.xlu0 %v1218_v12, %s3552_s17  ;;  %v1398_v11 = vmul.f32 %v3988_v18, %v1397_v34  ;;  %v1427_v12 = vstv %s3311_s20  ;;  %v1418_v37 = vmul.f32 %v3988_v18, %v1417_v48  ;;  %v1448_v43 = vmul.f32 %v3988_v18, %v1447_v23  ;;  %s4527_s1 = sld [smem:[#allocation2 + $0x6f]] }
  0xfe   :  { %v1457_v51 = vstv %s3314_s27  ;;  %v1487_v33 = vstv %s3317_s26  ;;  %v1497_v32 = vstv %s3318_s5  ;;  %v1527_v14 = vstv %s3321_s6  ;;  %s4477_s27 = sld [smem:[#allocation2 + $0x53]]  ;;  %s4482_s26 = sld [smem:[#allocation2 + $0x38]] }
  0xff   :  { %v4322_v57 = vpop.permute.xlu1 %644  ;;  %v4324_v27 = vpop.permute.xlu0 %634  ;;  %v1458_v25 = vmul.f32 %v3988_v18, %v1457_v51  ;;  %v1488_v36 = vmul.f32 %v3988_v18, %v1487_v33  ;;  %v1498_v61 = vmul.f32 %v3988_v18, %v1497_v32  ;;  %v1528_v34 = vmul.f32 %v3988_v18, %v1527_v14  ;;  %s4490_s5 = sld [smem:[#allocation2 + $0x63]]  ;;  %s4494_s6 = sld [smem:[#allocation2 + $0x89]] }
 0x100   :  { %v1537_v48 = vstv %s3322_s9  ;;  %v1646_v33 = vstv %s3343_s15  ;;  %s4503_s9 = sld [smem:[#allocation2 + $0x99]]  ;;  %s4514_s15 = sld [smem:[#allocation2 + $0x3]] }
 0x101   :  { %1250 = vrot.lane.b32.xlu1 %v1248_v21, %s3552_s17  ;;  %1240 = vrot.lane.b32.xlu0 %v1238_v3, %s3552_s17  ;;  %v1428_v3 = vmul.f32 %v3988_v18, %v1427_v12  ;;  %v1538_v23 = vmul.f32 %v3988_v18, %v1537_v48  ;;  %v1656_v14 = vstv %s3344_s16  ;;  %s4522_s16 = sld [smem:[#allocation2 + $0x8a]]  ;;  %s4529_s20 = sld [smem:[#allocation2 + $0x1f]] }
 0x103   :  { %v4330_v28 = vpop.permute.xlu1 %664  ;;  %v4332_v16 = vpop.permute.xlu0 %654 }
 0x105   :  { %1270 = vrot.lane.b32.xlu1 %v1268_v60, %s3552_s17  ;;  %1260 = vrot.lane.b32.xlu0 %v1258_v63, %s3552_s17  ;;  %v1437_v63 = vstv %s3312_s24  ;;  %s4465_s24 = sld [smem:[#allocation2 + $0x1d]] }
 0x107   :  { %v4338_v59 = vpop.permute.xlu1 %684  ;;  %v4340_v6 = vpop.permute.xlu0 %674 }
 0x109   :  { %1290 = vrot.lane.b32.xlu1 %v1288_v46, %s3553_s22  ;;  %1280 = vrot.lane.b32.xlu0 %v1278_v31, %s3553_s22  ;;  %v1438_v46 = vmul.f32 %v3988_v18, %v1437_v63  ;;  %v1467_v31 = vstv %s3315_s21  ;;  %v1567_v63 = vstv %s3325_s12  ;;  %s4469_s21 = sld [smem:[#allocation2 + $0x2]]  ;;  %s4508_s12 = sld [smem:[#allocation2 + $0x1e]] }
 0x10a   :  { %v1568_v51 = vmul.f32 %v3988_v18, %v1567_v63 }
 0x10b   :  { %v4346_v13 = vpop.permute.xlu1 %704  ;;  %v4348_v49 = vpop.permute.xlu0 %694 }
 0x10d   :  { %1310 = vrot.lane.b32.xlu1 %v1308_v26, %s3553_s22  ;;  %1300 = vrot.lane.b32.xlu0 %v1298_v29, %s3553_s22  ;;  %v1468_v29 = vmul.f32 %v3988_v18, %v1467_v31 }
 0x10f   :  { %v4354_v56 = vpop.permute.xlu1 %724  ;;  %v4356_v8 = vpop.permute.xlu0 %714 }
 0x111   :  { %1330 = vrot.lane.b32.xlu1 %v1328_v1, %s3553_s22  ;;  %1320 = vrot.lane.b32.xlu0 %v1318_v7, %s3553_s22  ;;  %v1477_v7 = vstv %s3316_s4  ;;  %s4484_s4 = sld [smem:[#allocation2 + $0x2d]] }
 0x113   :  { %v4362_v45 = vpop.permute.xlu1 %744  ;;  %v4364_v35 = vpop.permute.xlu0 %734 }
 0x115   :  { %1350 = vrot.lane.b32.xlu1 %v1348_v39, %s6373_s29  ;;  %1340 = vrot.lane.b32.xlu0 %v1338_v42, %s6373_s29  ;;  %v1478_v39 = vmul.f32 %v3988_v18, %v1477_v7  ;;  %v1507_v42 = vstv %s3319_s28  ;;  %s4488_s28 = sld [smem:[#allocation2 + $0x12]] }
 0x117   :  { %v4370_v50 = vpop.permute.xlu1 %764  ;;  %v4372_v0 = vpop.permute.xlu0 %754 }
 0x119   :  { %1370 = vrot.lane.b32.xlu1 %v1368_v53, %s6373_s29  ;;  %1360 = vrot.lane.b32.xlu0 %v1358_v40, %s6373_s29  ;;  %v1508_v40 = vmul.f32 %v3988_v18, %v1507_v42 }
 0x11b   :  { %v4378_v54 = vpop.permute.xlu1 %784  ;;  %v4380_v24 = vpop.permute.xlu0 %774 }
 0x11d   :  { %1390 = vrot.lane.b32.xlu1 %v1388_v30, %s6373_s29  ;;  %1380 = vrot.lane.b32.xlu0 %v1378_v38, %s6373_s29  ;;  %v1517_v38 = vstv %s3320_s7  ;;  %s4496_s7 = sld [smem:[#allocation2 + $0x48]] }
 0x11f   :  { %v4386_v20 = vpop.permute.xlu1 %804  ;;  %v4388_v21 = vpop.permute.xlu0 %794 }
 0x121   :  { %1410 = vrot.lane.b32.xlu1 %v1408_v10, %s3555_s11  ;;  %1400 = vrot.lane.b32.xlu0 %v1398_v11, %s3555_s11  ;;  %v1518_v10 = vmul.f32 %v3988_v18, %v1517_v38  ;;  %v1547_v11 = vstv %s3323_s8  ;;  %s4501_s8 = sld [smem:[#allocation2 + $0x6e]] }
 0x123   :  { %v4394_v60 = vpop.permute.xlu1 %824  ;;  %v4396_v44 = vpop.permute.xlu0 %814 }
 0x125   :  { %1430 = vrot.lane.b32.xlu1 %v1428_v3, %s3555_s11  ;;  %1420 = vrot.lane.b32.xlu0 %v1418_v37, %s3555_s11  ;;  %v1548_v37 = vmul.f32 %v3988_v18, %v1547_v11  ;;  %v1686_v11 = vstv %s3347_s2  ;;  %s4534_s2 = sld [smem:[#allocation2 + $0x4]] }
 0x127   :  { %v4402_v62 = vpop.permute.xlu1 %844  ;;  %v4404_v26 = vpop.permute.xlu0 %834 }
 0x129   :  { %1450 = vrot.lane.b32.xlu1 %v1448_v43, %s3555_s11  ;;  %1440 = vrot.lane.b32.xlu0 %v1438_v46, %s3555_s11  ;;  %v1557_v46 = vstv %s3324_s13  ;;  %s4510_s13 = sld [smem:[#allocation2 + $0x7e]] }
 0x12b   :  { %v4410_v1 = vpop.permute.xlu1 %864  ;;  %v4412_v55 = vpop.permute.xlu0 %854 }
 0x12d   :  { %1470 = vrot.lane.b32.xlu1 %v1468_v29, %s3556_s19  ;;  %1460 = vrot.lane.b32.xlu0 %v1458_v25, %s3556_s19  ;;  %v1558_v29 = vmul.f32 %v3988_v18, %v1557_v46  ;;  %v4453_v25 = vld [vmem:[%s6336_s0 + $0x8] ss:$4 sm:$0x3] }
 0x12e   :  { %v1647_v42 = vmul.f32 %v4453_v25, %v1646_v33  ;;  %v1687_v63 = vmul.f32 %v4453_v25, %v1686_v11  ;;  %v1696_v33 = vstv %s4469_s21  ;;  %v1077_v11 = vstv %s4484_s4  ;;  %s4549_s21 = sld [smem:[#allocation2 + $0x8b]]  ;;  %s4571_s4 = sld [smem:[#allocation2 + $0x5]] }
 0x12f   :  { %v4418_v52 = vpop.permute.xlu1 %884  ;;  %v4420_v53 = vpop.permute.xlu0 %874 }
 0x130   :  { %6412 = vst [vmem:[#allocation11_spill] sm:$0xff] %v4420_v53 }
 0x131   :  { %1490 = vrot.lane.b32.xlu1 %v1488_v36, %s3556_s19  ;;  %1480 = vrot.lane.b32.xlu0 %v1478_v39, %s3556_s19  ;;  %v1636_v36 = vstv %s3342_s18  ;;  %s4516_s18 = sld [smem:[#allocation2 + $0x54]] }
 0x132   :  { %v1637_v32 = vmul.f32 %v4453_v25, %v1636_v36 }
 0x133   :  { %v4426_v30 = vpop.permute.xlu1 %904  ;;  %v4428_v2 = vpop.permute.xlu0 %894 }
 0x134   :  { %6413 = vst [vmem:[#allocation16_spill] sm:$0xff] %v4426_v30  ;;  %6414 = vst [vmem:[#allocation17_spill] sm:$0xff] %v4428_v2 }
 0x135   :  { %1510 = vrot.lane.b32.xlu1 %v1508_v40, %s3556_s19  ;;  %1500 = vrot.lane.b32.xlu0 %v1498_v61, %s3556_s19  ;;  %v1666_v40 = vstv %s3345_s14  ;;  %s4520_s14 = sld [smem:[#allocation2 + $0x39]] }
 0x137   :  { %v4434_v12 = vpop.permute.xlu1 %924  ;;  %v4436_v3 = vpop.permute.xlu0 %914 }
 0x138   :  { %6415 = vst [vmem:[#allocation8_spill] sm:$0xff] %v4434_v12  ;;  %6416 = vst [vmem:[#allocation9_spill] sm:$0xff] %v4436_v3 }
 0x139   :  { %1530 = vrot.lane.b32.xlu1 %v1528_v34, %s3557_s25  ;;  %1520 = vrot.lane.b32.xlu0 %v1518_v10, %s3557_s25  ;;  %v1667_v34 = vmul.f32 %v4453_v25, %v1666_v40  ;;  %v1657_v10 = vmul.f32 %v4453_v25, %v1656_v14  ;;  %v1726_v40 = vstv %s4477_s27  ;;  %s4555_s27 = sld [smem:[#allocation2 + $0x70]] }
 0x13b   :  { %v4442_v43 = vpop.permute.xlu1 %944  ;;  %v4444_v31 = vpop.permute.xlu0 %934 }
 0x13c   :  { %6417 = vst [vmem:[#allocation10_spill] sm:$0xff] %v4442_v43  ;;  %6418 = vst [vmem:[#allocation12_spill] sm:$0xff] %v4444_v31 }
 0x13d   :  { %1550 = vrot.lane.b32.xlu1 %v1548_v37, %s3557_s25  ;;  %1540 = vrot.lane.b32.xlu0 %v1538_v23, %s3557_s25  ;;  %v1676_v37 = vstv %s4457_s23  ;;  %s4536_s23 = sld [smem:[#allocation2 + $0x55]] }
 0x13e   :  { %v1677_v46 = vmul.f32 %v4453_v25, %v1676_v37  ;;  %v1073_v37 = vstv %s4488_s28  ;;  %s4573_s28 = sld [smem:[#allocation2 + $0x56]] }
 0x13f   :  { %v4455_v7 = vpop.permute.xlu1 %964  ;;  %v4459_v39 = vpop.permute.xlu0 %954 }
 0x140   :  { %6419 = vst [vmem:[#allocation13_spill] sm:$0xff] %v4455_v7  ;;  %6420 = vst [vmem:[#allocation14_spill] sm:$0xff] %v4459_v39  ;;  %v1816_v39 = vstv %s4534_s2  ;;  %v1876_v7 = vstv %s4571_s4  ;;  %s4719_s2 = sld [smem:[#allocation2 + $0x58]]  ;;  %s4786_s4 = sld [smem:[#allocation2 + $0x59]] }
 0x141   :  { %1570 = vrot.lane.b32.xlu1 %v1568_v51, %s3557_s25  ;;  %1560 = vrot.lane.b32.xlu0 %v1558_v29, %s3557_s25  ;;  %v1706_v51 = vstv %s4465_s24  ;;  %s4543_s24 = sld [smem:[#allocation2 + $0x3a]] }
 0x143   :  { %v4467_v61 = vpop.permute.xlu1 %984  ;;  %v4471_v38 = vpop.permute.xlu0 %974 }
 0x144   :  { %6421 = vst [vmem:[#allocation15_spill] sm:$0xff] %v4467_v61  ;;  %6422 = vst [vmem:[#allocation18_spill] sm:$0xff] %v4471_v38  ;;  %v1906_v31 = vstv %s4573_s28  ;;  %s4802_s28 = sld [smem:[#allocation2 + $0x3e]] }
 0x145   :  { %1649 = vrot.lane.b32.xlu1 %v1647_v42, %s3550_s30  ;;  %1639 = vrot.lane.b32.xlu0 %v1637_v32, %s3550_s30  ;;  %v1707_v42 = vmul.f32 %v4453_v25, %v1706_v51  ;;  %v1697_v32 = vmul.f32 %v4453_v25, %v1696_v33  ;;  %v1746_v51 = vstv %s4494_s6  ;;  %v1081_v33 = vstv %s4496_s7  ;;  %s4585_s7 = sld [smem:[#allocation2 + $0x3b]]  ;;  %s4822_s6 = sld [smem:[#allocation2 + $0x74]] }
 0x147   :  { %v4479_v48 = vpop.permute.xlu1 %1004  ;;  %v4486_v23 = vpop.permute.xlu0 %994 }
 0x148   :  { %6423 = vst [vmem:[#allocation20_spill] sm:$0xff] %v4479_v48  ;;  %6424 = vst [vmem:[#allocation19_spill] sm:$0xff] %v4486_v23  ;;  %v1826_v48 = vstv %s4529_s20  ;;  %s4707_s20 = sld [smem:[#allocation2 + $0x7]] }
 0x149   :  { %1669 = vrot.lane.b32.xlu1 %v1667_v34, %s3550_s30  ;;  %1659 = vrot.lane.b32.xlu0 %v1657_v10, %s3550_s30  ;;  %v1716_v34 = vstv %s4482_s26  ;;  %s4557_s26 = sld [smem:[#allocation2 + $0x20]] }
 0x14b   :  { %v4505_v29 = vpop.permute.xlu1 %1024  ;;  %v4512_v36 = vpop.permute.xlu0 %1014 }
 0x14c   :  { %6425 = vst [vmem:[#allocation22_spill] sm:$0xff] %v4505_v29  ;;  %6426 = vst [vmem:[#allocation21_spill] sm:$0xff] %v4512_v36  ;;  %v1093_v36 = vstv %s4503_s9  ;;  %s4607_s9 = sld [smem:[#allocation2 + $0x71]] }
 0x14d   :  { %1689 = vrot.lane.b32.xlu1 %v1687_v63, %s3550_s30  ;;  %1679 = vrot.lane.b32.xlu0 %v1677_v46, %s3550_s30  ;;  %v1085_v63 = vstv %s4490_s5  ;;  %v1727_v46 = vmul.f32 %v4453_v25, %v1726_v40  ;;  %v4565_v40 = vmul.f32 %v3988_v18, %v1073_v37  ;;  %v3516_v37 = vld [vmem:[%s6336_s0 + $0x2] ss:$4 sm:$0x3]  ;;  %s4820_s5 = sld [smem:[#allocation2 + $0x8f]] }
 0x14f   :  { %v4531_v14 = vpop.permute.xlu1 %1044  ;;  %v4538_v10 = vpop.permute.xlu0 %1034  ;;  %6431 = vst [vmem:[#allocation27_spill] sm:$0xff] %v4565_v40  ;;  %v4581_v40 = vmul.f32 %v3516_v37, %v1081_v33  ;;  %v1806_v33 = vstv %s4522_s16  ;;  %s4681_s16 = sld [smem:[#allocation2 + $0x72]] }
 0x150   :  { %6427 = vst [vmem:[#allocation23_spill] sm:$0xff] %v4531_v14  ;;  %6428 = vst [vmem:[#allocation24_spill] sm:$0xff] %v4538_v10  ;;  %v1717_v14 = vmul.f32 %v4453_v25, %v1716_v34  ;;  %v1736_v10 = vstv %s4501_s8  ;;  %v1089_v34 = vstv %s4510_s13  ;;  %s4605_s8 = sld [smem:[#allocation2 + $0x8c]]  ;;  %s4628_s13 = sld [smem:[#allocation2 + $0x6]] }
 0x151   :  { %1709 = vrot.lane.b32.xlu1 %v1707_v42, %s3551_s10  ;;  %1699 = vrot.lane.b32.xlu0 %v1697_v32, %s3551_s10  ;;  %v4562_v42 = vmul.f32 %v3988_v18, %v1077_v11  ;;  %v4568_v32 = vmul.f32 %v3988_v18, %v1085_v63  ;;  %v1747_v11 = vmul.f32 %v4453_v25, %v1746_v51  ;;  %v1766_v18 = vstv %s4508_s12  ;;  %s4615_s12 = sld [smem:[#allocation2 + $0x21]] }
 0x152   :  { %6434 = vst [vmem:[#allocation30_spill] sm:$0xff] %v4581_v40  ;;  %v1756_v63 = vstv %s4514_s15  ;;  %v1776_v51 = vstv %s4520_s14  ;;  %v1796_v40 = vstv %s4527_s1  ;;  %v1767_v61 = vmul.f32 %v4453_v25, %v1766_v18  ;;  %s4654_s15 = sld [smem:[#allocation2 + $0x57]]  ;;  %s4668_s14 = sld [smem:[#allocation2 + $0x8d]] }
 0x153   :  { %v4559_v29 = vpop.permute.xlu1 %1064  ;;  %6430 = vst [vmem:[#allocation26_spill] sm:$0xff] %v4562_v42  ;;  %6432 = vst [vmem:[#allocation28_spill] sm:$0xff] %v4568_v32  ;;  %v4575_v23 = vpop.permute.xlu0 %1054  ;;  %v1737_v32 = vmul.f32 %v4453_v25, %v1736_v10  ;;  %v4589_v42 = vmul.f32 %v3516_v37, %v1093_v36  ;;  %v1846_v10 = vstv %s4536_s23  ;;  %v606_v36 = vrot.slane %v4296_v22, 1  ;;  %s4705_s1 = sld [smem:[#allocation2 + $0x22]]  ;;  %s4729_s23 = sld [smem:[#allocation2 + $0x3d]] }
 0x154   :  { %6429 = vst [vmem:[#allocation25_spill] sm:$0xff] %v4559_v29  ;;  %6433 = vst [vmem:[#allocation29_spill] sm:$0xff] %v4575_v23  ;;  %v1786_v23 = vstv %s4516_s18  ;;  %v4594_v29 = vmul.f32 %v3516_v37, %v1089_v34  ;;  %v1777_v37 = vmul.f32 %v4453_v25, %v1776_v51  ;;  %v1836_v18 = vstv %s4543_s24  ;;  %s4656_s18 = sld [smem:[#allocation2 + $0x3c]]  ;;  %s4739_s24 = sld [smem:[#allocation2 + $0x8e]] }
 0x155   :  { %1729 = vrot.lane.b32.xlu1 %v1727_v46, %s3551_s10  ;;  %6435 = vst [vmem:[#allocation31_spill] sm:$0xff] %v4589_v42  ;;  %1719 = vrot.lane.b32.xlu0 %v1717_v14, %s3551_s10  ;;  %v1757_v46 = vmul.f32 %v4453_v25, %v1756_v63  ;;  %v1787_v34 = vmul.f32 %v4453_v25, %v1786_v23  ;;  %v596_v63 = vrot.slane %v4299_v41, 1  ;;  %v1916_v2 = vstv %s4607_s9  ;;  %s4865_s9 = sld [smem:[#allocation2 + $0x5b]] }
 0x156   :  { %6436 = vst [vmem:[#allocation32_spill] sm:$0xff] %v4594_v29  ;;  %v4620_v29 = vmul.f32 %v4453_v25, %v1806_v33  ;;  %v4623_v42 = vmul.f32 %v4453_v25, %v1796_v40  ;;  %v4626_v23 = vmul.f32 %v4453_v25, %v1826_v48  ;;  %v4632_v51 = vmul.f32 %v4453_v25, %v1816_v39 }
 0x157   :  { %v4599_v38 = vpop.permute.xlu1 %1110  ;;  %v4610_v14 = vpop.permute.xlu0 %1100  ;;  %v1856_v33 = vstv %s4555_s27  ;;  %v4642_v40 = vmul.f32 %v4453_v25, %v1836_v18  ;;  %v1886_v48 = vstv %s4557_s26  ;;  %v607_v43 = vsel %vm83_vm0, %v4296_v22, %v606_v36  ;;  %s4775_s27 = sld [smem:[#allocation2 + $0x23]]  ;;  %s4777_s26 = sld [smem:[#allocation2 + $0x8]] }
 0x158   :  { %6437 = vst [vmem:[#allocation33_spill] sm:$0xff] %v4599_v38  ;;  %6438 = vst [vmem:[#allocation34_spill] sm:$0xff] %v4610_v14  ;;  %v4635_v14 = vmul.f32 %v4453_v25, %v1846_v10  ;;  %v616_v39 = vrot.slane %v4315_v17, 1  ;;  %v1896_v10 = vstv %s4585_s7  ;;  %v597_v18 = vsel %vm83_vm0, %v4299_v41, %v596_v63  ;;  %s4832_s7 = sld [smem:[#allocation2 + $0x25]] }
 0x159   :  { %1749 = vrot.lane.b32.xlu1 %v1747_v11, %s3551_s10  ;;  %1739 = vrot.lane.b32.xlu0 %v1737_v32, %s3551_s10  ;;  %v1866_v11 = vstv %s4549_s21  ;;  %v626_v32 = vrot.slane %v4312_v9, 1  ;;  %v4666_v36 = vmul.f32 %v4453_v25, %v1856_v33  ;;  %v4673_v41 = vmul.f32 %v4453_v25, %v1886_v48  ;;  %s4749_s21 = sld [smem:[#allocation2 + $0x73]] }
 0x15a   :  { %v4663_v22 = vmul.f32 %v4453_v25, %v1866_v11  ;;  %v4676_v63 = vmul.f32 %v4453_v25, %v1876_v7  ;;  %v609_v11 = vadd.f32 %v607_v43, %v4260_v4  ;;  %v4687_v12 = vmul.f32 %v4453_v25, %v1896_v10 }
 0x15b   :  { %v4639_v38 = vpop.permute.xlu1 %1130  ;;  %v4651_v3 = vpop.permute.xlu0 %1120  ;;  %v599_v48 = vadd.f32 %v597_v18, %v4267_v5  ;;  %v627_v7 = vsel %vm83_vm0, %v4312_v9, %v626_v32  ;;  %v1946_v53 = vstv %s4615_s12  ;;  %v666_v43 = vrot.slane %v4330_v28, 1  ;;  %s4867_s12 = sld [smem:[#allocation2 + $0x40]] }
 0x15c   :  { %6439 = vst [vmem:[#allocation35_spill] sm:$0xff] %v4639_v38  ;;  %6440 = vst [vmem:[#allocation36_spill] sm:$0xff] %v4651_v3  ;;  %v646_v38 = vrot.slane %v4322_v57, 1  ;;  %v636_v3 = vrot.slane %v4324_v27, 1  ;;  %v656_v10 = vrot.slane %v4332_v16, 1  ;;  %v686_v9 = vrot.slane %v4338_v59, 1 }
 0x15d   :  { %1769 = vrot.lane.b32.xlu1 %v1767_v61, %s3552_s17  ;;  %1759 = vrot.lane.b32.xlu0 %v1757_v46, %s3552_s17  ;;  %v4679_v61 = vmul.f32 %v4453_v25, %v1906_v31  ;;  %v1926_v46 = vstv %s4605_s8  ;;  %v617_v31 = vsel %vm83_vm0, %v4315_v17, %v616_v39  ;;  %v4727_v32 = vmul.f32 %v4453_v25, %v1946_v53  ;;  %s4843_s8 = sld [smem:[#allocation2 + $0xa]] }
 0x15e   :  { %v647_v4 = vsel %vm83_vm0, %v4322_v57, %v646_v38  ;;  %v637_v5 = vsel %vm83_vm0, %v4324_v27, %v636_v3  ;;  %v4714_v17 = vmul.f32 %v4453_v25, %v1926_v46  ;;  %v4717_v57 = vmul.f32 %v4453_v25, %v1916_v2 }
 0x15f   :  { %v4684_v33 = vpop.permute.xlu1 %1150  ;;  %v4696_v30 = vpop.permute.xlu0 %1140  ;;  %v629_v38 = vadd.f32 %v627_v7, %v4281_v47  ;;  %v676_v27 = vrot.slane %v4340_v6, 1  ;;  %v1966_v47 = vstv %s4654_s15  ;;  %v1956_v18 = vstv %s4656_s18  ;;  %s5318_s15 = sld [smem:[#allocation2 + $0x93]]  ;;  %s3413_s18 = sld [smem:[#allocation2 + $0x78]] }
 0x160   :  { %6441 = vst [vmem:[#allocation37_spill] sm:$0xff] %v4684_v33  ;;  %v1936_v33 = vstv %s4628_s13  ;;  %v667_v53 = vsel %vm144_vm1, %v4330_v28, %v666_v43  ;;  %v657_v46 = vsel %vm144_vm1, %v4332_v16, %v656_v10  ;;  %v706_v7 = vrot.slane %v4346_v13, 1  ;;  %s4886_s13 = sld [smem:[#allocation2 + $0x91]] }
 0x161   :  { %1789 = vrot.lane.b32.xlu1 %v1787_v34, %s3552_s17  ;;  %1779 = vrot.lane.b32.xlu0 %v1777_v37, %s3552_s17  ;;  %v619_v34 = vadd.f32 %v617_v31, %v4290_v58  ;;  %v649_v37 = vadd.f32 %v647_v4, %v4304_v15  ;;  %v4735_v39 = vmul.f32 %v4453_v25, %v1936_v33  ;;  %v1986_v15 = vstv %s4668_s14  ;;  %s4910_s14 = sld [smem:[#allocation2 + $0x76]] }
 0x162   :  { %v639_v58 = vadd.f32 %v637_v5, %v4309_v19  ;;  %v687_v33 = vsel %vm144_vm1, %v4338_v59, %v686_v9  ;;  %v696_v31 = vrot.slane %v4348_v49, 1  ;;  %v1976_v19 = vstv %s4681_s16  ;;  %s4919_s16 = sld [smem:[#allocation2 + $0x26]] }
 0x163   :  { %v4724_v3 = vpop.permute.xlu1 %1170  ;;  %v4732_v2 = vpop.permute.xlu0 %1160  ;;  %v677_v28 = vsel %vm144_vm1, %v4340_v6, %v676_v27  ;;  %v726_v16 = vrot.slane %v4354_v56, 1  ;;  %v4764_v4 = vmul.f32 %v4453_v25, %v1966_v47  ;;  %v4767_v59 = vmul.f32 %v4453_v25, %v1956_v18 }
 0x164   :  { %v669_v43 = vadd.f32 %v667_v53, %v609_v11  ;;  %v659_v10 = vadd.f32 %v657_v46, %v599_v48  ;;  %v4773_v6 = vmul.f32 %v4453_v25, %v1986_v15  ;;  %v689_v9 = vadd.f32 %v687_v33, %v629_v38 }
 0x165   :  { %1809 = vrot.lane.b32.xlu1 %v4620_v29, %s3552_s17  ;;  %1799 = vrot.lane.b32.xlu0 %v4623_v42, %s3552_s17  ;;  %v716_v42 = vrot.slane %v4356_v8, 1  ;;  %v4782_v11 = vmul.f32 %v4453_v25, %v1976_v19  ;;  %v2006_v48 = vstv %s4705_s1  ;;  %v1996_v27 = vstv %s4707_s20  ;;  %s4943_s1 = sld [smem:[#allocation2 + $0xb]]  ;;  %s5015_s20 = sld [smem:[#allocation2 + $0x5c]] }
 0x166   :  { %v679_v47 = vadd.f32 %v677_v28, %v619_v34  ;;  %v707_v18 = vsel %vm144_vm1, %v4346_v13, %v706_v7  ;;  %v697_v53 = vsel %vm144_vm1, %v4348_v49, %v696_v31  ;;  %v2026_v38 = vstv %s4719_s2  ;;  %s5024_s2 = sld [smem:[#allocation2 + $0x41]] }
 0x167   :  { %v4761_v29 = vpop.permute.xlu1 %1190  ;;  %v4770_v5 = vpop.permute.xlu0 %1180  ;;  %v746_v46 = vrot.slane %v4362_v45, 1  ;;  %v736_v15 = vrot.slane %v4364_v35, 1  ;;  %v2016_v34 = vstv %s4729_s23  ;;  %v717_v13 = vsel %vm205_vm2, %v4356_v8, %v716_v42  ;;  %s5051_s23 = sld [smem:[#allocation2 + $0x92]] }
 0x168   :  { %v4812_v7 = vmul.f32 %v4453_v25, %v1996_v27  ;;  %v709_v31 = vadd.f32 %v707_v18, %v649_v37  ;;  %v766_v19 = vrot.slane %v4370_v50, 1  ;;  %v756_v28 = vrot.slane %v4372_v0, 1 }
 0x169   :  { %1829 = vrot.lane.b32.xlu1 %v4626_v23, %s3553_s22  ;;  %1819 = vrot.lane.b32.xlu0 %v4632_v51, %s3553_s22  ;;  %v727_v23 = vsel %vm205_vm2, %v4354_v56, %v726_v16  ;;  %v4809_v51 = vmul.f32 %v4453_v25, %v2006_v48  ;;  %v2046_v56 = vstv %s4739_s24  ;;  %v2036_v16 = vstv %s4749_s21  ;;  %s5086_s24 = sld [smem:[#allocation2 + $0x77]] }
 0x16a   :  { %v699_v8 = vadd.f32 %v697_v53, %v639_v58  ;;  %v729_v42 = vadd.f32 %v727_v23, %v669_v43  ;;  %v4827_v37 = vmul.f32 %v4453_v25, %v2026_v38  ;;  %v4830_v48 = vmul.f32 %v4453_v25, %v2016_v34  ;;  %s5264_s21 = sld [smem:[#allocation2 + $0x27]] }
 0x16b   :  { %v4799_v33 = vpop.permute.xlu1 %1210  ;;  %v4806_v49 = vpop.permute.xlu0 %1200  ;;  %v747_v27 = vsel %vm205_vm2, %v4362_v45, %v746_v46  ;;  %v737_v58 = vsel %vm205_vm2, %v4364_v35, %v736_v15  ;;  %v786_v18 = vrot.slane %v4378_v54, 1  ;;  %v4849_v38 = vmul.f32 %v4453_v25, %v2036_v16 }
 0x16c   :  { %v2056_v23 = vstv %s4777_s26  ;;  %v767_v45 = vsel %vm205_vm2, %v4370_v50, %v766_v19  ;;  %v757_v35 = vsel %vm205_vm2, %v4372_v0, %v756_v28  ;;  %v776_v46 = vrot.slane %v4380_v24, 1  ;;  %s3419_s26 = sld [smem:[#allocation2 + $0x79]] }
 0x16d   :  { %1849 = vrot.lane.b32.xlu1 %v4635_v14, %s3553_s22  ;;  %1839 = vrot.lane.b32.xlu0 %v4642_v40, %s3553_s22  ;;  %v719_v14 = vadd.f32 %v717_v13, %v659_v10  ;;  %v4841_v40 = vmul.f32 %v4453_v25, %v2046_v56  ;;  %v2066_v10 = vstv %s4775_s27  ;;  %v2086_v15 = vstv %s4786_s4  ;;  %s5268_s27 = sld [smem:[#allocation2 + $0xc]]  ;;  %s3422_s4 = sld [smem:[#allocation2 + $0x29]] }
 0x16e   :  { %v749_v34 = vadd.f32 %v747_v27, %v689_v9  ;;  %v739_v13 = vadd.f32 %v737_v58, %v679_v47  ;;  %v806_v56 = vrot.slane %v4386_v20, 1  ;;  %v796_v16 = vrot.slane %v4388_v21, 1 }
 0x16f   :  { %v4838_v43 = vpop.permute.xlu1 %1230  ;;  %v4846_v53 = vpop.permute.xlu0 %1220  ;;  %v826_v50 = vrot.slane %v4394_v60, 1  ;;  %v4876_v9 = vmul.f32 %v4453_v25, %v2056_v23  ;;  %v2076_v47 = vstv %s4802_s28  ;;  %v769_v19 = vadd.f32 %v767_v45, %v709_v31  ;;  %s3421_s28 = sld [smem:[#allocation2 + $0xe]] }
 0x170   :  { %v787_v28 = vsel %vm266_vm3, %v4378_v54, %v786_v18  ;;  %v4884_v58 = vmul.f32 %v4453_v25, %v2086_v15  ;;  %v816_v23 = vrot.slane %v4396_v44, 1  ;;  %v2106_v31 = vstv %s4820_s5  ;;  %s3424_s5 = sld [smem:[#allocation2 + $0x5f]] }
 0x171   :  { %1869 = vrot.lane.b32.xlu1 %v4663_v22, %s3553_s22  ;;  %1859 = vrot.lane.b32.xlu0 %v4666_v36, %s3553_s22  ;;  %v4873_v22 = vmul.f32 %v4453_v25, %v2066_v10  ;;  %v759_v36 = vadd.f32 %v757_v35, %v699_v8  ;;  %v777_v10 = vsel %vm266_vm3, %v4380_v24, %v776_v46  ;;  %v2096_v8 = vstv %s4822_s6  ;;  %v4907_v24 = vld [vmem:[%s6336_s0 + $0x9] ss:$4 sm:$0x3]  ;;  %s5290_s6 = sld [smem:[#allocation2 + $0x5d]] }
 0x172   :  { %6442 = vst [vmem:[#allocation38_spill] sm:$0xff] %v4884_v58  ;;  %v807_v54 = vsel %vm266_vm3, %v4386_v20, %v806_v56  ;;  %v797_v18 = vsel %vm266_vm3, %v4388_v21, %v796_v16  ;;  %v4902_v45 = vmul.f32 %v4453_v25, %v2076_v47  ;;  %v827_v20 = vsel %vm266_vm3, %v4394_v60, %v826_v50 }
 0x173   :  { %v4870_v0 = vpop.permute.xlu1 %1250  ;;  %v4881_v27 = vpop.permute.xlu0 %1240  ;;  %v846_v35 = vrot.slane %v4402_v62, 1  ;;  %v836_v21 = vrot.slane %v4404_v26, 1  ;;  %v789_v15 = vadd.f32 %v787_v28, %v729_v42  ;;  %v779_v56 = vadd.f32 %v777_v10, %v719_v14 }
 0x174   :  { %6443 = vst [vmem:[#allocation39_spill] sm:$0xff] %v4902_v45  ;;  %v4924_v47 = vmul.f32 %v4453_v25, %v2106_v31  ;;  %v4927_v60 = vmul.f32 %v4453_v25, %v2096_v8  ;;  %v809_v50 = vadd.f32 %v807_v54, %v749_v34  ;;  %v799_v45 = vadd.f32 %v797_v18, %v739_v13 }
 0x175   :  { %1889 = vrot.lane.b32.xlu1 %v4673_v41, %s6373_s29  ;;  %1879 = vrot.lane.b32.xlu0 %v4676_v63, %s6373_s29  ;;  %v2152_v41 = vstv %s4832_s7  ;;  %v2142_v63 = vstv %s4843_s8  ;;  %v817_v58 = vsel %vm266_vm3, %v4396_v44, %v816_v23  ;;  %v829_v42 = vadd.f32 %v827_v20, %v769_v19  ;;  %v6449_v23 = vld [vmem:[#allocation11_spill] sm:$0xff]  ;;  %s5294_s7 = sld [smem:[#allocation2 + $0x42]] }
 0x176   :  { %6445 = vst [vmem:[#allocation41_spill] sm:$0xff] %v4924_v47  ;;  %6446 = vst [vmem:[#allocation42_spill] sm:$0xff] %v4927_v60  ;;  %v4939_v14 = vmul.f32 %v4907_v24, %v2142_v63  ;;  %v2172_v25 = vstv %s4865_s9  ;;  %v2162_v34 = vstv %s4867_s12  ;;  %v847_v44 = vsel %vm327_vm4, %v4402_v62, %v846_v35  ;;  %v6451_v62 = vld [vmem:[#allocation16_spill] sm:$0xff]  ;;  %s3425_s8 = sld [smem:[#allocation2 + $0x7a]]  ;;  %s5395_s12 = sld [smem:[#allocation2 + $0xf]] }
 0x177   :  { %v4916_v46 = vpop.permute.xlu1 %1270  ;;  %v4921_v16 = vpop.permute.xlu0 %1260  ;;  %v866_v13 = vrot.slane %v4410_v1, 1  ;;  %v856_v19 = vrot.slane %v4412_v55, 1  ;;  %v886_v10 = vrot.slane %v4418_v52, 1  ;;  %v876_v31 = vrot.slane %v6449_v23, 1  ;;  %s5391_s9 = sld [smem:[#allocation2 + $0x2a]] }
 0x178   :  { %6444 = vst [vmem:[#allocation40_spill] sm:$0xff] %v4916_v46  ;;  %v4934_v46 = vmul.f32 %v4907_v24, %v2152_v41  ;;  %6448 = vst [vmem:[#allocation44_spill] sm:$0xff] %v4939_v14  ;;  %v2192_v54 = vstv %s4886_s13  ;;  %v906_v18 = vrot.slane %v6451_v62, 1  ;;  %v6452_v41 = vld [vmem:[#allocation17_spill] sm:$0xff]  ;;  %v4963_v20 = vmul.f32 %v4907_v24, %v2172_v25  ;;  %s5403_s13 = sld [smem:[#allocation2 + $0x60]] }
 0x179   :  { %1909 = vrot.lane.b32.xlu1 %v4679_v61, %s6373_s29  ;;  %1899 = vrot.lane.b32.xlu0 %v4687_v12, %s6373_s29  ;;  %v837_v61 = vsel %vm327_vm4, %v4404_v26, %v836_v21  ;;  %v819_v12 = vadd.f32 %v817_v58, %v759_v36  ;;  %v896_v26 = vrot.slane %v6452_v41, 1  ;;  %v4966_v36 = vmul.f32 %v4907_v24, %v2162_v34 }
 0x17a   :  { %6447 = vst [vmem:[#allocation43_spill] sm:$0xff] %v4934_v46  ;;  %6453 = vst [vmem:[#allocation16_spill] sm:$0xff] %v4963_v20  ;;  %v849_v58 = vadd.f32 %v847_v44, %v789_v15  ;;  %v839_v35 = vadd.f32 %v837_v61, %v779_v56  ;;  %v2182_v63 = vstv %s4910_s14  ;;  %v867_v14 = vsel %vm327_vm4, %v4410_v1, %v866_v13  ;;  %v6457_v56 = vld [vmem:[#allocation8_spill] sm:$0xff]  ;;  %v6458_v61 = vld [vmem:[#allocation9_spill] sm:$0xff]  ;;  %s5413_s14 = sld [smem:[#allocation2]] }
 0x17b   :  { %v4951_v28 = vpop.permute.xlu1 %1290  ;;  %v4955_v8 = vpop.permute.xlu0 %1280  ;;  %6454 = vst [vmem:[#allocation17_spill] sm:$0xff] %v4966_v36  ;;  %v857_v46 = vsel %vm327_vm4, %v4412_v55, %v856_v19  ;;  %v4978_v25 = vmul.f32 %v4907_v24, %v2192_v54  ;;  %v2212_v34 = vstv %s4919_s16  ;;  %v887_v15 = vsel %vm327_vm4, %v4418_v52, %v886_v10  ;;  %v6460_v54 = vld [vmem:[#allocation10_spill] sm:$0xff]  ;;  %v6463_v20 = vld [vmem:[#allocation13_spill] sm:$0xff]  ;;  %s5417_s16 = sld [smem:[#allocation2 + $0x51]] }
 0x17c   :  { %6450 = vst [vmem:[#allocation11_spill] sm:$0xff] %v4955_v8  ;;  %v926_v44 = vrot.slane %v6457_v56, 1  ;;  %v916_v1 = vrot.slane %v6458_v61, 1  ;;  %v907_v55 = vsel %vm388_vm5, %v6451_v62, %v906_v18  ;;  %v897_v19 = vsel %vm388_vm5, %v6452_v41, %v896_v26 }
 0x17d   :  { %1929 = vrot.lane.b32.xlu1 %v4714_v17, %s6373_s29  ;;  %1919 = vrot.lane.b32.xlu0 %v4717_v57, %s6373_s29  ;;  %6456 = vst [vmem:[#allocation46_spill] sm:$0xff] %v4978_v25  ;;  %v877_v57 = vsel %vm327_vm4, %v6449_v23, %v876_v31  ;;  %v946_v21 = vrot.slane %v6460_v54, 1  ;;  %v4997_v52 = vmul.f32 %v4907_v24, %v2182_v63  ;;  %v6462_v31 = vld [vmem:[#allocation12_spill] sm:$0xff]  ;;  %v966_v41 = vrot.slane %v6463_v20, 1 }
 0x17e   :  { %v869_v10 = vadd.f32 %v867_v14, %v809_v50  ;;  %v859_v23 = vadd.f32 %v857_v46, %v799_v45  ;;  %v936_v25 = vrot.slane %v6462_v31, 1  ;;  %v889_v62 = vadd.f32 %v887_v15, %v829_v42  ;;  %v6467_v42 = vld [vmem:[#allocation14_spill] sm:$0xff] }
 0x17f   :  { %v4975_v17 = vpop.permute.xlu1 %1310  ;;  %v4987_v13 = vpop.permute.xlu0 %1300  ;;  %6461 = vst [vmem:[#allocation9_spill] sm:$0xff] %v4997_v52  ;;  %v879_v18 = vadd.f32 %v877_v57, %v819_v12  ;;  %v5007_v60 = vmul.f32 %v4907_v24, %v2212_v34  ;;  %v899_v63 = vadd.f32 %v897_v19, %v839_v35  ;;  %v927_v45 = vsel %vm388_vm5, %v6457_v56, %v926_v44  ;;  %v6468_v12 = vld [vmem:[#allocation15_spill] sm:$0xff]  ;;  %v6469_v15 = vld [vmem:[#allocation18_spill] sm:$0xff]  ;;  %v6470_v57 = vld [vmem:[#allocation20_spill] sm:$0xff] }
 0x180   :  { %6455 = vst [vmem:[#allocation45_spill] sm:$0xff] %v4975_v17  ;;  %6459 = vst [vmem:[#allocation8_spill] sm:$0xff] %v4987_v13  ;;  %v917_v46 = vsel %vm388_vm5, %v6458_v61, %v916_v1  ;;  %v956_v14 = vrot.slane %v6467_v42, 1  ;;  %v986_v34 = vrot.slane %v6468_v12, 1  ;;  %v937_v35 = vsel %vm388_vm5, %v6462_v31, %v936_v25  ;;  %v6471_v44 = vld [vmem:[#allocation19_spill] sm:$0xff]  ;;  %v6472_v1 = vld [vmem:[#allocation22_spill] sm:$0xff] }
 0x181   :  { %1949 = vrot.lane.b32.xlu1 %v4727_v32, %s3555_s11  ;;  %1939 = vrot.lane.b32.xlu0 %v4735_v39, %s3555_s11  ;;  %6465 = vst [vmem:[#allocation12_spill] sm:$0xff] %v5007_v60  ;;  %v909_v32 = vadd.f32 %v907_v55, %v849_v58  ;;  %v947_v39 = vsel %vm388_vm5, %v6460_v54, %v946_v21  ;;  %v976_v58 = vrot.slane %v6469_v15, 1  ;;  %v1006_v56 = vrot.slane %v6470_v57, 1  ;;  %v6473_v19 = vld [vmem:[#allocation21_spill] sm:$0xff]  ;;  %v6475_v60 = vld [vmem:[#allocation24_spill] sm:$0xff] }
 0x182   :  { %v996_v61 = vrot.slane %v6471_v44, 1  ;;  %v1026_v21 = vrot.slane %v6472_v1, 1  ;;  %v967_v55 = vsel %vm449_vm6, %v6463_v20, %v966_v41  ;;  %v1016_v54 = vrot.slane %v6473_v19, 1 }
 0x183   :  { %v5004_v26 = vpop.permute.xlu1 %1330  ;;  %v5013_v50 = vpop.permute.xlu0 %1320  ;;  %v1036_v52 = vrot.slane %v6475_v60, 1  ;;  %v929_v25 = vadd.f32 %v927_v45, %v869_v10  ;;  %v919_v31 = vadd.f32 %v917_v46, %v859_v23  ;;  %v939_v8 = vadd.f32 %v937_v35, %v879_v18  ;;  %v6477_v46 = vld [vmem:[#allocation29_spill] sm:$0xff] }
 0x184   :  { %6464 = vst [vmem:[#allocation10_spill] sm:$0xff] %v5004_v26  ;;  %6466 = vst [vmem:[#allocation13_spill] sm:$0xff] %v5013_v50  ;;  %v949_v50 = vadd.f32 %v947_v39, %v889_v62  ;;  %v6476_v26 = vld [vmem:[#allocation25_spill] sm:$0xff]  ;;  %v987_v20 = vsel %vm449_vm6, %v6468_v12, %v986_v34  ;;  %v977_v41 = vsel %vm449_vm6, %v6469_v15, %v976_v58  ;;  %v1056_v39 = vrot.slane %v6477_v46, 1 }
 0x185   :  { %1969 = vrot.lane.b32.xlu1 %v4764_v4, %s3555_s11  ;;  %1959 = vrot.lane.b32.xlu0 %v4767_v59, %s3555_s11  ;;  %v6474_v4 = vld [vmem:[#allocation23_spill] sm:$0xff]  ;;  %v1066_v13 = vrot.slane %v6476_v26, 1  ;;  %v957_v59 = vsel %vm449_vm6, %v6467_v42, %v956_v14  ;;  %v969_v10 = vadd.f32 %v967_v55, %v909_v32  ;;  %v1007_v23 = vsel %vm449_vm6, %v6470_v57, %v1006_v56  ;;  %v6481_v55 = vld [vmem:[#allocation36_spill] sm:$0xff] }
 0x186   :  { %v1046_v36 = vrot.slane %v6474_v4, 1  ;;  %v997_v62 = vsel %vm449_vm6, %v6471_v44, %v996_v61  ;;  %v1027_v18 = vsel %vm510_vm7, %v6472_v1, %v1026_v21  ;;  %v1037_v45 = vsel %vm510_vm7, %v6475_v60, %v1036_v52  ;;  %v6480_v1 = vld [vmem:[#allocation35_spill] sm:$0xff] }
 0x187   :  { %v5038_v47 = vpop.permute.xlu1 %1350  ;;  %v5041_v17 = vpop.permute.xlu0 %1340  ;;  %v959_v14 = vadd.f32 %v957_v59, %v899_v63  ;;  %v989_v12 = vadd.f32 %v987_v20, %v929_v25  ;;  %v979_v34 = vadd.f32 %v977_v41, %v919_v31  ;;  %v1067_v15 = vsel %vm510_vm7, %v6476_v26, %v1066_v13  ;;  %v6478_v26 = vld [vmem:[#allocation33_spill] sm:$0xff] }
 0x188   :  { %v1047_v32 = vsel %vm510_vm7, %v6474_v4, %v1046_v36  ;;  %v1009_v58 = vadd.f32 %v1007_v23, %v949_v50  ;;  %v999_v35 = vadd.f32 %v997_v62, %v939_v8  ;;  %v2232_v36 = vstv %s5015_s20  ;;  %v6479_v50 = vld [vmem:[#allocation34_spill] sm:$0xff]  ;;  %s5424_s20 = sld [smem:[#allocation2 + $0x36]] }
 0x189   :  { %1989 = vrot.lane.b32.xlu1 %v4773_v6, %s3555_s11  ;;  %1979 = vrot.lane.b32.xlu0 %v4782_v11, %s3555_s11  ;;  %v1017_v6 = vsel %vm510_vm7, %v6473_v19, %v1016_v54  ;;  %v2222_v57 = vstv %s5024_s2  ;;  %v1029_v60 = vadd.f32 %v1027_v18, %v969_v10  ;;  %v1049_v56 = vadd.f32 %v1047_v32, %v989_v12  ;;  %v6482_v54 = vld [vmem:[#allocation37_spill] sm:$0xff]  ;;  %v6484_v62 = vld [vmem:[#allocation26_spill] sm:$0xff]  ;;  %s3416_s2 = sld [smem:[#allocation2 + $0x28]] }
 0x18a   :  { %v1019_v52 = vadd.f32 %v1017_v6, %v959_v14  ;;  %v1039_v44 = vadd.f32 %v1037_v45, %v979_v34  ;;  %v1069_v63 = vadd.f32 %v1067_v15, %v1009_v58  ;;  %v1057_v13 = vsel %vm510_vm7, %v6477_v46, %v1056_v39  ;;  %v6485_v6 = vld [vmem:[#allocation27_spill] sm:$0xff]  ;;  %v6486_v45 = vld [vmem:[#allocation28_spill] sm:$0xff]  ;;  %v6487_v14 = vld [vmem:[#allocation30_spill] sm:$0xff] }
 0x18b   :  { %v5068_v42 = vpop.permute.xlu1 %1370  ;;  %v5072_v11 = vpop.permute.xlu0 %1360  ;;  %v1112_v8 = vrot.slane %v6478_v26, 1  ;;  %v1102_v61 = vrot.slane %v6479_v50, 1  ;;  %v1132_v21 = vrot.slane %v6480_v1, 1  ;;  %v1122_v19 = vrot.slane %v6481_v55, 1  ;;  %v6488_v34 = vld [vmem:[#allocation31_spill] sm:$0xff] }
 0x18c   :  { %v1152_v4 = vrot.slane %v6482_v54, 1  ;;  %v6483_v31 = vstv %s4943_s1  ;;  %v5102_v20 = vmul.f32 %v4907_v24, %v2232_v36  ;;  %v5105_v41 = vmul.f32 %v4907_v24, %v2222_v57  ;;  %s5422_s1 = sld [smem:[#allocation2 + $0x96]] }
 0x18d   :  { %2009 = vrot.lane.b32.xlu1 %v4809_v51, %s3556_s19  ;;  %1999 = vrot.lane.b32.xlu0 %v4812_v7, %s3556_s19  ;;  %v1142_v7 = vrot.slane %v4696_v30, 1  ;;  %v5099_v59 = vmul.f32 %v4907_v24, %v6483_v31  ;;  %v2252_v10 = vstv %s5051_s23  ;;  %v1059_v23 = vadd.f32 %v1057_v13, %v999_v35  ;;  %v6489_v13 = vld [vmem:[#allocation32_spill] sm:$0xff]  ;;  %s3415_s23 = sld [smem:[#allocation2 + $0xd]] }
 0x18e   :  { %v1079_v18 = vadd.f32 %v6484_v62, %v1029_v60  ;;  %v1075_v32 = vadd.f32 %v6485_v6, %v1019_v52  ;;  %v1087_v46 = vadd.f32 %v6486_v45, %v1049_v56  ;;  %v1103_v39 = vsel %vm83_vm0, %v6479_v50, %v1102_v61 }
 0x18f   :  { %v5084_v51 = vpop.permute.xlu1 %1390  ;;  %v5092_v25 = vpop.permute.xlu0 %1380  ;;  %v1083_v12 = vadd.f32 %v6487_v14, %v1039_v44  ;;  %v1095_v15 = vadd.f32 %v6488_v34, %v1069_v63  ;;  %v1133_v35 = vsel %vm83_vm0, %v6480_v1, %v1132_v21  ;;  %v1123_v36 = vsel %vm83_vm0, %v6481_v55, %v1122_v19 }
 0x190   :  { %v1143_v57 = vsel %vm83_vm0, %v4696_v30, %v1142_v7  ;;  %v1172_v52 = vrot.slane %v4724_v3, 1  ;;  %v1162_v56 = vrot.slane %v4732_v2, 1  ;;  %v1192_v44 = vrot.slane %v4761_v29, 1 }
 0x191   :  { %2029 = vrot.lane.b32.xlu1 %v4827_v37, %s3556_s19  ;;  %2019 = vrot.lane.b32.xlu0 %v4830_v48, %s3556_s19  ;;  %v1113_v37 = vsel %vm83_vm0, %v6478_v26, %v1112_v8  ;;  %v1153_v48 = vsel %vm83_vm0, %v6482_v54, %v1152_v4  ;;  %v1182_v63 = vrot.slane %v4770_v5, 1  ;;  %v1091_v26 = vadd.f32 %v6489_v13, %v1059_v23 }
 0x192   :  { %v1212_v8 = vrot.slane %v4799_v33, 1  ;;  %v1202_v30 = vrot.slane %v4806_v49, 1  ;;  %v1232_v50 = vrot.slane %v4838_v43, 1  ;;  %v1115_v61 = vadd.f32 %v1113_v37, %v1079_v18 }
 0x193   :  { %v5119_v58 = vpop.permute.xlu1 %1410  ;;  %v5129_v60 = vpop.permute.xlu0 %1400  ;;  %v1105_v1 = vadd.f32 %v1103_v39, %v1075_v32  ;;  %v1222_v21 = vrot.slane %v4846_v53, 1  ;;  %v2242_v19 = vstv %s5086_s24  ;;  %v1135_v54 = vadd.f32 %v1133_v35, %v1087_v46  ;;  %v6491_v39 = vld [vmem:[#allocation11_spill] sm:$0xff]  ;;  %s3418_s24 = sld [smem:[#allocation2 + $0x5e]] }
 0x194   :  { %v1155_v4 = vadd.f32 %v1153_v48, %v1095_v15  ;;  %v1145_v7 = vadd.f32 %v1143_v57, %v1091_v26  ;;  %v1173_v23 = vsel %vm144_vm1, %v4724_v3, %v1172_v52  ;;  %v1163_v62 = vsel %vm144_vm1, %v4732_v2, %v1162_v56 }
 0x195   :  { %2049 = vrot.lane.b32.xlu1 %v4841_v40, %s3556_s19  ;;  %2039 = vrot.lane.b32.xlu0 %v4849_v38, %s3556_s19  ;;  %v1125_v40 = vadd.f32 %v1123_v36, %v1083_v12  ;;  %v1193_v38 = vsel %vm144_vm1, %v4761_v29, %v1192_v44  ;;  %v1183_v18 = vsel %vm144_vm1, %v4770_v5, %v1182_v63  ;;  %v1252_v2 = vrot.slane %v4870_v0, 1  ;;  %v6493_v36 = vld [vmem:[#allocation38_spill] sm:$0xff]  ;;  %v6494_v44 = vld [vmem:[#allocation39_spill] sm:$0xff] }
 0x196   :  { %v1213_v6 = vsel %vm144_vm1, %v4799_v33, %v1212_v8  ;;  %v1203_v32 = vsel %vm144_vm1, %v4806_v49, %v1202_v30  ;;  %v1233_v3 = vsel %vm205_vm2, %v4838_v43, %v1232_v50  ;;  %v1223_v29 = vsel %vm205_vm2, %v4846_v53, %v1222_v21  ;;  %v6492_v53 = vld [vmem:[#allocation45_spill] sm:$0xff]  ;;  %v6495_v8 = vld [vmem:[#allocation8_spill] sm:$0xff] }
 0x197   :  { %v5144_v55 = vpop.permute.xlu1 %1430  ;;  %v5147_v31 = vpop.permute.xlu0 %1420  ;;  %v1242_v5 = vrot.slane %v4881_v27, 1  ;;  %v1262_v33 = vrot.slane %v4921_v16, 1  ;;  %v1175_v49 = vadd.f32 %v1173_v23, %v1115_v61  ;;  %v1165_v37 = vadd.f32 %v1163_v62, %v1105_v1  ;;  %v6496_v1 = vld [vmem:[#allocation10_spill] sm:$0xff]  ;;  %v6498_v62 = vld [vmem:[#allocation41_spill] sm:$0xff] }
 0x198   :  { %v1292_v43 = vrot.slane %v4951_v28, 1  ;;  %v1282_v14 = vrot.slane %v6491_v39, 1  ;;  %v1185_v34 = vadd.f32 %v1183_v18, %v1125_v40  ;;  %v1215_v15 = vadd.f32 %v1213_v6, %v1155_v4 }
 0x199   :  { %2069 = vrot.lane.b32.xlu1 %v4873_v22, %s3557_s25  ;;  %2059 = vrot.lane.b32.xlu0 %v4876_v9, %s3557_s25  ;;  %v6490_v22 = vld [vmem:[#allocation40_spill] sm:$0xff]  ;;  %v1195_v9 = vadd.f32 %v1193_v38, %v1135_v54  ;;  %v1312_v35 = vrot.slane %v6492_v53, 1  ;;  %v1205_v48 = vadd.f32 %v1203_v32, %v1145_v7  ;;  %v1235_v57 = vadd.f32 %v1233_v3, %v1175_v49  ;;  %v6497_v54 = vld [vmem:[#allocation13_spill] sm:$0xff]  ;;  %v6499_v32 = vld [vmem:[#allocation42_spill] sm:$0xff] }
 0x19a   :  { %v1272_v45 = vrot.slane %v6490_v22, 1  ;;  %v1225_v52 = vadd.f32 %v1223_v29, %v1165_v37  ;;  %v1253_v56 = vsel %vm205_vm2, %v4870_v0, %v1252_v2  ;;  %v1243_v63 = vsel %vm205_vm2, %v4881_v27, %v1242_v5 }
 0x19b   :  { %v5173_v46 = vpop.permute.xlu1 %1450  ;;  %v5177_v12 = vpop.permute.xlu0 %1440  ;;  %v1263_v26 = vsel %vm205_vm2, %v4921_v16, %v1262_v33  ;;  %v1302_v30 = vrot.slane %v6495_v8, 1  ;;  %v1293_v61 = vsel %vm266_vm3, %v4951_v28, %v1292_v43  ;;  %v1283_v0 = vsel %vm266_vm3, %v6491_v39, %v1282_v14 }
 0x19c   :  { %v1273_v13 = vsel %vm205_vm2, %v6490_v22, %v1272_v45  ;;  %v1332_v21 = vrot.slane %v6496_v1, 1  ;;  %v1322_v40 = vrot.slane %v6497_v54, 1  ;;  %v1255_v4 = vadd.f32 %v1253_v56, %v1195_v9 }
 0x19d   :  { %2089 = vrot.lane.b32.xlu1 %v6493_v36, %s3557_s25  ;;  %2079 = vrot.lane.b32.xlu0 %v6494_v44, %s3557_s25  ;;  %v1313_v7 = vsel %vm266_vm3, %v6492_v53, %v1312_v35  ;;  %v1352_v16 = vrot.slane %v5038_v47, 1  ;;  %v1342_v23 = vrot.slane %v5041_v17, 1  ;;  %v1245_v28 = vadd.f32 %v1243_v63, %v1185_v34 }
 0x19e   :  { %v1275_v38 = vadd.f32 %v1273_v13, %v1215_v15  ;;  %v1265_v18 = vadd.f32 %v1263_v26, %v1205_v48  ;;  %v1372_v6 = vrot.slane %v5068_v42, 1  ;;  %v1295_v3 = vadd.f32 %v1293_v61, %v1235_v57  ;;  %v6500_v15 = vld [vmem:[#allocation43_spill] sm:$0xff]  ;;  %v6501_v57 = vld [vmem:[#allocation44_spill] sm:$0xff] }
 0x19f   :  { %v1471_v50 = vpop.permute.xlu1 %1470  ;;  %v1461_v27 = vpop.permute.xlu0 %1460  ;;  %v1285_v2 = vadd.f32 %v1283_v0, %v1225_v52  ;;  %v1303_v29 = vsel %vm266_vm3, %v6495_v8, %v1302_v30  ;;  %v1362_v5 = vrot.slane %v5072_v11, 1  ;;  %v1315_v45 = vadd.f32 %v1313_v7, %v1255_v4 }
 0x1a0   :  { %v1333_v33 = vsel %vm266_vm3, %v6496_v1, %v1332_v21  ;;  %v1323_v49 = vsel %vm266_vm3, %v6497_v54, %v1322_v40  ;;  %v1412_v37 = vrot.slane %v5119_v58, 1  ;;  %v1353_v39 = vsel %vm327_vm4, %v5038_v47, %v1352_v16  ;;  %v6506_v54 = vld [vmem:[#allocation16_spill] sm:$0xff]  ;;  %v6507_v16 = vld [vmem:[#allocation17_spill] sm:$0xff] }
 0x1a1   :  { %2109 = vrot.lane.b32.xlu1 %v6498_v62, %s3557_s25  ;;  %2099 = vrot.lane.b32.xlu0 %v6499_v32, %s3557_s25  ;;  %v1343_v14 = vsel %vm327_vm4, %v5041_v17, %v1342_v23  ;;  %v1402_v9 = vrot.slane %v5129_v60, 1  ;;  %v1432_v34 = vrot.slane %v5144_v55, 1  ;;  %v1305_v53 = vadd.f32 %v1303_v29, %v1245_v28 }
 0x1a2   :  { %v1373_v35 = vsel %vm327_vm4, %v5068_v42, %v1372_v6  ;;  %v1392_v36 = vrot.slane %v5084_v51, 1  ;;  %v1472_v48 = vrot.slane %v1471_v50, 1  ;;  %v6502_v47 = vlaneseq }
 0x1a3   :  { %v1491_v22 = vpop.permute.xlu1 %1490  ;;  %v1481_v43 = vpop.permute.xlu0 %1480  ;;  %v6503_v17 = vmov 0  ;;  %v1335_v52 = vadd.f32 %v1333_v33, %v1275_v38  ;;  %v1363_v56 = vsel %vm327_vm4, %v5072_v11, %v1362_v5  ;;  %v1382_v44 = vrot.slane %v5092_v25, 1 }
 0x1a4   :  { %vm5230_vm8 = vcmp.lt.s32.totalorder %v6502_v47, 222  ;;  %v1462_v63 = vrot.slane %v1461_v27, 1  ;;  %v1325_v42 = vadd.f32 %v1323_v49, %v1265_v18  ;;  %v1355_v26 = vadd.f32 %v1353_v39, %v1295_v3  ;;  %v6509_v49 = vld [vmem:[#allocation9_spill] sm:$0xff]  ;;  %v6510_v47 = vld [vmem:[#allocation12_spill] sm:$0xff] }
 0x1a5   :  { %2155 = vrot.lane.b32.xlu1 %v6500_v15, %s3550_s30  ;;  %2145 = vrot.lane.b32.xlu0 %v6501_v57, %s3550_s30  ;;  %v6504_v17 = vsel %vm5230_vm8, 4294967295, %v6503_v17  ;;  %v1345_v8 = vadd.f32 %v1343_v14, %v1285_v2  ;;  %v1413_v30 = vsel %vm388_vm5, %v5119_v58, %v1412_v37  ;;  %v1375_v0 = vadd.f32 %v1373_v35, %v1315_v45 }
 0x1a6   :  { %6505 = vst [vmem:[#allocation14_spill] sm:$0xff] %v6504_v17  ;;  %v1403_v1 = vsel %vm388_vm5, %v5129_v60, %v1402_v9  ;;  %v1433_v21 = vsel %vm388_vm5, %v5144_v55, %v1432_v34  ;;  %v1422_v11 = vrot.slane %v5147_v31, 1  ;;  %v1365_v40 = vadd.f32 %v1363_v56, %v1305_v53 }
 0x1a7   :  { %v1511_v13 = vpop.permute.xlu1 %1510  ;;  %v1501_v61 = vpop.permute.xlu0 %1500  ;;  %v1393_v4 = vsel %vm327_vm4, %v5084_v51, %v1392_v36  ;;  %v1473_v7 = vsel %vm449_vm6, %v1471_v50, %v1472_v48  ;;  %v1492_v58 = vrot.slane %v1491_v22, 1  ;;  %v1383_v60 = vsel %vm327_vm4, %v5092_v25, %v1382_v44  ;;  %v6508_v25 = vld [vmem:[#allocation46_spill] sm:$0xff] }
 0x1a8   :  { %v1415_v23 = vadd.f32 %v1413_v30, %v1355_v26  ;;  %v1463_v55 = vsel %vm449_vm6, %v1461_v27, %v1462_v63  ;;  %v1482_v62 = vrot.slane %v1481_v43, 1  ;;  %v1405_v38 = vadd.f32 %v1403_v1, %v1345_v8 }
 0x1a9   :  { %2175 = vrot.lane.b32.xlu1 %v6506_v54, %s3550_s30  ;;  %2165 = vrot.lane.b32.xlu0 %v6507_v16, %s3550_s30  ;;  %v1435_v18 = vadd.f32 %v1433_v21, %v1375_v0  ;;  %v1452_v6 = vrot.slane %v5173_v46, 1  ;;  %v1423_v50 = vsel %vm388_vm5, %v5147_v31, %v1422_v11  ;;  %v1442_v3 = vrot.slane %v5177_v12, 1 }
 0x1aa   :  { %v1475_v2 = vadd.f32 %v1473_v7, %v1415_v23  ;;  %v1465_v5 = vadd.f32 %v1463_v55, %v1405_v38  ;;  %v1493_v27 = vsel %vm449_vm6, %v1491_v22, %v1492_v58  ;;  %v1512_v45 = vrot.slane %v1511_v13, 1 }
 0x1ab   :  { %v1531_v28 = vpop.permute.xlu1 %1530  ;;  %v1521_v51 = vpop.permute.xlu0 %1520  ;;  %v1483_v31 = vsel %vm449_vm6, %v1481_v43, %v1482_v62  ;;  %v1502_v37 = vrot.slane %v1501_v61, 1  ;;  %v1425_v34 = vadd.f32 %v1423_v50, %v1365_v40  ;;  %v1453_v22 = vsel %vm388_vm5, %v5173_v46, %v1452_v6 }
 0x1ac   :  { %v1532_v32 = vrot.slane %v1531_v28, 1  ;;  %v1522_v29 = vrot.slane %v1521_v51, 1  ;;  %v1395_v36 = vadd.f32 %v1393_v4, %v1335_v52  ;;  %v1443_v48 = vsel %vm388_vm5, %v5177_v12, %v1442_v3 }
 0x1ad   :  { %2195 = vrot.lane.b32.xlu1 %v6508_v25, %s3550_s30  ;;  %2185 = vrot.lane.b32.xlu0 %v6509_v49, %s3550_s30  ;;  %v1495_v57 = vadd.f32 %v1493_v27, %v1435_v18  ;;  %v1385_v56 = vadd.f32 %v1383_v60, %v1325_v42  ;;  %v1485_v46 = vadd.f32 %v1483_v31, %v1425_v34  ;;  %v2262_v58 = vstv %s5268_s27  ;;  %s3420_s27 = sld [smem:[#allocation2 + $0x94]] }
 0x1ae   :  { %v1533_v33 = vsel %vm510_vm7, %v1531_v28, %v1532_v32  ;;  %v1523_v14 = vsel %vm510_vm7, %v1521_v51, %v1522_v29  ;;  %v1513_v44 = vsel %vm449_vm6, %v1511_v13, %v1512_v45  ;;  %v1455_v52 = vadd.f32 %v1453_v22, %v1395_v36 }
 0x1af   :  { %v1535_v39 = vadd.f32 %v1533_v33, %v1475_v2  ;;  %v1551_v9 = vpop.permute.xlu1 %1550  ;;  %v1525_v15 = vadd.f32 %v1523_v14, %v1465_v5  ;;  %v1541_v35 = vpop.permute.xlu0 %1540  ;;  %v1503_v63 = vsel %vm449_vm6, %v1501_v61, %v1502_v37  ;;  %v1445_v8 = vadd.f32 %v1443_v48, %v1385_v56 }
 0x1b0   :  { %v1552_v53 = vrot.slane %v1551_v9, 1  ;;  %v1542_v43 = vrot.slane %v1541_v35, 1  ;;  %v2253_v21 = vmul.f32 %v4907_v24, %v2252_v10  ;;  %v2243_v40 = vmul.f32 %v4907_v24, %v2242_v19 }
 0x1b1   :  { %3326 = vst.msk [vmem:[%s6339_s3 + $0x1] ss:$8 sm:$0x3] %vm5230_vm8, %v1535_v39  ;;  %2215 = vrot.lane.b32.xlu1 %v6510_v47, %s3551_s10  ;;  %1580 = vst.msk [vmem:[%s6339_s3] ss:$8 sm:$0x3] %vm5230_vm8, %v1525_v15  ;;  %2205 = vrot.lane.b32.xlu0 %v5099_v59, %s3551_s10  ;;  %v1515_v59 = vadd.f32 %v1513_v44, %v1455_v52  ;;  %v1505_v11 = vadd.f32 %v1503_v63, %v1445_v8 }
 0x1b2   :  { %v1553_v12 = vsel %vm510_vm7, %v1551_v9, %v1552_v53  ;;  %v1543_v13 = vsel %vm510_vm7, %v1541_v35, %v1542_v43  ;;  %v2263_v19 = vmul.f32 %v4907_v24, %v2262_v58  ;;  %v2292_v23 = vstv %s5290_s6  ;;  %s3423_s6 = sld [smem:[#allocation2 + $0x44]] }
 0x1b3   :  { %v1555_v42 = vadd.f32 %v1553_v12, %v1495_v57  ;;  %v1571_v26 = vpop.permute.xlu1 %1570  ;;  %v1545_v30 = vadd.f32 %v1543_v13, %v1485_v46  ;;  %v1561_v1 = vpop.permute.xlu0 %1560  ;;  %v2282_v62 = vstv %s5294_s7  ;;  %v2293_v38 = vmul.f32 %v4907_v24, %v2292_v23  ;;  %s3426_s7 = sld [smem:[#allocation2 + $0x95]] }
 0x1b4   :  { %v1572_v0 = vrot.slane %v1571_v26, 1  ;;  %v1562_v61 = vrot.slane %v1561_v1, 1  ;;  %v2283_v18 = vmul.f32 %v4907_v24, %v2282_v62  ;;  %v2312_v6 = vstv %s5318_s15  ;;  %s5407_s15 = sld [smem:[#allocation2 + $0x45]] }
 0x1b5   :  { %3328 = vst.msk [vmem:[%s6339_s3 + $0x3] ss:$8 sm:$0x3] %vm5230_vm8, %v1555_v42  ;;  %2235 = vrot.lane.b32.xlu1 %v5102_v20, %s3551_s10  ;;  %3327 = vst.msk [vmem:[%s6339_s3 + $0x2] ss:$8 sm:$0x3] %vm5230_vm8, %v1545_v30  ;;  %2225 = vrot.lane.b32.xlu0 %v5105_v41, %s3551_s10  ;;  %v2313_v3 = vmul.f32 %v4907_v24, %v2312_v6 }
 0x1b6   :  { %v1573_v54 = vsel %vm510_vm7, %v1571_v26, %v1572_v0  ;;  %v2272_v20 = vstv %s5264_s21  ;;  %v1563_v4 = vsel %vm510_vm7, %v1561_v1, %v1562_v61  ;;  %v2302_v51 = vstv %s3413_s18  ;;  %s3417_s21 = sld [smem:[#allocation2 + $0x43]] }
 0x1b7   :  { %v1575_v10 = vadd.f32 %v1573_v54, %v1515_v59  ;;  %v5321_v7 = vpop.permute.xlu1 %1649  ;;  %v1565_v16 = vadd.f32 %v1563_v4, %v1505_v11  ;;  %v5324_v60 = vpop.permute.xlu0 %1639  ;;  %v2273_v41 = vmul.f32 %v4907_v24, %v2272_v20  ;;  %v2303_v2 = vmul.f32 %v4907_v24, %v2302_v51  ;;  %s5411_s18 = sld [smem:[#allocation2 + $0x1b]] }
 0x1b8   :  { %v2332_v29 = vstv %s3416_s2  ;;  %v2322_v5 = vstv %s3415_s23  ;;  %v2352_v49 = vstv %s3418_s24  ;;  %v2372_v34 = vstv %s3420_s27  ;;  %s5429_s2 = sld [smem:[#allocation2 + $0x7b]]  ;;  %s5431_s23 = sld [smem:[#allocation4 + $0x1]] }
 0x1b9   :  { %3330 = vst.msk [vmem:[%s6339_s3 + $0x5] ss:$8 sm:$0x3] %vm5230_vm8, %v1575_v10  ;;  %2255 = vrot.lane.b32.xlu1 %v2253_v21, %s3551_s10  ;;  %3329 = vst.msk [vmem:[%s6339_s3 + $0x4] ss:$8 sm:$0x3] %vm5230_vm8, %v1565_v16  ;;  %2245 = vrot.lane.b32.xlu0 %v2243_v40, %s3551_s10  ;;  %v2333_v45 = vmul.f32 %v4907_v24, %v2332_v29  ;;  %v2323_v33 = vmul.f32 %v4907_v24, %v2322_v5 }
 0x1ba   :  { %v2353_v14 = vmul.f32 %v4907_v24, %v2352_v49  ;;  %v2362_v15 = vstv %s3419_s26  ;;  %v2373_v35 = vmul.f32 %v4907_v24, %v2372_v34  ;;  %v2392_v48 = vstv %s3422_s4  ;;  %s5433_s24 = sld [smem:[#allocation2 + $0x87]]  ;;  %s5439_s27 = sld [smem:[#allocation2 + $0x6c]] }
 0x1bb   :  { %v5341_v55 = vpop.permute.xlu1 %1669  ;;  %v5344_v28 = vpop.permute.xlu0 %1659  ;;  %v2363_v36 = vmul.f32 %v4907_v24, %v2362_v15  ;;  %v2382_v43 = vstv %s3421_s28  ;;  %v2393_v56 = vmul.f32 %v4907_v24, %v2392_v48  ;;  %v2412_v44 = vstv %s3424_s5  ;;  %s5443_s26 = sld [smem:[#allocation4 + $0x3]]  ;;  %s5450_s28 = sld [smem:[#allocation4 + $0x2]] }
 0x1bc   :  { %v2342_v37 = vstv %s3417_s21  ;;  %v2383_v46 = vmul.f32 %v4907_v24, %v2382_v43  ;;  %v2402_v52 = vstv %s3423_s6  ;;  %v2413_v42 = vmul.f32 %v4907_v24, %v2412_v44  ;;  %s5437_s21 = sld [smem:[#allocation4]]  ;;  %s5448_s4 = sld [smem:[#allocation2 + $0x2b]] }
 0x1bd   :  { %2275 = vrot.lane.b32.xlu1 %v2273_v41, %s3552_s17  ;;  %2265 = vrot.lane.b32.xlu0 %v2263_v19, %s3552_s17  ;;  %v2343_v9 = vmul.f32 %v4907_v24, %v2342_v37  ;;  %v2403_v13 = vmul.f32 %v4907_v24, %v2402_v52  ;;  %v2432_v26 = vstv %s3426_s7  ;;  %v2422_v30 = vstv %s3425_s8  ;;  %s5455_s5 = sld [smem:[#allocation2 + $0x10]]  ;;  %s5457_s6 = sld [smem:[#allocation4 + $0x5]] }
 0x1be   :  { %v2433_v1 = vmul.f32 %v4907_v24, %v2432_v26  ;;  %v2423_v59 = vmul.f32 %v4907_v24, %v2422_v30  ;;  %v2452_v61 = vstv %s5391_s9  ;;  %v2442_v11 = vstv %s5395_s12  ;;  %s5459_s7 = sld [smem:[#allocation4 + $0x4]]  ;;  %s5467_s8 = sld [smem:[#allocation2 + $0x61]] }
 0x1bf   :  { %v5351_v32 = vpop.permute.xlu1 %1689  ;;  %v5353_v50 = vpop.permute.xlu0 %1679  ;;  %v2453_v40 = vmul.f32 %v4907_v24, %v2452_v61  ;;  %v2443_v20 = vmul.f32 %v4907_v24, %v2442_v11  ;;  %v2472_v10 = vstv %s5403_s13  ;;  %v2462_v58 = vstv %s5407_s15  ;;  %s5469_s9 = sld [smem:[#allocation2 + $0x46]]  ;;  %s5474_s12 = sld [smem:[#allocation2 + $0x97]] }
 0x1c0   :  { %v1616_v41 = vstv %s5411_s18  ;;  %v1612_v19 = vstv %s5413_s14  ;;  %v2473_v23 = vmul.f32 %v4907_v24, %v2472_v10  ;;  %v2463_v62 = vmul.f32 %v4907_v24, %v2462_v58  ;;  %s5476_s13 = sld [smem:[#allocation2 + $0x7c]]  ;;  %s5485_s18 = sld [smem:[#allocation2 + $0x11]] }
 0x1c1   :  { %2295 = vrot.lane.b32.xlu1 %v2293_v38, %s3552_s17  ;;  %2285 = vrot.lane.b32.xlu0 %v2283_v18, %s3552_s17  ;;  %v2492_v38 = vstv %s5422_s1  ;;  %v1624_v18 = vstv %s5417_s16  ;;  %s5483_s15 = sld [smem:[#allocation2 + $0x2c]]  ;;  %s5493_s1 = sld [smem:[#allocation2 + $0x62]] }
 0x1c2   :  { %v1620_v6 = vstv %s5424_s20  ;;  %s5495_s16 = sld [smem:[#allocation2 + $0x47]]  ;;  %v1600_v49 = vstv %s5431_s23  ;;  %v1598_v37 = vstv %s5437_s21  ;;  %s5504_s20 = sld [smem:[#allocation2 + $0x7d]]  ;;  %v1604_v48 = vstv %s5443_s26 }
 0x1c3   :  { %v5359_v25 = vpop.permute.xlu1 %1709  ;;  %v5361_v27 = vpop.permute.xlu0 %1699  ;;  %s5511_s23 = sld [smem:[#allocation2 + $0x13]]  ;;  %v1602_v43 = vstv %s5450_s28  ;;  %v2502_v44 = vstv %s5455_s5  ;;  %s5520_s21 = sld [smem:[#allocation2 + $0x49]] }
 0x1c4   :  { %s5529_s26 = sld [smem:[#allocation2 + $0x7f]]  ;;  %v2532_v61 = vstv %s5467_s8  ;;  %s5539_s28 = sld [smem:[#allocation2 + $0x14]] }
 0x1c5   :  { %2315 = vrot.lane.b32.xlu1 %v2313_v3, %s3552_s17  ;;  %2305 = vrot.lane.b32.xlu0 %v2303_v2, %s3552_s17  ;;  %v2482_v3 = vstv %s5429_s2  ;;  %v3517_v2 = vld [vmem:[%s6336_s0 + $0x8] ss:$4 sm:$0x3]  ;;  %s5509_s2 = sld [smem:[#allocation2 + $0x2e]]  ;;  %s5555_s8 = sld [smem:[#allocation2 + $0x9]] }
 0x1c6   :  { %v1617_v29 = vmul.f32 %v3517_v2, %v1616_v41  ;;  %v1613_v5 = vmul.f32 %v3517_v2, %v1612_v19  ;;  %v1625_v34 = vmul.f32 %v3517_v2, %v1624_v18  ;;  %v1621_v15 = vmul.f32 %v3517_v2, %v1620_v6  ;;  %s5564_s14 = sld [smem:[#allocation2 + $0x65]]  ;;  %s5566_s5 = sld [smem:[#allocation2 + $0x4a]] }
 0x1c7   :  { %v5367_v31 = vpop.permute.xlu1 %1729  ;;  %v5369_v39 = vpop.permute.xlu0 %1719  ;;  %v2522_v10 = vstv %s5469_s9  ;;  %v2552_v19 = vstv %s5474_s12  ;;  %s5580_s12 = sld [smem:[#allocation2 + $0x5a]]  ;;  %s6014_s9 = sld [smem:[#allocation2 + $0x83]] }
 0x1c8   :  { %v5522_v52 = vadd.f32 %v1617_v29, %v1600_v49  ;;  %v5531_v30 = vadd.f32 %v1613_v5, %v1598_v37  ;;  %v5541_v11 = vadd.f32 %v1625_v34, %v1604_v48  ;;  %v5578_v29 = vld [vmem:[%s6336_s0 + $0xa] ss:$4 sm:$0x3]  ;;  %v2602_v37 = vstv %s5504_s20  ;;  %s5610_s20 = sld [smem:[#allocation2 + $0x15]] }
 0x1c9   :  { %2335 = vrot.lane.b32.xlu1 %v2333_v45, %s3553_s22  ;;  %2325 = vrot.lane.b32.xlu0 %v2323_v33, %s3553_s22  ;;  %v1632_v45 = vstv %s5433_s24  ;;  %s5518_s24 = sld [smem:[#allocation2 + $0x64]]  ;;  %v2648_v48 = vstv %s5511_s23  ;;  %s5635_s23 = sld [smem:[#allocation2 + $0x4b]] }
 0x1cb   :  { %v5375_v22 = vpop.permute.xlu1 %1749  ;;  %v5377_v53 = vpop.permute.xlu0 %1739 }
 0x1cd   :  { %2355 = vrot.lane.b32.xlu1 %v2353_v14, %s3553_s22  ;;  %2345 = vrot.lane.b32.xlu0 %v2343_v9, %s3553_s22  ;;  %v1628_v14 = vstv %s5439_s27  ;;  %v2493_v9 = vmul.f32 %v4907_v24, %v2492_v38  ;;  %s5527_s27 = sld [smem:[#allocation2 + $0x9a]]  ;;  %v2130_v17 = vstv %s5580_s12  ;;  %s6026_s12 = sld [smem:[#allocation2 + $0x18]] }
 0x1cf   :  { %v5383_v57 = vpop.permute.xlu1 %1769  ;;  %v5385_v47 = vpop.permute.xlu0 %1759 }
 0x1d1   :  { %2375 = vrot.lane.b32.xlu1 %v2373_v35, %s3553_s22  ;;  %2365 = vrot.lane.b32.xlu0 %v2363_v36, %s3553_s22  ;;  %v2483_v35 = vmul.f32 %v4907_v24, %v2482_v3  ;;  %v2512_v36 = vstv %s5448_s4  ;;  %s5537_s4 = sld [smem:[#allocation2 + $0x2f]]  ;;  %v2562_v3 = vstv %s5485_s18  ;;  %s5591_s18 = sld [smem:[#allocation2 + $0x80]] }
 0x1d3   :  { %v5393_v12 = vpop.permute.xlu1 %1789  ;;  %v5397_v63 = vpop.permute.xlu0 %1779 }
 0x1d5   :  { %2395 = vrot.lane.b32.xlu1 %v2393_v56, %s6373_s29  ;;  %2385 = vrot.lane.b32.xlu0 %v2383_v46, %s6373_s29  ;;  %v1633_v56 = vmul.f32 %v3517_v2, %v1632_v45  ;;  %v2582_v45 = vstv %s5495_s16  ;;  %s5600_s16 = sld [smem:[#allocation2 + $0x75]] }
 0x1d7   :  { %v5405_v8 = vpop.permute.xlu1 %1809  ;;  %v5409_v0 = vpop.permute.xlu0 %1799 }
 0x1d9   :  { %2415 = vrot.lane.b32.xlu1 %v2413_v42, %s6373_s29  ;;  %2405 = vrot.lane.b32.xlu0 %v2403_v13, %s6373_s29  ;;  %v1608_v42 = vstv %s5457_s6  ;;  %v1629_v13 = vmul.f32 %v3517_v2, %v1628_v14  ;;  %v2592_v2 = vstv %s5493_s1  ;;  %s5598_s1 = sld [smem:[#allocation2 + $0x90]]  ;;  %s6022_s6 = sld [smem:[#allocation2 + $0x33]] }
 0x1da   :  { %v5557_v58 = vadd.f32 %v1633_v56, %v1608_v42  ;;  %v2668_v56 = vstv %s5520_s21  ;;  %s5656_s21 = sld [smem:[#allocation2 + $0x81]] }
 0x1db   :  { %v5426_v21 = vpop.permute.xlu1 %1829  ;;  %v5435_v54 = vpop.permute.xlu0 %1819 }
 0x1dd   :  { %2435 = vrot.lane.b32.xlu1 %v2433_v1, %s6373_s29  ;;  %2425 = vrot.lane.b32.xlu0 %v2423_v59, %s6373_s29  ;;  %s5502_s29 = sld [smem:[#allocation2 + $0x98]]  ;;  %v1606_v1 = vstv %s5459_s7  ;;  %v2513_v59 = vmul.f32 %v4907_v24, %v2512_v36  ;;  %s5553_s7 = sld [smem:[#allocation2 + $0x24]] }
 0x1de   :  { %v5568_v38 = vadd.f32 %v1629_v13, %v1606_v1 }
 0x1df   :  { %v5452_v4 = vpop.permute.xlu1 %1849  ;;  %v5461_v16 = vpop.permute.xlu0 %1839 }
 0x1e1   :  { %2455 = vrot.lane.b32.xlu1 %v2453_v40, %s3555_s11  ;;  %2445 = vrot.lane.b32.xlu0 %v2443_v20, %s3555_s11  ;;  %v5543_v40 = vadd.f32 %v1621_v15, %v1602_v43  ;;  %v5549_v20 = vld [vmem:[%s6336_s0 + $0x9] ss:$4 sm:$0x3]  ;;  %v2658_v15 = vstv %s5509_s2  ;;  %s5633_s2 = sld [smem:[#allocation2 + $0x66]] }
 0x1e2   :  { %v2503_v24 = vmul.f32 %v5549_v20, %v2502_v44  ;;  %v2533_v6 = vmul.f32 %v5549_v20, %v2532_v61  ;;  %v2523_v5 = vmul.f32 %v5549_v20, %v2522_v10  ;;  %v2553_v14 = vmul.f32 %v5549_v20, %v2552_v19 }
 0x1e3   :  { %v5480_v51 = vpop.permute.xlu1 %1869  ;;  %v5491_v33 = vpop.permute.xlu0 %1859  ;;  %v2612_v49 = vstv %s5502_s29  ;;  %v2563_v36 = vmul.f32 %v5549_v20, %v2562_v3  ;;  %v2678_v43 = vstv %s5518_s24  ;;  %s5608_s29 = sld [smem:[#allocation2 + $0x30]]  ;;  %v5615_v42 = vmul.f32 %v5549_v20, %v2592_v2  ;;  %s5654_s24 = sld [smem:[#allocation2 + $0x9c]] }
 0x1e4   :  { %v5618_v13 = vmul.f32 %v5549_v20, %v2582_v45  ;;  %v5621_v1 = vmul.f32 %v5549_v20, %v2612_v49  ;;  %v5628_v61 = vmul.f32 %v5578_v29, %v2658_v15  ;;  %v2688_v10 = vstv %s5529_s26  ;;  %s5951_s26 = sld [smem:[#allocation2 + $0x4c]] }
 0x1e5   :  { %2475 = vrot.lane.b32.xlu1 %v2473_v23, %s3555_s11  ;;  %2465 = vrot.lane.b32.xlu0 %v2463_v62, %s3555_s11  ;;  %v2542_v23 = vstv %s5476_s13  ;;  %v2572_v62 = vstv %s5483_s15  ;;  %s5582_s13 = sld [smem:[#allocation2 + $0x3f]]  ;;  %s5589_s15 = sld [smem:[#allocation2 + $0x9b]] }
 0x1e6   :  { %v2573_v34 = vmul.f32 %v5549_v20, %v2572_v62  ;;  %v2718_v19 = vstv %s5537_s4  ;;  %v5642_v62 = vmul.f32 %v5578_v29, %v2678_v43  ;;  %v2708_v3 = vstv %s5539_s28  ;;  %s5968_s4 = sld [smem:[#allocation2 + $0x9d]]  ;;  %s5972_s28 = sld [smem:[#allocation2 + $0x82]] }
 0x1e7   :  { %v5515_v46 = vpop.permute.xlu1 %1889  ;;  %v5525_v26 = vpop.permute.xlu0 %1879  ;;  %v2738_v45 = vstv %s5564_s14  ;;  %v2728_v49 = vstv %s5566_s5  ;;  %v5664_v43 = vmul.f32 %v5578_v29, %v2688_v10  ;;  %s6002_s14 = sld [smem:[#allocation2 + $0x4d]]  ;;  %s6010_s5 = sld [smem:[#allocation2 + $0x9e]] }
 0x1e8   :  { %v5679_v10 = vmul.f32 %v5578_v29, %v2738_v45  ;;  %v2134_v45 = vstv %s5600_s16  ;;  %s6058_s16 = sld [smem:[#allocation2 + $0x34]] }
 0x1e9   :  { %2495 = vrot.lane.b32.xlu1 %v2493_v9, %s3555_s11  ;;  %2485 = vrot.lane.b32.xlu0 %v2483_v35, %s3555_s11  ;;  %v2543_v9 = vmul.f32 %v5549_v20, %v2542_v23  ;;  %v5639_v23 = vmul.f32 %v5578_v29, %v2648_v48  ;;  %6514 = vst [vmem:[#allocation19_spill] sm:$0xff] %v5664_v43 }
 0x1ea   :  { %6517 = vst [vmem:[#allocation23_spill] sm:$0xff] %v5679_v10  ;;  %v5682_v43 = vmul.f32 %v5578_v29, %v2728_v49 }
 0x1eb   :  { %v5559_v41 = vpop.permute.xlu1 %1909  ;;  %v5570_v18 = vpop.permute.xlu0 %1899 }
 0x1ec   :  { %6518 = vst [vmem:[#allocation24_spill] sm:$0xff] %v5682_v43  ;;  %v1641_v43 = vrot.slane %v5324_v60, 1 }
 0x1ed   :  { %2515 = vrot.lane.b32.xlu1 %v2513_v59, %s3556_s19  ;;  %2505 = vrot.lane.b32.xlu0 %v2503_v24, %s3556_s19  ;;  %v5624_v59 = vmul.f32 %v5549_v20, %v2602_v37  ;;  %v2698_v24 = vstv %s5527_s27  ;;  %v2122_v37 = vstv %s5553_s7  ;;  %s5690_s27 = sld [smem:[#allocation2 + $0x31]]  ;;  %s5984_s7 = sld [smem:[#allocation2 + $0x32]] }
 0x1ee   :  { %v5661_v48 = vmul.f32 %v5578_v29, %v2698_v24  ;;  %v2126_v24 = vstv %s5582_s13  ;;  %s6554_s13 = smov 110  }
 0x1ef   :  { %v5602_v35 = vpop.permute.xlu1 %1929  ;;  %v5612_v44 = vpop.permute.xlu0 %1919 }
 0x1f0   :  { %6511 = vst [vmem:[#allocation15_spill] sm:$0xff] %v5612_v44  ;;  %v2748_v44 = vstv %s5591_s18  ;;  %s6046_s18 = sld [smem:[#allocation2 + $0x9f]] }
 0x1f1   :  { %2535 = vrot.lane.b32.xlu1 %v2533_v6, %s3556_s19  ;;  %2525 = vrot.lane.b32.xlu0 %v2523_v5, %s3556_s19  ;;  %v5645_v6 = vmul.f32 %v5578_v29, %v2668_v56  ;;  %v2118_v5 = vstv %s5555_s8  ;;  %v5667_v56 = vmul.f32 %v5578_v29, %v2718_v19  ;;  %v5685_v19 = vmul.f32 %v5549_v20, %v2122_v37  ;;  %s5989_s8 = sld [smem:[#allocation2 + $0x17]] }
 0x1f2   :  { %v5704_v37 = vmul.f32 %v5578_v29, %v2748_v44 }
 0x1f3   :  { %v5648_v2 = vpop.permute.xlu1 %1949  ;;  %v5658_v15 = vpop.permute.xlu0 %1939  ;;  %6515 = vst [vmem:[#allocation22_spill] sm:$0xff] %v5667_v56  ;;  %6519 = vst [vmem:[#allocation25_spill] sm:$0xff] %v5685_v19  ;;  %v2138_v56 = vstv %s5598_s1  ;;  %v1651_v19 = vrot.slane %v5321_v7, 1  ;;  %s6050_s1 = sld [smem:[#allocation2 + $0x84]] }
 0x1f4   :  { %6512 = vst [vmem:[#allocation18_spill] sm:$0xff] %v5648_v2  ;;  %6513 = vst [vmem:[#allocation20_spill] sm:$0xff] %v5658_v15  ;;  %v5672_v2 = vmul.f32 %v5578_v29, %v2708_v3  ;;  %v2758_v15 = vstv %s5589_s15  ;;  %s6038_s15 = sld [smem:[#allocation2 + $0x4e]] }
 0x1f5   :  { %2555 = vrot.lane.b32.xlu1 %v2553_v14, %s3556_s19  ;;  %2545 = vrot.lane.b32.xlu0 %v2543_v9, %s3556_s19  ;;  %v5688_v14 = vmul.f32 %v5549_v20, %v2118_v5  ;;  %v2768_v9 = vstv %s5610_s20  ;;  %v5701_v49 = vmul.f32 %v5578_v29, %v2758_v15  ;;  %6523 = vst [vmem:[#allocation35_spill] sm:$0xff] %v5704_v37  ;;  %v2788_v15 = vstv %s5635_s23  ;;  %s6070_s20 = sld [smem:[#allocation2 + $0x6a]]  ;;  %s6082_s23 = sld [smem:[#allocation2 + $0xa0]] }
 0x1f6   :  { %6516 = vst [vmem:[#allocation21_spill] sm:$0xff] %v5672_v2  ;;  %v2778_v2 = vstv %s5608_s29  ;;  %v5707_v5 = vmul.f32 %v5549_v20, %v2130_v17  ;;  %v5722_v17 = vmul.f32 %v5578_v29, %v2768_v9  ;;  %v1681_v9 = vrot.slane %v5353_v50, 1  ;;  %s6062_s29 = sld [smem:[#allocation2 + $0x19]] }
 0x1f7   :  { %6520 = vst [vmem:[#allocation29_spill] sm:$0xff] %v5688_v14  ;;  %v5692_v3 = vpop.permute.xlu1 %1969  ;;  %v5698_v10 = vpop.permute.xlu0 %1959  ;;  %6522 = vst [vmem:[#allocation34_spill] sm:$0xff] %v5701_v49  ;;  %v5710_v14 = vmul.f32 %v5549_v20, %v2126_v24  ;;  %v5719_v44 = vmul.f32 %v5578_v29, %v2778_v2  ;;  %v5728_v24 = vmul.f32 %v5549_v20, %v2134_v45  ;;  %v2818_v49 = vstv %s5654_s24  ;;  %s6086_s24 = sld [smem:[#allocation2 + $0x85]] }
 0x1f8   :  { %6521 = vst [vmem:[#allocation33_spill] sm:$0xff] %v5698_v10  ;;  %6524 = vst [vmem:[#allocation36_spill] sm:$0xff] %v5707_v5  ;;  %v2798_v10 = vstv %s5633_s2  ;;  %v5725_v5 = vmul.f32 %v5549_v20, %v2138_v56  ;;  %v1691_v2 = vrot.slane %v5351_v32, 1  ;;  %v5744_v20 = vmul.f32 %v5578_v29, %v2788_v15  ;;  %s6074_s2 = sld [smem:[#allocation2 + $0x4f]] }
 0x1f9   :  { %6525 = vst [vmem:[#allocation37_spill] sm:$0xff] %v5710_v14  ;;  %2575 = vrot.lane.b32.xlu1 %v2573_v34, %s3557_s25  ;;  %2565 = vrot.lane.b32.xlu0 %v2563_v36, %s3557_s25  ;;  %6526 = vst [vmem:[#allocation26_spill] sm:$0xff] %v5719_v44  ;;  %v1671_v14 = vrot.slane %v5341_v55, 1  ;;  %v1661_v34 = vrot.slane %v5344_v28, 1  ;;  %v2808_v36 = vstv %s5656_s21  ;;  %v5741_v56 = vmul.f32 %v5578_v29, %v2798_v10  ;;  %s6094_s21 = sld [smem:[#allocation2 + $0x35]] }
 0x1fa   :  { %6527 = vst [vmem:[#allocation27_spill] sm:$0xff] %v5722_v17  ;;  %6528 = vst [vmem:[#allocation28_spill] sm:$0xff] %v5725_v5  ;;  %v1652_v45 = vsel %vm83_vm0, %v5321_v7, %v1651_v19  ;;  %v1711_v5 = vrot.slane %v5359_v25, 1  ;;  %v1701_v44 = vrot.slane %v5361_v27, 1  ;;  %v5758_v10 = vmul.f32 %v5578_v29, %v2818_v49 }
 0x1fb   :  { %6529 = vst [vmem:[#allocation30_spill] sm:$0xff] %v5728_v24  ;;  %v5732_v37 = vpop.permute.xlu1 %1989  ;;  %v5738_v17 = vpop.permute.xlu0 %1979  ;;  %6531 = vst [vmem:[#allocation32_spill] sm:$0xff] %v5744_v20  ;;  %v1642_v24 = vsel %vm83_vm0, %v5324_v60, %v1641_v43  ;;  %v5761_v7 = vmul.f32 %v5578_v29, %v2808_v36  ;;  %v1672_v60 = vsel %vm83_vm0, %v5341_v55, %v1671_v14  ;;  %v1751_v15 = vrot.slane %v5375_v22, 1 }
 0x1fc   :  { %6530 = vst [vmem:[#allocation31_spill] sm:$0xff] %v5738_v17  ;;  %v1731_v17 = vrot.slane %v5367_v31, 1  ;;  %v1662_v43 = vsel %vm83_vm0, %v5344_v28, %v1661_v34  ;;  %v1644_v49 = vadd.f32 %v1642_v24, %v5531_v30  ;;  %v1692_v36 = vsel %vm83_vm0, %v5351_v32, %v1691_v2 }
 0x1fd   :  { %2595 = vrot.lane.b32.xlu1 %v5615_v42, %s3557_s25  ;;  %2585 = vrot.lane.b32.xlu0 %v5618_v13, %s3557_s25  ;;  %v1721_v42 = vrot.slane %v5369_v39, 1  ;;  %v1654_v13 = vadd.f32 %v1652_v45, %v5522_v52  ;;  %v1682_v19 = vsel %vm83_vm0, %v5353_v50, %v1681_v9  ;;  %v1712_v28 = vsel %vm144_vm1, %v5359_v25, %v1711_v5 }
 0x1fe   :  { %v1702_v14 = vsel %vm144_vm1, %v5361_v27, %v1701_v44  ;;  %v1741_v34 = vrot.slane %v5377_v53, 1  ;;  %v1771_v52 = vrot.slane %v5383_v57, 1  ;;  %v1674_v32 = vadd.f32 %v1672_v60, %v5541_v11 }
 0x1ff   :  { %v5770_v20 = vpop.permute.xlu1 %2009  ;;  %v5778_v55 = vpop.permute.xlu0 %1999  ;;  %v1664_v30 = vadd.f32 %v1662_v43, %v5543_v40  ;;  %v1732_v50 = vsel %vm144_vm1, %v5367_v31, %v1731_v17  ;;  %v1761_v24 = vrot.slane %v5385_v47, 1  ;;  %v1722_v25 = vsel %vm144_vm1, %v5369_v39, %v1721_v42 }
 0x200   :  { %v1752_v27 = vsel %vm144_vm1, %v5375_v22, %v1751_v15  ;;  %v1781_v11 = vrot.slane %v5397_v63, 1  ;;  %v1694_v40 = vadd.f32 %v1692_v36, %v5557_v58  ;;  %v1684_v31 = vadd.f32 %v1682_v19, %v5568_v38 }
 0x201   :  { %2615 = vrot.lane.b32.xlu1 %v5621_v1, %s3557_s25  ;;  %2605 = vrot.lane.b32.xlu0 %v5624_v59, %s3557_s25  ;;  %v1791_v1 = vrot.slane %v5393_v12, 1  ;;  %v1714_v44 = vadd.f32 %v1712_v28, %v1654_v13  ;;  %v1704_v17 = vadd.f32 %v1702_v14, %v1644_v49  ;;  %v1742_v39 = vsel %vm144_vm1, %v5377_v53, %v1741_v34 }
 0x202   :  { %v1772_v22 = vsel %vm205_vm2, %v5383_v57, %v1771_v52  ;;  %v1811_v59 = vrot.slane %v5405_v8, 1  ;;  %v1801_v9 = vrot.slane %v5409_v0, 1  ;;  %v1734_v58 = vadd.f32 %v1732_v50, %v1674_v32 }
 0x203   :  { %v5801_v5 = vpop.permute.xlu1 %2029  ;;  %v5805_v2 = vpop.permute.xlu0 %2019  ;;  %v1724_v45 = vadd.f32 %v1722_v25, %v1664_v30  ;;  %v1754_v38 = vadd.f32 %v1752_v27, %v1694_v40  ;;  %v1762_v19 = vsel %vm205_vm2, %v5385_v47, %v1761_v24  ;;  %v1792_v53 = vsel %vm205_vm2, %v5393_v12, %v1791_v1 }
 0x204   :  { %v1782_v57 = vsel %vm205_vm2, %v5397_v63, %v1781_v11  ;;  %v1831_v60 = vrot.slane %v5426_v21, 1  ;;  %v1821_v43 = vrot.slane %v5435_v54, 1  ;;  %v1744_v42 = vadd.f32 %v1742_v39, %v1684_v31  ;;  %v6532_v31 = vld [vmem:[#allocation15_spill] sm:$0xff]  ;;  %v6534_v39 = vld [vmem:[#allocation18_spill] sm:$0xff] }
 0x205   :  { %2661 = vrot.lane.b32.xlu1 %v5628_v61, %s3550_s30  ;;  %2651 = vrot.lane.b32.xlu0 %v5639_v23, %s3550_s30  ;;  %v1774_v15 = vadd.f32 %v1772_v22, %v1714_v44  ;;  %v1851_v13 = vrot.slane %v5452_v4, 1  ;;  %v1841_v47 = vrot.slane %v5461_v16, 1  ;;  %v1812_v12 = vsel %vm205_vm2, %v5405_v8, %v1811_v59  ;;  %v6535_v59 = vld [vmem:[#allocation20_spill] sm:$0xff] }
 0x206   :  { %v1802_v63 = vsel %vm205_vm2, %v5409_v0, %v1801_v9  ;;  %v1871_v23 = vrot.slane %v5480_v51, 1  ;;  %v1861_v36 = vrot.slane %v5491_v33, 1  ;;  %v1764_v28 = vadd.f32 %v1762_v19, %v1704_v17  ;;  %v6533_v17 = vld [vmem:[#allocation19_spill] sm:$0xff] }
 0x207   :  { %v5825_v61 = vpop.permute.xlu1 %2049  ;;  %v5829_v49 = vpop.permute.xlu0 %2039  ;;  %v1794_v14 = vadd.f32 %v1792_v53, %v1734_v58  ;;  %v1784_v34 = vadd.f32 %v1782_v57, %v1724_v45  ;;  %v1891_v52 = vrot.slane %v5515_v46, 1  ;;  %v1832_v8 = vsel %vm266_vm3, %v5426_v21, %v1831_v60  ;;  %v6536_v60 = vld [vmem:[#allocation22_spill] sm:$0xff] }
 0x208   :  { %v1822_v0 = vsel %vm266_vm3, %v5435_v54, %v1821_v43  ;;  %v1881_v32 = vrot.slane %v5525_v26, 1  ;;  %v1911_v30 = vrot.slane %v5559_v41, 1  ;;  %v1804_v24 = vadd.f32 %v1802_v63, %v1744_v42 }
 0x209   :  { %2681 = vrot.lane.b32.xlu1 %v5642_v62, %s3550_s30  ;;  %2671 = vrot.lane.b32.xlu0 %v5645_v6, %s3550_s30  ;;  %v1814_v62 = vadd.f32 %v1812_v12, %v1754_v38  ;;  %v1852_v25 = vsel %vm266_vm3, %v5452_v4, %v1851_v13  ;;  %v1842_v6 = vsel %vm266_vm3, %v5461_v16, %v1841_v47  ;;  %v1901_v1 = vrot.slane %v5570_v18, 1  ;;  %v6537_v47 = vld [vmem:[#allocation21_spill] sm:$0xff]  ;;  %v6538_v12 = vld [vmem:[#allocation31_spill] sm:$0xff] }
 0x20a   :  { %v1872_v21 = vsel %vm266_vm3, %v5480_v51, %v1871_v23  ;;  %v1862_v54 = vsel %vm266_vm3, %v5491_v33, %v1861_v36  ;;  %v1931_v11 = vrot.slane %v5602_v35, 1  ;;  %v1834_v40 = vadd.f32 %v1832_v8, %v1774_v15 }
 0x20b   :  { %v5848_v50 = vpop.permute.xlu1 %2069  ;;  %v5854_v27 = vpop.permute.xlu0 %2059  ;;  %v1824_v4 = vadd.f32 %v1822_v0, %v1764_v28  ;;  %v1892_v16 = vsel %vm327_vm4, %v5515_v46, %v1891_v52  ;;  %v1921_v44 = vrot.slane %v6532_v31, 1  ;;  %v1882_v51 = vsel %vm327_vm4, %v5525_v26, %v1881_v32 }
 0x20c   :  { %v1912_v33 = vsel %vm327_vm4, %v5559_v41, %v1911_v30  ;;  %v1951_v22 = vrot.slane %v6534_v39, 1  ;;  %v1854_v58 = vadd.f32 %v1852_v25, %v1794_v14  ;;  %v1844_v45 = vadd.f32 %v1842_v6, %v1784_v34  ;;  %v6539_v34 = vld [vmem:[#allocation33_spill] sm:$0xff]  ;;  %v6540_v25 = vld [vmem:[#allocation23_spill] sm:$0xff] }
 0x20d   :  { %2701 = vrot.lane.b32.xlu1 %v5661_v48, %s3550_s30  ;;  %2691 = vrot.lane.b32.xlu0 %v6533_v17, %s3550_s30  ;;  %v1941_v48 = vrot.slane %v6535_v59, 1  ;;  %v1874_v46 = vadd.f32 %v1872_v21, %v1814_v62  ;;  %v1864_v38 = vadd.f32 %v1862_v54, %v1804_v24  ;;  %v1894_v53 = vadd.f32 %v1892_v16, %v1834_v40  ;;  %s5914_s30 = sld [smem:[#allocation2 + $0x16]] }
 0x20e   :  { %v1902_v57 = vsel %vm327_vm4, %v5570_v18, %v1901_v1  ;;  %v1932_v26 = vsel %vm327_vm4, %v5602_v35, %v1931_v11  ;;  %v1991_v41 = vrot.slane %v5732_v37, 1  ;;  %v1884_v43 = vadd.f32 %v1882_v51, %v1824_v4  ;;  %v6541_v11 = vld [vmem:[#allocation24_spill] sm:$0xff] }
 0x20f   :  { %v5875_v9 = vpop.permute.xlu1 %2089  ;;  %v5877_v19 = vpop.permute.xlu0 %2079  ;;  %v1914_v42 = vadd.f32 %v1912_v33, %v1854_v58  ;;  %v1922_v15 = vsel %vm327_vm4, %v6532_v31, %v1921_v44  ;;  %v1971_v13 = vrot.slane %v5692_v3, 1  ;;  %v1952_v18 = vsel %vm388_vm5, %v6534_v39, %v1951_v22 }
 0x210   :  { %v1942_v35 = vsel %vm388_vm5, %v6535_v59, %v1941_v48  ;;  %v1981_v63 = vrot.slane %v6538_v12, 1  ;;  %v2011_v23 = vrot.slane %v5770_v20, 1  ;;  %v1904_v28 = vadd.f32 %v1902_v57, %v1844_v45  ;;  %v6542_v48 = vld [vmem:[#allocation34_spill] sm:$0xff] }
 0x211   :  { %2721 = vrot.lane.b32.xlu1 %v6536_v60, %s3551_s10  ;;  %2711 = vrot.lane.b32.xlu0 %v6537_v47, %s3551_s10  ;;  %v1934_v14 = vadd.f32 %v1932_v26, %v1874_v46  ;;  %v1961_v52 = vrot.slane %v6539_v34, 1  ;;  %v2051_v8 = vrot.slane %v5825_v61, 1  ;;  %v1924_v32 = vadd.f32 %v1922_v15, %v1864_v38  ;;  %v6543_v38 = vld [vmem:[#allocation35_spill] sm:$0xff] }
 0x212   :  { %v1992_v30 = vsel %vm388_vm5, %v5732_v37, %v1991_v41  ;;  %v2041_v62 = vrot.slane %v5829_v49, 1  ;;  %v2071_v24 = vrot.slane %v5848_v50, 1  ;;  %v1954_v6 = vadd.f32 %v1952_v18, %v1894_v53 }
 0x213   :  { %v2110_v36 = vpop.permute.xlu1 %2109  ;;  %v2100_v0 = vpop.permute.xlu0 %2099  ;;  %v1944_v21 = vadd.f32 %v1942_v35, %v1884_v43  ;;  %v1972_v54 = vsel %vm388_vm5, %v5692_v3, %v1971_v13  ;;  %v1982_v40 = vsel %vm388_vm5, %v6538_v12, %v1981_v63  ;;  %v2012_v37 = vsel %vm449_vm6, %v5770_v20, %v2011_v23  ;;  %v6544_v35 = vld [vmem:[#allocation26_spill] sm:$0xff] }
 0x214   :  { %v2111_v1 = vrot.slane %v2110_v36, 1  ;;  %v2001_v4 = vrot.slane %v5778_v55, 1  ;;  %v2101_v16 = vrot.slane %v2100_v0, 1  ;;  %v1962_v44 = vsel %vm388_vm5, %v6539_v34, %v1961_v52 }
 0x215   :  { %2741 = vrot.lane.b32.xlu1 %v6540_v25, %s3551_s10  ;;  %2731 = vrot.lane.b32.xlu0 %v6541_v11, %s3551_s10  ;;  %v1994_v3 = vadd.f32 %v1992_v30, %v1934_v14  ;;  %v2031_v17 = vrot.slane %v5801_v5, 1  ;;  %v2052_v51 = vsel %vm449_vm6, %v5825_v61, %v2051_v8  ;;  %v2021_v39 = vrot.slane %v5805_v2, 1 }
 0x216   :  { %v2042_v20 = vsel %vm449_vm6, %v5829_v49, %v2041_v62  ;;  %v2072_v22 = vsel %vm510_vm7, %v5848_v50, %v2071_v24  ;;  %v2061_v59 = vrot.slane %v5854_v27, 1  ;;  %v1984_v58 = vadd.f32 %v1982_v40, %v1924_v32  ;;  %v6547_v32 = vld [vmem:[#allocation25_spill] sm:$0xff] }
 0x217   :  { %v2156_v31 = vpop.permute.xlu1 %2155  ;;  %v2146_v33 = vpop.permute.xlu0 %2145  ;;  %v2014_v45 = vadd.f32 %v2012_v37, %v1954_v6  ;;  %v2091_v46 = vrot.slane %v5875_v9, 1  ;;  %v2112_v61 = vsel %vm510_vm7, %v2110_v36, %v2111_v1  ;;  %v1974_v53 = vadd.f32 %v1972_v54, %v1914_v42  ;;  %v6548_v6 = vld [vmem:[#allocation28_spill] sm:$0xff]  ;;  %v6549_v37 = vld [vmem:[#allocation30_spill] sm:$0xff] }
 0x218   :  { %v2002_v49 = vsel %vm449_vm6, %v5778_v55, %v2001_v4  ;;  %v2054_v57 = vadd.f32 %v2052_v51, %v1994_v3  ;;  %v2102_v50 = vsel %vm510_vm7, %v2100_v0, %v2101_v16  ;;  %v1964_v41 = vadd.f32 %v1962_v44, %v1904_v28  ;;  %v6550_v16 = vld [vmem:[#allocation32_spill] sm:$0xff]  ;;  %v6551_v51 = vld [vmem:[#allocation29_spill] sm:$0xff] }
 0x219   :  { %2761 = vrot.lane.b32.xlu1 %v6542_v48, %s3551_s10  ;;  %2751 = vrot.lane.b32.xlu0 %v6543_v38, %s3551_s10  ;;  %v2032_v60 = vsel %vm449_vm6, %v5801_v5, %v2031_v17  ;;  %v2044_v43 = vadd.f32 %v2042_v20, %v1984_v58  ;;  %v2074_v15 = vadd.f32 %v2072_v22, %v2014_v45  ;;  %v2081_v55 = vrot.slane %v5877_v19, 1  ;;  %s5945_s10 = sld [smem:[#allocation2 + $0x67]] }
 0x21a   :  { %v2022_v47 = vsel %vm449_vm6, %v5805_v2, %v2021_v39  ;;  %v2062_v42 = vsel %vm510_vm7, %v5854_v27, %v2061_v59  ;;  %v2114_v18 = vadd.f32 %v2112_v61, %v2054_v57  ;;  %v2004_v5 = vadd.f32 %v2002_v49, %v1944_v21  ;;  %v6545_v2 = vld [vmem:[#allocation27_spill] sm:$0xff]  ;;  %v6552_v49 = vld [vmem:[#allocation36_spill] sm:$0xff] }
 0x21b   :  { %v2176_v26 = vpop.permute.xlu1 %2175  ;;  %v2166_v13 = vpop.permute.xlu0 %2165  ;;  %v2092_v12 = vsel %vm510_vm7, %v5875_v9, %v2091_v46  ;;  %v2104_v63 = vadd.f32 %v2102_v50, %v2044_v43  ;;  %v2157_v23 = vrot.slane %v2156_v31, 1  ;;  %v2034_v27 = vadd.f32 %v2032_v60, %v1974_v53 }
 0x21c   :  { %v2147_v36 = vrot.slane %v2146_v33, 1  ;;  %v6546_v14 = vstv %s5690_s27  ;;  %v2828_v52 = vstv %s5914_s30  ;;  %v2024_v8 = vadd.f32 %v2022_v47, %v1964_v41  ;;  %s6098_s27 = sld [smem:[#allocation2 + $0x1a]]  ;;  %s6110_s30 = sld [smem:[#allocation2 + $0x50]] }
 0x21d   :  { %2781 = vrot.lane.b32.xlu1 %v6544_v35, %s3552_s17  ;;  %2771 = vrot.lane.b32.xlu0 %v6545_v2, %s3552_s17  ;;  %v2839_v34 = vmul.f32 %v5578_v29, %v6546_v14  ;;  %v2064_v0 = vadd.f32 %v2062_v42, %v2004_v5  ;;  %v2124_v30 = vadd.f32 %v6547_v32, %v2074_v15  ;;  %v2177_v11 = vrot.slane %v2176_v26, 1 }
 0x21e   :  { %v2094_v24 = vadd.f32 %v2092_v12, %v2034_v27  ;;  %v2082_v25 = vsel %vm510_vm7, %v5877_v19, %v2081_v55  ;;  %v2140_v21 = vadd.f32 %v6548_v6, %v2114_v18  ;;  %v2158_v1 = vsel %vm83_vm0, %v2156_v31, %v2157_v23 }
 0x21f   :  { %v2196_v28 = vpop.permute.xlu1 %2195  ;;  %v2186_v9 = vpop.permute.xlu0 %2185  ;;  %v2136_v4 = vadd.f32 %v6549_v37, %v2104_v63  ;;  %v2148_v19 = vsel %vm83_vm0, %v2146_v33, %v2147_v36  ;;  %v2167_v44 = vrot.slane %v2166_v13, 1  ;;  %v2084_v31 = vadd.f32 %v2082_v25, %v2024_v8 }
 0x220   :  { %v2197_v62 = vrot.slane %v2196_v28, 1  ;;  %v2187_v54 = vrot.slane %v2186_v9, 1  ;;  %v2120_v39 = vadd.f32 %v6551_v51, %v2064_v0  ;;  %v2160_v48 = vadd.f32 %v2158_v1, %v2124_v30 }
 0x221   :  { %2801 = vrot.lane.b32.xlu1 %v5741_v56, %s3552_s17  ;;  %2791 = vrot.lane.b32.xlu0 %v6550_v16, %s3552_s17  ;;  %v2829_v33 = vmul.f32 %v5578_v29, %v2828_v52  ;;  %v2858_v45 = vstv %s5945_s10  ;;  %v2178_v61 = vsel %vm83_vm0, %v2176_v26, %v2177_v11  ;;  %v2848_v53 = vstv %s5951_s26  ;;  %v6553_v26 = vld [vmem:[#allocation37_spill] sm:$0xff]  ;;  %s6118_s10 = sld [smem:[#allocation2 + $0xa1]]  ;;  %s6122_s26 = sld [smem:[#allocation2 + $0x86]] }
 0x222   :  { %v2198_v40 = vsel %vm83_vm0, %v2196_v28, %v2197_v62  ;;  %v2188_v17 = vsel %vm83_vm0, %v2186_v9, %v2187_v54  ;;  %v2150_v46 = vadd.f32 %v2148_v19, %v2120_v39  ;;  %v2132_v57 = vadd.f32 %v6552_v49, %v2094_v24 }
 0x223   :  { %v2200_v3 = vadd.f32 %v2198_v40, %v2140_v21  ;;  %v2216_v56 = vpop.permute.xlu1 %2215  ;;  %v2190_v20 = vadd.f32 %v2188_v17, %v2136_v4  ;;  %v2206_v59 = vpop.permute.xlu0 %2205  ;;  %v2168_v50 = vsel %vm83_vm0, %v2166_v13, %v2167_v44  ;;  %v2128_v43 = vadd.f32 %v6553_v26, %v2084_v31 }
 0x224   :  { %v2217_v22 = vrot.slane %v2216_v56, 1  ;;  %v2207_v58 = vrot.slane %v2206_v59, 1  ;;  %v2180_v42 = vadd.f32 %v2178_v61, %v2132_v57  ;;  %v2859_v18 = vmul.f32 %v5578_v29, %v2858_v45 }
 0x225   :  { %2821 = vrot.lane.b32.xlu1 %v5758_v10, %s3552_s17  ;;  %2811 = vrot.lane.b32.xlu0 %v5761_v7, %s3552_s17  ;;  %v2170_v13 = vadd.f32 %v2168_v50, %v2128_v43  ;;  %v2849_v5 = vmul.f32 %v5578_v29, %v2848_v53  ;;  %v2878_v12 = vstv %s5968_s4  ;;  %s5998_s17 = sld [smem:[#allocation2 + $0x68]]  ;;  %v2868_v27 = vstv %s5972_s28 }
 0x226   :  { %v2218_v38 = vsel %vm144_vm1, %v2216_v56, %v2217_v22  ;;  %v2208_v10 = vsel %vm144_vm1, %v2206_v59, %v2207_v58  ;;  %v2879_v52 = vmul.f32 %v5578_v29, %v2878_v12  ;;  %v2869_v0 = vmul.f32 %v5578_v29, %v2868_v27 }
 0x227   :  { %v2220_v41 = vadd.f32 %v2218_v38, %v2160_v48  ;;  %v2236_v60 = vpop.permute.xlu1 %2235  ;;  %v2210_v15 = vadd.f32 %v2208_v10, %v2150_v46  ;;  %v2226_v7 = vpop.permute.xlu0 %2225  ;;  %v2898_v32 = vstv %s5984_s7  ;;  %v2888_v24 = vstv %s5989_s8  ;;  %s6165_s7 = sld [smem:[#allocation2 + $0x48]]  ;;  %s6169_s8 = sld [smem:[#allocation2 + $0x99]] }
 0x228   :  { %v2237_v47 = vrot.slane %v2236_v60, 1  ;;  %v2227_v55 = vrot.slane %v2226_v7, 1  ;;  %v2899_v1 = vmul.f32 %v5578_v29, %v2898_v32  ;;  %v2889_v40 = vmul.f32 %v5578_v29, %v2888_v24 }
 0x229   :  { %2841 = vrot.lane.b32.xlu1 %v2839_v34, %s3553_s22  ;;  %2831 = vrot.lane.b32.xlu0 %v2829_v33, %s3553_s22  ;;  %v2908_v44 = vstv %s6002_s14  ;;  %v2938_v22 = vstv %s6010_s5 }
 0x22a   :  { %v2238_v35 = vsel %vm144_vm1, %v2236_v60, %v2237_v47  ;;  %v2228_v23 = vsel %vm144_vm1, %v2226_v7, %v2227_v55  ;;  %v2928_v33 = vstv %s6014_s9  ;;  %v2939_v53 = vmul.f32 %v5578_v29, %v2938_v22 }
 0x22b   :  { %v2240_v63 = vadd.f32 %v2238_v35, %v2180_v42  ;;  %v2256_v2 = vpop.permute.xlu1 %2255  ;;  %v2230_v36 = vadd.f32 %v2228_v23, %v2170_v13  ;;  %v2246_v14 = vpop.permute.xlu0 %2245  ;;  %v2918_v37 = vstv %s5998_s17  ;;  %v2929_v57 = vmul.f32 %v5578_v29, %v2928_v33  ;;  %s6172_s17 = sld [smem:[#allocation2 + $0x7e]] }
 0x22c   :  { %v2257_v28 = vrot.slane %v2256_v2, 1  ;;  %v2247_v34 = vrot.slane %v2246_v14, 1  ;;  %v2919_v51 = vmul.f32 %v5578_v29, %v2918_v37  ;;  %v2958_v50 = vstv %s6022_s6 }
 0x22d   :  { %2861 = vrot.lane.b32.xlu1 %v2859_v18, %s3553_s22  ;;  %2851 = vrot.lane.b32.xlu0 %v2849_v5, %s3553_s22  ;;  %v2948_v26 = vstv %s6026_s12  ;;  %v2959_v42 = vmul.f32 %v5578_v29, %v2958_v50 }
 0x22e   :  { %v2258_v8 = vsel %vm144_vm1, %v2256_v2, %v2257_v28  ;;  %v2248_v62 = vsel %vm144_vm1, %v2246_v14, %v2247_v34  ;;  %v2949_v18 = vmul.f32 %v5578_v29, %v2948_v26 }
 0x22f   :  { %v2260_v30 = vadd.f32 %v2258_v8, %v2200_v3  ;;  %v2276_v9 = vpop.permute.xlu1 %2275  ;;  %v2250_v25 = vadd.f32 %v2248_v62, %v2190_v20  ;;  %v2266_v21 = vpop.permute.xlu0 %2265  ;;  %v2909_v20 = vmul.f32 %v5578_v29, %v2908_v44 }
 0x230   :  { %v2277_v6 = vrot.slane %v2276_v9, 1  ;;  %v2267_v54 = vrot.slane %v2266_v21, 1 }
 0x231   :  { %2881 = vrot.lane.b32.xlu1 %v2879_v52, %s3553_s22  ;;  %2871 = vrot.lane.b32.xlu0 %v2869_v0, %s3553_s22  ;;  %s6034_s22 = sld [smem:[#allocation2 + $0x69]]  ;;  %v2998_v52 = vstv %s6046_s18 }
 0x232   :  { %v2278_v11 = vsel %vm205_vm2, %v2276_v9, %v2277_v6  ;;  %v2268_v16 = vsel %vm205_vm2, %v2266_v21, %v2267_v54  ;;  %v2999_v6 = vmul.f32 %v5578_v29, %v2998_v52 }
 0x233   :  { %v2280_v4 = vadd.f32 %v2278_v11, %v2220_v41  ;;  %v2296_v19 = vpop.permute.xlu1 %2295  ;;  %v2270_v3 = vadd.f32 %v2268_v16, %v2210_v15  ;;  %v2286_v56 = vpop.permute.xlu0 %2285 }
 0x234   :  { %v2297_v17 = vrot.slane %v2296_v19, 1  ;;  %v2287_v31 = vrot.slane %v2286_v56, 1 }
 0x235   :  { %2901 = vrot.lane.b32.xlu1 %v2899_v1, %s6554_s13  ;;  %2891 = vrot.lane.b32.xlu0 %v2889_v40, %s6554_s13  ;;  %v3018_v1 = vstv %s6058_s16 }
 0x236   :  { %v2298_v39 = vsel %vm205_vm2, %v2296_v19, %v2297_v17  ;;  %v2288_v48 = vsel %vm205_vm2, %v2286_v56, %v2287_v31  ;;  %v3019_v17 = vmul.f32 %v5578_v29, %v3018_v1 }
 0x237   :  { %v2300_v59 = vadd.f32 %v2298_v39, %v2240_v63  ;;  %v2316_v58 = vpop.permute.xlu1 %2315  ;;  %v2290_v45 = vadd.f32 %v2288_v48, %v2230_v36  ;;  %v2306_v61 = vpop.permute.xlu0 %2305  ;;  %v2978_v13 = vstv %s6034_s22  ;;  %v2968_v63 = vstv %s6038_s15 }
 0x238   :  { %v2317_v46 = vrot.slane %v2316_v58, 1  ;;  %v2307_v38 = vrot.slane %v2306_v61, 1  ;;  %v2979_v28 = vmul.f32 %v5578_v29, %v2978_v13  ;;  %v2969_v34 = vmul.f32 %v5578_v29, %v2968_v63 }
 0x239   :  { %2921 = vrot.lane.b32.xlu1 %v2919_v51, %s6554_s13  ;;  %2911 = vrot.lane.b32.xlu0 %v2909_v20, %s6554_s13  ;;  %v3038_v51 = vstv %s6070_s20 }
 0x23a   :  { %v2318_v49 = vsel %vm205_vm2, %v2316_v58, %v2317_v46  ;;  %v2308_v10 = vsel %vm205_vm2, %v2306_v61, %v2307_v38  ;;  %v3039_v46 = vmul.f32 %v5578_v29, %v3038_v51 }
 0x23b   :  { %v2320_v41 = vadd.f32 %v2318_v49, %v2260_v30  ;;  %v2336_v60 = vpop.permute.xlu1 %2335  ;;  %v2310_v43 = vadd.f32 %v2308_v10, %v2250_v25  ;;  %v2326_v47 = vpop.permute.xlu0 %2325  ;;  %v2988_v30 = vstv %s6050_s1 }
 0x23c   :  { %v2337_v15 = vrot.slane %v2336_v60, 1  ;;  %v2327_v7 = vrot.slane %v2326_v47, 1  ;;  %v2989_v54 = vmul.f32 %v5578_v29, %v2988_v30 }
 0x23d   :  { %2941 = vrot.lane.b32.xlu1 %v2939_v53, %s6554_s13  ;;  %2931 = vrot.lane.b32.xlu0 %v2929_v57, %s6554_s13  ;;  %v3058_v53 = vstv %s6082_s23 }
 0x23e   :  { %v2338_v55 = vsel %vm266_vm3, %v2336_v60, %v2337_v15  ;;  %v2328_v5 = vsel %vm266_vm3, %v2326_v47, %v2327_v7  ;;  %v3059_v15 = vmul.f32 %v5578_v29, %v3058_v53 }
 0x23f   :  { %v2340_v35 = vadd.f32 %v2338_v55, %v2280_v4  ;;  %v2356_v12 = vpop.permute.xlu1 %2355  ;;  %v2330_v23 = vadd.f32 %v2328_v5, %v2270_v3  ;;  %v2346_v27 = vpop.permute.xlu0 %2345  ;;  %v3008_v4 = vstv %s6062_s29 }
 0x240   :  { %v2357_v2 = vrot.slane %v2356_v12, 1  ;;  %v2347_v36 = vrot.slane %v2346_v27, 1  ;;  %v3009_v31 = vmul.f32 %v5578_v29, %v3008_v4 }
 0x241   :  { %2961 = vrot.lane.b32.xlu1 %v2959_v42, %s3555_s11  ;;  %2951 = vrot.lane.b32.xlu0 %v2949_v18, %s3555_s11  ;;  %v3078_v42 = vstv %s6094_s21 }
 0x242   :  { %v2358_v14 = vsel %vm266_vm3, %v2356_v12, %v2357_v2  ;;  %v2348_v0 = vsel %vm266_vm3, %v2346_v27, %v2347_v36  ;;  %v3079_v2 = vmul.f32 %v5578_v29, %v3078_v42 }
 0x243   :  { %v2360_v8 = vadd.f32 %v2358_v14, %v2300_v59  ;;  %v2376_v32 = vpop.permute.xlu1 %2375  ;;  %v2350_v62 = vadd.f32 %v2348_v0, %v2290_v45  ;;  %v2366_v24 = vpop.permute.xlu0 %2365  ;;  %v3028_v59 = vstv %s6074_s2 }
 0x244   :  { %v2377_v9 = vrot.slane %v2376_v32, 1  ;;  %v2367_v25 = vrot.slane %v2366_v24, 1  ;;  %v3029_v38 = vmul.f32 %v5578_v29, %v3028_v59 }
 0x245   :  { %2981 = vrot.lane.b32.xlu1 %v2979_v28, %s3555_s11  ;;  %2971 = vrot.lane.b32.xlu0 %v2969_v34, %s3555_s11 }
 0x246   :  { %v2378_v21 = vsel %vm266_vm3, %v2376_v32, %v2377_v9  ;;  %v2368_v40 = vsel %vm266_vm3, %v2366_v24, %v2367_v25  ;;  %v6136_v9 = vld [vmem:[%s6336_s0 + $0xa] ss:$4 sm:$0x3]  ;;  %s6158_s0 = sld [smem:[#allocation2 + $0x2d]] }
 0x247   :  { %v2380_v11 = vadd.f32 %v2378_v21, %v2320_v41  ;;  %v2396_v37 = vpop.permute.xlu1 %2395  ;;  %v2370_v16 = vadd.f32 %v2368_v40, %v2310_v43  ;;  %v2386_v44 = vpop.permute.xlu0 %2385  ;;  %v3048_v41 = vstv %s6086_s24 }
 0x248   :  { %v2397_v19 = vrot.slane %v2396_v37, 1  ;;  %v2387_v3 = vrot.slane %v2386_v44, 1  ;;  %v3049_v7 = vmul.f32 %v5578_v29, %v3048_v41 }
 0x249   :  { %3001 = vrot.lane.b32.xlu1 %v2999_v6, %s3555_s11  ;;  %2991 = vrot.lane.b32.xlu0 %v2989_v54, %s3555_s11  ;;  %s6106_s11 = sld [smem:[#allocation2 + $0x6b]]  ;;  %v3118_v6 = vstv %s6118_s10 }
 0x24a   :  { %v2398_v56 = vsel %vm327_vm4, %v2396_v37, %v2397_v19  ;;  %v2388_v20 = vsel %vm327_vm4, %v2386_v44, %v2387_v3  ;;  %v3119_v19 = vmul.f32 %v6136_v9, %v3118_v6 }
 0x24b   :  { %v2400_v39 = vadd.f32 %v2398_v56, %v2340_v35  ;;  %v2416_v22 = vpop.permute.xlu1 %2415  ;;  %v2390_v48 = vadd.f32 %v2388_v20, %v2330_v23  ;;  %v2406_v33 = vpop.permute.xlu0 %2405  ;;  %v3068_v35 = vstv %s6098_s27 }
 0x24c   :  { %v2417_v58 = vrot.slane %v2416_v22, 1  ;;  %v2407_v45 = vrot.slane %v2406_v33, 1  ;;  %v3069_v36 = vmul.f32 %v5578_v29, %v3068_v35 }
 0x24d   :  { %3021 = vrot.lane.b32.xlu1 %v3019_v17, %s3556_s19  ;;  %3011 = vrot.lane.b32.xlu0 %v3009_v31, %s3556_s19 }
 0x24e   :  { %v2418_v61 = vsel %vm327_vm4, %v2416_v22, %v2417_v58  ;;  %v2408_v57 = vsel %vm327_vm4, %v2406_v33, %v2407_v45 }
 0x24f   :  { %v2420_v49 = vadd.f32 %v2418_v61, %v2360_v8  ;;  %v2436_v50 = vpop.permute.xlu1 %2435  ;;  %v2410_v10 = vadd.f32 %v2408_v57, %v2350_v62  ;;  %v2426_v26 = vpop.permute.xlu0 %2425  ;;  %v3098_v28 = vstv %s6106_s11  ;;  %v3088_v8 = vstv %s6110_s30 }
 0x250   :  { %v2437_v60 = vrot.slane %v2436_v50, 1  ;;  %v2427_v43 = vrot.slane %v2426_v26, 1  ;;  %v3099_v29 = vmul.f32 %v6136_v9, %v3098_v28  ;;  %v3089_v25 = vmul.f32 %v6136_v9, %v3088_v8 }
 0x251   :  { %3041 = vrot.lane.b32.xlu1 %v3039_v46, %s3556_s19  ;;  %3031 = vrot.lane.b32.xlu0 %v3029_v38, %s3556_s19 }
 0x252   :  { %v2438_v47 = vsel %vm327_vm4, %v2436_v50, %v2437_v60  ;;  %v2428_v18 = vsel %vm327_vm4, %v2426_v26, %v2427_v43 }
 0x253   :  { %v2440_v55 = vadd.f32 %v2438_v47, %v2380_v11  ;;  %v2456_v13 = vpop.permute.xlu1 %2455  ;;  %v2430_v5 = vadd.f32 %v2428_v18, %v2370_v16  ;;  %v2446_v63 = vpop.permute.xlu0 %2445  ;;  %v3108_v11 = vstv %s6122_s26 }
 0x254   :  { %v2457_v12 = vrot.slane %v2456_v13, 1  ;;  %v2447_v23 = vrot.slane %v2446_v63, 1  ;;  %v3109_v3 = vmul.f32 %v6136_v9, %v3108_v11 }
 0x255   :  { %3061 = vrot.lane.b32.xlu1 %v3059_v15, %s3556_s19  ;;  %3051 = vrot.lane.b32.xlu0 %v3049_v7, %s3556_s19  ;;  %s3446_s19 = sld [smem:[#allocation2 + $0x12]] }
 0x256   :  { %v2458_v27 = vsel %vm388_vm5, %v2456_v13, %v2457_v12  ;;  %v2448_v34 = vsel %vm388_vm5, %v2446_v63, %v2447_v23 }
 0x257   :  { %v2460_v14 = vadd.f32 %v2458_v27, %v2400_v39  ;;  %v2476_v52 = vpop.permute.xlu1 %2475  ;;  %v2450_v0 = vadd.f32 %v2448_v34, %v2390_v48  ;;  %v2466_v30 = vpop.permute.xlu0 %2465 }
 0x258   :  { %v2477_v32 = vrot.slane %v2476_v52, 1  ;;  %v2467_v62 = vrot.slane %v2466_v30, 1 }
 0x259   :  { %3081 = vrot.lane.b32.xlu1 %v3079_v2, %s3557_s25  ;;  %3071 = vrot.lane.b32.xlu0 %v3069_v36, %s3557_s25 }
 0x25a   :  { %v2478_v24 = vsel %vm388_vm5, %v2476_v52, %v2477_v32  ;;  %v2468_v54 = vsel %vm388_vm5, %v2466_v30, %v2467_v62 }
 0x25b   :  { %v2480_v21 = vadd.f32 %v2478_v24, %v2420_v49  ;;  %v2496_v1 = vpop.permute.xlu1 %2495  ;;  %v2470_v40 = vadd.f32 %v2468_v54, %v2410_v10  ;;  %v2486_v4 = vpop.permute.xlu0 %2485 }
 0x25c   :  { %v2497_v37 = vrot.slane %v2496_v1, 1  ;;  %v2487_v16 = vrot.slane %v2486_v4, 1 }
 0x25d   :  { %3101 = vrot.lane.b32.xlu1 %v3099_v29, %s3557_s25  ;;  %3091 = vrot.lane.b32.xlu0 %v3089_v25, %s3557_s25 }
 0x25e   :  { %v2498_v44 = vsel %vm388_vm5, %v2496_v1, %v2497_v37  ;;  %v2488_v56 = vsel %vm388_vm5, %v2486_v4, %v2487_v16 }
 0x25f   :  { %v2500_v17 = vadd.f32 %v2498_v44, %v2440_v55  ;;  %v2516_v31 = vpop.permute.xlu1 %2515  ;;  %v2490_v51 = vadd.f32 %v2488_v56, %v2430_v5  ;;  %v2506_v20 = vpop.permute.xlu0 %2505 }
 0x260   :  { %v2517_v39 = vrot.slane %v2516_v31, 1  ;;  %v2507_v22 = vrot.slane %v2506_v20, 1 }
 0x261   :  { %3121 = vrot.lane.b32.xlu1 %v3119_v19, %s3557_s25  ;;  %3111 = vrot.lane.b32.xlu0 %v3109_v3, %s3557_s25  ;;  %s6162_s25 = sld [smem:[#allocation2 + $0x63]] }
 0x262   :  { %v2518_v59 = vsel %vm449_vm6, %v2516_v31, %v2517_v39  ;;  %v2508_v58 = vsel %vm449_vm6, %v2506_v20, %v2507_v22 }
 0x263   :  { %v2520_v48 = vadd.f32 %v2518_v59, %v2460_v14  ;;  %v2536_v33 = vpop.permute.xlu1 %2535  ;;  %v2510_v45 = vadd.f32 %v2508_v58, %v2450_v0  ;;  %v2526_v61 = vpop.permute.xlu0 %2525  ;;  %v2628_v14 = vstv %s6158_s0  ;;  %v2624_v0 = vstv %s3446_s19 }
 0x264   :  { %v2537_v46 = vrot.slane %v2536_v33, 1  ;;  %v2527_v38 = vrot.slane %v2526_v61, 1  ;;  %v2629_v24 = vmul.f32 %v6136_v9, %v2628_v14  ;;  %v2625_v6 = vmul.f32 %v6136_v9, %v2624_v0 }
 0x265   :  { %v2640_v59 = vstv %s6172_s17 }
 0x266   :  { %v2538_v53 = vsel %vm449_vm6, %v2536_v33, %v2537_v46  ;;  %v2528_v57 = vsel %vm449_vm6, %v2526_v61, %v2527_v38 }
 0x267   :  { %v2540_v49 = vadd.f32 %v2538_v53, %v2480_v21  ;;  %v2556_v50 = vpop.permute.xlu1 %2555  ;;  %v2530_v41 = vadd.f32 %v2528_v57, %v2470_v40  ;;  %v2546_v60 = vpop.permute.xlu0 %2545  ;;  %v2636_v21 = vstv %s6162_s25  ;;  %v2632_v40 = vstv %s6165_s7 }
 0x268   :  { %v2557_v10 = vrot.slane %v2556_v50, 1  ;;  %v2547_v26 = vrot.slane %v2546_v60, 1  ;;  %v2637_v3 = vmul.f32 %v6136_v9, %v2636_v21  ;;  %v2633_v31 = vmul.f32 %v6136_v9, %v2632_v40 }
 0x26a   :  { %v2558_v43 = vsel %vm449_vm6, %v2556_v50, %v2557_v10  ;;  %v2548_v47 = vsel %vm449_vm6, %v2546_v60, %v2547_v26 }
 0x26b   :  { %v2560_v15 = vadd.f32 %v2558_v43, %v2500_v17  ;;  %v2576_v7 = vpop.permute.xlu1 %2575  ;;  %v2550_v42 = vadd.f32 %v2548_v47, %v2490_v51  ;;  %v2566_v18 = vpop.permute.xlu0 %2565  ;;  %v2644_v51 = vstv %s6169_s8 }
 0x26c   :  { %v2577_v55 = vrot.slane %v2576_v7, 1  ;;  %v2567_v13 = vrot.slane %v2566_v18, 1  ;;  %v2645_v61 = vmul.f32 %v6136_v9, %v2644_v51 }
 0x26e   :  { %v2578_v35 = vsel %vm510_vm7, %v2576_v7, %v2577_v55  ;;  %v2568_v12 = vsel %vm510_vm7, %v2566_v18, %v2567_v13 }
 0x26f   :  { %v2580_v5 = vadd.f32 %v2578_v35, %v2520_v48  ;;  %v2596_v63 = vpop.permute.xlu1 %2595  ;;  %v2570_v23 = vadd.f32 %v2568_v12, %v2510_v45  ;;  %v2586_v27 = vpop.permute.xlu0 %2585 }
 0x270   :  { %v2597_v2 = vrot.slane %v2596_v63, 1  ;;  %v2587_v36 = vrot.slane %v2586_v27, 1 }
 0x271   :  { %v2630_v19 = vadd.f32 %v2629_v24, %v2580_v5  ;;  %v2626_v56 = vadd.f32 %v2625_v6, %v2570_v23 }
 0x272   :  { %v2598_v28 = vsel %vm510_vm7, %v2596_v63, %v2597_v2  ;;  %v2588_v52 = vsel %vm510_vm7, %v2586_v27, %v2587_v36 }
 0x273   :  { %v2600_v34 = vadd.f32 %v2598_v28, %v2540_v49  ;;  %v2616_v8 = vpop.permute.xlu1 %2615  ;;  %v2590_v32 = vadd.f32 %v2588_v52, %v2530_v41  ;;  %v2606_v62 = vpop.permute.xlu0 %2605  ;;  %v2641_v49 = vmul.f32 %v6136_v9, %v2640_v59 }
 0x274   :  { %v2617_v30 = vrot.slane %v2616_v8, 1  ;;  %v2607_v29 = vrot.slane %v2606_v62, 1 }
 0x275   :  { %v2638_v45 = vadd.f32 %v2637_v3, %v2600_v34  ;;  %v2634_v53 = vadd.f32 %v2633_v31, %v2590_v32 }
 0x276   :  { %v2618_v25 = vsel %vm510_vm7, %v2616_v8, %v2617_v30  ;;  %v2608_v1 = vsel %vm510_vm7, %v2606_v62, %v2607_v29 }
 0x277   :  { %v2620_v54 = vadd.f32 %v2618_v25, %v2560_v15  ;;  %v2662_v11 = vpop.permute.xlu1 %2661  ;;  %v2610_v37 = vadd.f32 %v2608_v1, %v2550_v42  ;;  %v2652_v16 = vpop.permute.xlu0 %2651 }
 0x278   :  { %v2663_v4 = vrot.slane %v2662_v11, 1  ;;  %v2653_v44 = vrot.slane %v2652_v16, 1 }
 0x279   :  { %v2646_v43 = vadd.f32 %v2645_v61, %v2620_v54  ;;  %v2642_v7 = vadd.f32 %v2641_v49, %v2610_v37 }
 0x27a   :  { %v2664_v17 = vsel %vm83_vm0, %v2662_v11, %v2663_v4  ;;  %v2654_v20 = vsel %vm83_vm0, %v2652_v16, %v2653_v44 }
 0x27b   :  { %v6184_v39 = vadd.f32 %v2664_v17, %v2630_v19  ;;  %v2682_v22 = vpop.permute.xlu1 %2681  ;;  %v6188_v48 = vadd.f32 %v2654_v20, %v2626_v56  ;;  %v2672_v33 = vpop.permute.xlu0 %2671 }
 0x27c   :  { %v2683_v58 = vrot.slane %v2682_v22, 1  ;;  %v2673_v46 = vrot.slane %v2672_v33, 1 }
 0x27e   :  { %v2684_v38 = vsel %vm83_vm0, %v2682_v22, %v2683_v58  ;;  %v2674_v50 = vsel %vm83_vm0, %v2672_v33, %v2673_v46 }
 0x27f   :  { %v6193_v57 = vadd.f32 %v2684_v38, %v2638_v45  ;;  %v2702_v41 = vpop.permute.xlu1 %2701  ;;  %v6196_v10 = vadd.f32 %v2674_v50, %v2634_v53  ;;  %v2692_v26 = vpop.permute.xlu0 %2691 }
 0x280   :  { %v2703_v60 = vrot.slane %v2702_v41, 1  ;;  %v2693_v15 = vrot.slane %v2692_v26, 1 }
 0x282   :  { %v2704_v47 = vsel %vm83_vm0, %v2702_v41, %v2703_v60  ;;  %v2694_v55 = vsel %vm83_vm0, %v2692_v26, %v2693_v15 }
 0x283   :  { %v2706_v42 = vadd.f32 %v2704_v47, %v2646_v43  ;;  %v2722_v18 = vpop.permute.xlu1 %2721  ;;  %v2696_v13 = vadd.f32 %v2694_v55, %v2642_v7  ;;  %v2712_v9 = vpop.permute.xlu0 %2711 }
 0x284   :  { %v2723_v11 = vrot.slane %v2722_v18, 1  ;;  %v2713_v40 = vrot.slane %v2712_v9, 1 }
 0x286   :  { %v2724_v31 = vsel %vm144_vm1, %v2722_v18, %v2723_v11  ;;  %v2714_v51 = vsel %vm144_vm1, %v2712_v9, %v2713_v40 }
 0x287   :  { %v2742_v35 = vpop.permute.xlu1 %2741  ;;  %v2732_v5 = vpop.permute.xlu0 %2731  ;;  %v2726_v50 = vadd.f32 %v2724_v31, %v6184_v39  ;;  %v2716_v41 = vadd.f32 %v2714_v51, %v6188_v48 }
 0x288   :  { %v2743_v37 = vrot.slane %v2742_v35, 1  ;;  %v2733_v4 = vrot.slane %v2732_v5, 1 }
 0x28a   :  { %v2744_v20 = vsel %vm144_vm1, %v2742_v35, %v2743_v37  ;;  %v2734_v22 = vsel %vm144_vm1, %v2732_v5, %v2733_v4 }
 0x28b   :  { %v2762_v12 = vpop.permute.xlu1 %2761  ;;  %v2752_v63 = vpop.permute.xlu0 %2751  ;;  %v2746_v15 = vadd.f32 %v2744_v20, %v6193_v57  ;;  %v2736_v47 = vadd.f32 %v2734_v22, %v6196_v10 }
 0x28c   :  { %v2763_v16 = vrot.slane %v2762_v12, 1  ;;  %v2753_v19 = vrot.slane %v2752_v63, 1 }
 0x28e   :  { %v2764_v59 = vsel %vm144_vm1, %v2762_v12, %v2763_v16  ;;  %v2754_v58 = vsel %vm144_vm1, %v2752_v63, %v2753_v19 }
 0x28f   :  { %v2782_v23 = vpop.permute.xlu1 %2781  ;;  %v2772_v2 = vpop.permute.xlu0 %2771  ;;  %v2766_v7 = vadd.f32 %v2764_v59, %v2706_v42  ;;  %v2756_v18 = vadd.f32 %v2754_v58, %v2696_v13 }
 0x290   :  { %v2783_v44 = vrot.slane %v2782_v23, 1  ;;  %v2773_v3 = vrot.slane %v2772_v2, 1 }
 0x292   :  { %v2784_v33 = vsel %vm205_vm2, %v2782_v23, %v2783_v44  ;;  %v2774_v46 = vsel %vm205_vm2, %v2772_v2, %v2773_v3 }
 0x293   :  { %v2802_v27 = vpop.permute.xlu1 %2801  ;;  %v2792_v36 = vpop.permute.xlu0 %2791  ;;  %v2786_v9 = vadd.f32 %v2784_v33, %v2726_v50  ;;  %v2776_v35 = vadd.f32 %v2774_v46, %v2716_v41 }
 0x294   :  { %v2803_v45 = vrot.slane %v2802_v27, 1  ;;  %v2793_v61 = vrot.slane %v2792_v36, 1 }
 0x296   :  { %v2804_v5 = vsel %vm205_vm2, %v2802_v27, %v2803_v45  ;;  %v2794_v12 = vsel %vm205_vm2, %v2792_v36, %v2793_v61 }
 0x297   :  { %v2822_v28 = vpop.permute.xlu1 %2821  ;;  %v2812_v14 = vpop.permute.xlu0 %2811  ;;  %v2806_v11 = vadd.f32 %v2804_v5, %v2746_v15 }
 0x298   :  { %v2823_v38 = vrot.slane %v2822_v28, 1  ;;  %v2813_v53 = vrot.slane %v2812_v14, 1 }
 0x29a   :  { %v2824_v39 = vsel %vm205_vm2, %v2822_v28, %v2823_v38  ;;  %v2814_v48 = vsel %vm205_vm2, %v2812_v14, %v2813_v53  ;;  %v2796_v14 = vadd.f32 %v2794_v12, %v2736_v47 }
 0x29b   :  { %v2842_v34 = vpop.permute.xlu1 %2841  ;;  %v2832_v52 = vpop.permute.xlu0 %2831  ;;  %v2826_v40 = vadd.f32 %v2824_v39, %v2766_v7  ;;  %v2816_v37 = vadd.f32 %v2814_v48, %v2756_v18 }
 0x29c   :  { %v2843_v60 = vrot.slane %v2842_v34, 1  ;;  %v2833_v26 = vrot.slane %v2832_v52, 1 }
 0x29e   :  { %v2844_v57 = vsel %vm266_vm3, %v2842_v34, %v2843_v60  ;;  %v2834_v10 = vsel %vm266_vm3, %v2832_v52, %v2833_v26 }
 0x29f   :  { %v2862_v8 = vpop.permute.xlu1 %2861  ;;  %v6200_v0 = vpop.permute.xlu0 %2851  ;;  %v2846_v34 = vadd.f32 %v2844_v57, %v2786_v9  ;;  %v2836_v16 = vadd.f32 %v2834_v10, %v2776_v35 }
 0x2a0   :  { %v2863_v55 = vrot.slane %v2862_v8, 1  ;;  %v2853_v63 = vrot.slane %v6200_v0, 1 }
 0x2a2   :  { %v2864_v27 = vsel %vm266_vm3, %v2862_v8, %v2863_v55  ;;  %v2854_v52 = vsel %vm266_vm3, %v6200_v0, %v2853_v63 }
 0x2a3   :  { %v6202_v32 = vpop.permute.xlu1 %2881  ;;  %v6204_v30 = vpop.permute.xlu0 %2871  ;;  %v2866_v3 = vadd.f32 %v2864_v27, %v2806_v11  ;;  %v2856_v33 = vadd.f32 %v2854_v52, %v2796_v14 }
 0x2a4   :  { %v2883_v42 = vrot.slane %v6202_v32, 1  ;;  %v2873_v13 = vrot.slane %v6204_v30, 1 }
 0x2a6   :  { %v2884_v8 = vsel %vm266_vm3, %v6202_v32, %v2883_v42  ;;  %v2874_v31 = vsel %vm266_vm3, %v6204_v30, %v2873_v13 }
 0x2a7   :  { %v6206_v62 = vpop.permute.xlu1 %2901  ;;  %v6208_v29 = vpop.permute.xlu0 %2891  ;;  %v2886_v46 = vadd.f32 %v2884_v8, %v2826_v40 }
 0x2a8   :  { %v2903_v36 = vrot.slane %v6206_v62, 1  ;;  %v2893_v28 = vrot.slane %v6208_v29, 1 }
 0x2aa   :  { %v2904_v22 = vsel %vm327_vm4, %v6206_v62, %v2903_v36  ;;  %v2894_v59 = vsel %vm327_vm4, %v6208_v29, %v2893_v28  ;;  %v2876_v29 = vadd.f32 %v2874_v31, %v2816_v37 }
 0x2ab   :  { %v6210_v24 = vpop.permute.xlu1 %2921  ;;  %v6212_v25 = vpop.permute.xlu0 %2911  ;;  %v2906_v50 = vadd.f32 %v2904_v22, %v2846_v34  ;;  %v2896_v41 = vadd.f32 %v2894_v59, %v2836_v16 }
 0x2ac   :  { %v2923_v4 = vrot.slane %v6210_v24, 1  ;;  %v2913_v19 = vrot.slane %v6212_v25, 1 }
 0x2ae   :  { %v2924_v32 = vsel %vm327_vm4, %v6210_v24, %v2923_v4  ;;  %v2914_v61 = vsel %vm327_vm4, %v6212_v25, %v2913_v19 }
 0x2af   :  { %v6214_v6 = vpop.permute.xlu1 %2941  ;;  %v6216_v21 = vpop.permute.xlu0 %2931  ;;  %v2926_v15 = vadd.f32 %v2924_v32, %v2866_v3  ;;  %v2916_v7 = vadd.f32 %v2914_v61, %v2856_v33 }
 0x2b0   :  { %v2943_v45 = vrot.slane %v6214_v6, 1  ;;  %v2933_v62 = vrot.slane %v6216_v21, 1 }
 0x2b2   :  { %v2944_v55 = vsel %vm327_vm4, %v6214_v6, %v2943_v45 }
 0x2b3   :  { %v6218_v54 = vpop.permute.xlu1 %2961  ;;  %v6220_v1 = vpop.permute.xlu0 %2951  ;;  %v2946_v52 = vadd.f32 %v2944_v55, %v2886_v46 }
 0x2b4   :  { %v2963_v51 = vrot.slane %v6218_v54, 1  ;;  %v2953_v0 = vrot.slane %v6220_v1, 1 }
 0x2b6   :  { %v2964_v60 = vsel %vm388_vm5, %v6218_v54, %v2963_v51  ;;  %v2954_v24 = vsel %vm388_vm5, %v6220_v1, %v2953_v0  ;;  %v2934_v54 = vsel %vm327_vm4, %v6216_v21, %v2933_v62 }
 0x2b7   :  { %v6222_v17 = vpop.permute.xlu1 %2981  ;;  %v6224_v56 = vpop.permute.xlu0 %2971  ;;  %v2966_v35 = vadd.f32 %v2964_v60, %v2906_v50  ;;  %v2956_v39 = vadd.f32 %v2954_v24, %v2896_v41  ;;  %v2936_v31 = vadd.f32 %v2934_v54, %v2876_v29 }
 0x2b8   :  { %v2983_v58 = vrot.slane %v6222_v17, 1  ;;  %v2973_v25 = vrot.slane %v6224_v56, 1 }
 0x2ba   :  { %v2984_v47 = vsel %vm388_vm5, %v6222_v17, %v2983_v58  ;;  %v2974_v6 = vsel %vm388_vm5, %v6224_v56, %v2973_v25 }
 0x2bb   :  { %v6234_v49 = vpop.permute.xlu1 %3001  ;;  %v6238_v43 = vpop.permute.xlu0 %2991  ;;  %v2986_v48 = vadd.f32 %v2984_v47, %v2926_v15  ;;  %v2976_v37 = vadd.f32 %v2974_v6, %v2916_v7 }
 0x2bc   :  { %v3003_v17 = vrot.slane %v6234_v49, 1 }
 0x2be   :  { %v3004_v56 = vsel %vm388_vm5, %v6234_v49, %v3003_v17 }
 0x2bf   :  { %v3022_v23 = vpop.permute.xlu1 %3021  ;;  %v3012_v2 = vpop.permute.xlu0 %3011 }
 0x2c0   :  { %v3023_v30 = vrot.slane %v3022_v23, 1  ;;  %v3013_v38 = vrot.slane %v3012_v2, 1 }
 0x2c2   :  { %v3024_v18 = vsel %vm449_vm6, %v3022_v23, %v3023_v30  ;;  %v3014_v5 = vsel %vm449_vm6, %v3012_v2, %v3013_v38  ;;  %v2993_v23 = vrot.slane %v6238_v43, 1 }
 0x2c3   :  { %v3042_v44 = vpop.permute.xlu1 %3041  ;;  %v3032_v20 = vpop.permute.xlu0 %3031  ;;  %v3026_v10 = vadd.f32 %v3024_v18, %v2966_v35  ;;  %v3016_v13 = vadd.f32 %v3014_v5, %v2956_v39 }
 0x2c4   :  { %v3043_v9 = vrot.slane %v3042_v44, 1  ;;  %v3033_v12 = vrot.slane %v3032_v20, 1  ;;  %v2994_v19 = vsel %vm388_vm5, %v6238_v43, %v2993_v23  ;;  %v3006_v43 = vadd.f32 %v3004_v56, %v2946_v52 }
 0x2c5   :  { %v2996_v33 = vadd.f32 %v2994_v19, %v2936_v31 }
 0x2c6   :  { %v3044_v21 = vsel %vm449_vm6, %v3042_v44, %v3043_v9  ;;  %v3034_v27 = vsel %vm449_vm6, %v3032_v20, %v3033_v12 }
 0x2c7   :  { %v3062_v53 = vpop.permute.xlu1 %3061  ;;  %v3052_v26 = vpop.permute.xlu0 %3051  ;;  %v3046_v44 = vadd.f32 %v3044_v21, %v2986_v48  ;;  %v3036_v51 = vadd.f32 %v3034_v27, %v2976_v37 }
 0x2c8   :  { %v3063_v11 = vrot.slane %v3062_v53, 1  ;;  %v3053_v36 = vrot.slane %v3052_v26, 1 }
 0x2ca   :  { %v3064_v20 = vsel %vm449_vm6, %v3062_v53, %v3063_v11  ;;  %v3054_v22 = vsel %vm449_vm6, %v3052_v26, %v3053_v36 }
 0x2cb   :  { %v3082_v1 = vpop.permute.xlu1 %3081  ;;  %v3072_v57 = vpop.permute.xlu0 %3071  ;;  %v3066_v46 = vadd.f32 %v3064_v20, %v3006_v43  ;;  %v3056_v62 = vadd.f32 %v3054_v22, %v2996_v33 }
 0x2cc   :  { %v3083_v63 = vrot.slane %v3082_v1, 1  ;;  %v3073_v42 = vrot.slane %v3072_v57, 1 }
 0x2ce   :  { %v3084_v2 = vsel %vm510_vm7, %v3082_v1, %v3083_v63  ;;  %v3074_v14 = vsel %vm510_vm7, %v3072_v57, %v3073_v42 }
 0x2cf   :  { %v3086_v28 = vadd.f32 %v3084_v2, %v3026_v10  ;;  %v3102_v40 = vpop.permute.xlu1 %3101  ;;  %v3076_v4 = vadd.f32 %v3074_v14, %v3016_v13  ;;  %v3092_v16 = vpop.permute.xlu0 %3091 }
 0x2d0   :  { %v3103_v34 = vrot.slane %v3102_v40, 1  ;;  %v3093_v8 = vrot.slane %v3092_v16, 1 }
 0x2d1   :  { %3501 = vst.msk [vmem:[%s6339_s3 + $0x11] ss:$8 sm:$0x3] %vm5230_vm8, %v3086_v28  ;;  %3500 = vst.msk [vmem:[%s6339_s3 + $0x10] ss:$8 sm:$0x3] %vm5230_vm8, %v3076_v4 }
 0x2d2   :  { %v3104_v49 = vsel %vm510_vm7, %v3102_v40, %v3103_v34  ;;  %v3094_v0 = vsel %vm510_vm7, %v3092_v16, %v3093_v8 }
 0x2d3   :  { %v3106_v59 = vadd.f32 %v3104_v49, %v3046_v44  ;;  %v3122_v58 = vpop.permute.xlu1 %3121  ;;  %v3096_v32 = vadd.f32 %v3094_v0, %v3036_v51  ;;  %v3112_v30 = vpop.permute.xlu0 %3111 }
 0x2d4   :  { %v3123_v45 = vrot.slane %v3122_v58, 1  ;;  %v3113_v61 = vrot.slane %v3112_v30, 1 }
 0x2d5   :  { %3503 = vst.msk [vmem:[%s6339_s3 + $0x13] ss:$8 sm:$0x3] %vm5230_vm8, %v3106_v59  ;;  %3502 = vst.msk [vmem:[%s6339_s3 + $0x12] ss:$8 sm:$0x3] %vm5230_vm8, %v3096_v32 }
 0x2d6   :  { %v3124_v38 = vsel %vm510_vm7, %v3122_v58, %v3123_v45  ;;  %v3114_v29 = vsel %vm510_vm7, %v3112_v30, %v3113_v61 }
 0x2d7   :  { %v3126_v53 = vadd.f32 %v3124_v38, %v3066_v46  ;;  %v3116_v50 = vadd.f32 %v3114_v29, %v3056_v62 }
 0x2d9   :  { %3505 = vst.msk [vmem:[%s6339_s3 + $0x15] ss:$8 sm:$0x3] %vm5230_vm8, %v3126_v53  ;;  %3504 = vst.msk [vmem:[%s6339_s3 + $0x14] ss:$8 sm:$0x3] %vm5230_vm8, %v3116_v50 }
 0x2da   :  { %3149 = vsyncpa [#allocation3], 1 }
 0x2db   :  { %3150 = vsyncpa [#allocation5], 1 }

</bundles_post_ra>
